<compile_context>
chip_gen: v6e
topology: v6e:2x2x1
jax: 0.10.0
libtpu: 0.0.40
codegen_flags: <defaults>
</compile_context>

<pallas_src>
import functools

import jax
import jax.numpy as jnp
from jax.experimental import pallas as pl
from jax.experimental.pallas import tpu as pltpu


def _round_up(x, m):
    return (x + m - 1) // m * m


def _pick_tile(dim, pref, align):
    """Largest tile t <= pref with t % align == 0 and dim % t == 0; else the full dim."""
    if dim <= pref or dim % align != 0:
        return dim
    t = (pref // align) * align
    while t >= align:
        if dim % t == 0:
            return t
        t -= align
    return dim


def _pick_seq_tile(T, pref):
    """Sequence tile + padded length.  pref must be a multiple of 128 so a tiled mask /
    K/V block stays legal w.r.t. the (8,128) BlockSpec constraint."""
    if T <= pref:
        t = _round_up(T, 8)
        return t, t
    return pref, _round_up(T, pref)


# ----------------------------- Pallas kernels -----------------------------

def _linear_kernel(x_ref, w_ref, b_ref, o_ref, acc_ref, *, relu):
    @pl.when(pl.program_id(2) == 0)
    def _init():
        acc_ref[...] = jnp.zeros_like(acc_ref)

    acc_ref[...] += jnp.dot(x_ref[...], w_ref[...],
                            preferred_element_type=jnp.float32)

    @pl.when(pl.program_id(2) == pl.num_programs(2) - 1)
    def _finish():
        y = acc_ref[...] + b_ref[...]
        if relu:
            y = jnp.maximum(y, 0.0)
        o_ref[...] = y.astype(o_ref.dtype)


def linear_pallas(x, w, b, *, relu=False, out_dtype=jnp.bfloat16,
                  tm=256, tn=512, tk=512):
    """x: (..., K) @ w: (K, N) + b: (1, N).  Weights arrive pre-cast to bf16 and
    pre-shaped from prepare_params (no per-call casts/pads of weights)."""
    lead, K = x.shape[:-1], x.shape[-1]
    N = w.shape[1]
    x2 = x.reshape(-1, K).astype(jnp.bfloat16)
    M = x2.shape[0]

    tm = min(tm, _round_up(M, 8))          # at prod shapes M = B*T >= 128 rows/block
    Mp = _round_up(M, tm)
    tn = _pick_tile(N, tn, 128)
    tk = _pick_tile(K, tk, 128)
    if Mp != M:
        x2 = jnp.pad(x2, ((0, Mp - M), (0, 0)))

    grid = (Mp // tm, N // tn, K // tk)    # leading parallel axis = M (megacore)
    out = pl.pallas_call(
        functools.partial(_linear_kernel, relu=relu),
        out_shape=jax.ShapeDtypeStruct((Mp, N), out_dtype),
        grid=grid,
        in_specs=[pl.BlockSpec((tm, tk), lambda i, j, k: (i, k)),
                  pl.BlockSpec((tk, tn), lambda i, j, k: (k, j)),
                  pl.BlockSpec((1, tn), lambda i, j, k: (0, j))],
        out_specs=pl.BlockSpec((tm, tn), lambda i, j, k: (i, j)),
        scratch_shapes=[pltpu.VMEM((tm, tn), jnp.float32)],
        compiler_params=pltpu.CompilerParams(
            dimension_semantics=("parallel", "parallel", "arbitrary")),
    )(x2, w, b)
    out = out[:M] if Mp != M else out
    return out.reshape(*lead, N)


def _linear_addln_kernel(x_ref, w_ref, b_ref, r_ref, g_ref, bt_ref, o_ref, acc_ref,
                         *, eps):
    @pl.when(pl.program_id(1) == 0)
    def _init():
        acc_ref[...] = jnp.zeros_like(acc_ref)

    acc_ref[...] += jnp.dot(x_ref[...], w_ref[...],
                            preferred_element_type=jnp.float32)

    @pl.when(pl.program_id(1) == pl.num_programs(1) - 1)
    def _finish():
        # residual add + LayerNorm fused into the f32 accumulator epilogue
        y = acc_ref[...] + b_ref[...] + r_ref[...].astype(jnp.float32)
        mean = jnp.mean(y, axis=-1, keepdims=True)
        var = jnp.mean(jnp.square(y - mean), axis=-1, keepdims=True)
        yn = (y - mean) * jax.lax.rsqrt(var + eps)
        o_ref[...] = (yn * g_ref[...] + bt_ref[...]).astype(o_ref.dtype)


def linear_add_layernorm_pallas(x, w, b, res, gamma, beta, *, eps=1e-12,
                                tm=256, tk=512):
    """LayerNorm((x @ w + b) + res), fully fused.  Needs the whole output row (N =
    d_model) in one block so the LN reduction is complete (true for the wo / lin2
    projections)."""
    lead, K = x.shape[:-1], x.shape[-1]
    N = w.shape[1]
    x2 = x.reshape(-1, K).astype(jnp.bfloat16)
    r2 = res.reshape(-1, N).astype(jnp.bfloat16)
    M = x2.shape[0]
    tm = min(tm, _round_up(M, 8))
    Mp = _round_up(M, tm)
    tk = _pick_tile(K, tk, 128)
    if Mp != M:
        x2 = jnp.pad(x2, ((0, Mp - M), (0, 0)))
        r2 = jnp.pad(r2, ((0, Mp - M), (0, 0)))

    grid = (Mp // tm, K // tk)
    out = pl.pallas_call(
        functools.partial(_linear_addln_kernel, eps=eps),
        out_shape=jax.ShapeDtypeStruct((Mp, N), jnp.bfloat16),
        grid=grid,
        in_specs=[pl.BlockSpec((tm, tk), lambda i, k: (i, k)),
                  pl.BlockSpec((tk, N), lambda i, k: (k, 0)),
                  pl.BlockSpec((1, N), lambda i, k: (0, 0)),
                  pl.BlockSpec((tm, N), lambda i, k: (i, 0)),
                  pl.BlockSpec((1, N), lambda i, k: (0, 0)),
                  pl.BlockSpec((1, N), lambda i, k: (0, 0))],
        out_specs=pl.BlockSpec((tm, N), lambda i, k: (i, 0)),
        scratch_shapes=[pltpu.VMEM((tm, N), jnp.float32)],
        compiler_params=pltpu.CompilerParams(
            dimension_semantics=("parallel", "arbitrary")),
    )(x2, w, b, r2, gamma, beta)
    out = out[:M] if Mp != M else out
    return out.reshape(*lead, N)


def _mha_flash_kernel(qm_ref, km_ref, q_ref, k_ref, v_ref, o_ref,
                      m_ref, l_ref, acc_ref, *, heads, dh, scale, causal, tq, tk):
    j = pl.program_id(2)

    @pl.when(j == 0)
    def _init():
        m_ref[...] = jnp.full(m_ref.shape, -1e30, jnp.float32)
        l_ref[...] = jnp.zeros(l_ref.shape, jnp.float32)
        acc_ref[...] = jnp.zeros(acc_ref.shape, jnp.float32)

    # mask generated in-kernel: key-pad row (1,tk) & query-pad column (tq,1) & causal
    keep = jnp.logical_and(km_ref[0] > 0, qm_ref[0] > 0)          # (tq, tk) bool
    if causal:
        qpos = jax.lax.broadcasted_iota(jnp.int32, (tq, tk), 0) + pl.program_id(1) * tq
        kpos = jax.lax.broadcasted_iota(jnp.int32, (tq, tk), 1) + j * tk
        keep = jnp.logical_and(keep, qpos >= kpos)

    q = q_ref[0]                        # (tq, D) bf16 — all heads side by side
    k = k_ref[0]                        # (tk, D) bf16
    v = v_ref[0]                        # (tk, D) bf16

    for h in range(heads):              # static unroll over heads; lane-sliced reads
        sl = slice(h * dh, (h + 1) * dh)
        s = jax.lax.dot_general(q[:, sl], k[:, sl], (((1,), (1,)), ((), ())),
                                preferred_element_type=jnp.float32) * scale
        s = jnp.where(keep, s, -10000.0)          # masked_fill(mask==0, -10000)
        m_prev = m_ref[h]                          # (tq, 1)
        m_new = jnp.maximum(m_prev, jnp.max(s, axis=-1, keepdims=True))
        alpha = jnp.exp(m_prev - m_new)
        p = jnp.exp(s - m_new)
        l_ref[h] = alpha * l_ref[h] + jnp.sum(p, axis=-1, keepdims=True)
        acc_ref[h] = alpha * acc_ref[h] + jnp.dot(
            p.astype(v.dtype), v[:, sl], preferred_element_type=jnp.float32)
        m_ref[h] = m_new

    @pl.when(j == pl.num_programs(2) - 1)
    def _finish():
        # single lane-dense (tq, D) store; softmax denominator via the EUP reciprocal
        o_ref[0] = jnp.concatenate(
            [acc_ref[h] * pl.reciprocal(l_ref[h], approx=True) for h in range(heads)],
            axis=-1).astype(o_ref.dtype)


def attention_pallas(q, k, v, q_keep, k_keep, *, causal, n_head, tq=256, tk=512):
    """q/k/v: (B, T, D) bf16 in model layout (no head transpose).  q_keep: (B, Tq, 1)
    int32 query-pad mask, k_keep: (B, 1, Tk) int32 key-pad mask; causal handled by
    in-kernel iota.  Flash-style online softmax over Tk tiles."""
    B, Tq, D = q.shape
    Tk = k.shape[1]
    dh = D // n_head
    tq, Tqp = _pick_seq_tile(Tq, tq)
    tk, Tkp = _pick_seq_tile(Tk, tk)
    if Tqp != Tq:
        q = jnp.pad(q, ((0, 0), (0, Tqp - Tq), (0, 0)))
        q_keep = jnp.pad(q_keep, ((0, 0), (0, Tqp - Tq), (0, 0)))
    if Tkp != Tk:
        k = jnp.pad(k, ((0, 0), (0, Tkp - Tk), (0, 0)))
        v = jnp.pad(v, ((0, 0), (0, Tkp - Tk), (0, 0)))
        k_keep = jnp.pad(k_keep, ((0, 0), (0, 0), (0, Tkp - Tk)))   # padded keys masked
    scale = 1.0 / float(dh) ** 0.5

    grid = (B, Tqp // tq, Tkp // tk)    # leading parallel axis = B (v7x megacore);
    out = pl.pallas_call(               # K/V index_map ignores the q-tile axis.
        functools.partial(_mha_flash_kernel, heads=n_head, dh=dh, scale=scale,
                          causal=causal, tq=tq, tk=tk),
        out_shape=jax.ShapeDtypeStruct((B, Tqp, D), jnp.bfloat16),
        grid=grid,
        in_specs=[pl.BlockSpec((1, tq, 1), lambda b, i, j: (b, i, 0)),
                  pl.BlockSpec((1, 1, tk), lambda b, i, j: (b, 0, j)),
                  pl.BlockSpec((1, tq, D), lambda b, i, j: (b, i, 0)),
                  pl.BlockSpec((1, tk, D), lambda b, i, j: (b, j, 0)),
                  pl.BlockSpec((1, tk, D), lambda b, i, j: (b, j, 0))],
        out_specs=pl.BlockSpec((1, tq, D), lambda b, i, j: (b, i, 0)),
        scratch_shapes=[pltpu.VMEM((n_head, tq, 1), jnp.float32),
                        pltpu.VMEM((n_head, tq, 1), jnp.float32),
                        pltpu.VMEM((n_head, tq, dh), jnp.float32)],
        compiler_params=pltpu.CompilerParams(
            dimension_semantics=("parallel", "parallel", "arbitrary")),
    )(q_keep, k_keep, q, k, v)
    return out[:, :Tq] if Tqp != Tq else out


# ----------------------------- model glue (plain JAX) -----------------------------

def multi_head_attention(p, q_in, kv_in, q_keep, k_keep, causal, n_head,
                         residual, ln):
    B, Tq, D = q_in.shape
    if "w_qkv" in p:   # self-attention: fused QKV projection (one MXU pass)
        qkv = linear_pallas(q_in, p["w_qkv"], p["b_qkv"])
        q, k, v = qkv[..., :D], qkv[..., D:2 * D], qkv[..., 2 * D:]
    else:              # cross-attention: fused KV projection on the encoder memory
        q = linear_pallas(q_in, p["wq"], p["bq"])
        kv = linear_pallas(kv_in, p["w_kv"], p["b_kv"])
        k, v = kv[..., :D], kv[..., D:]
    o = attention_pallas(q, k, v, q_keep, k_keep, causal=causal, n_head=n_head)
    # wo projection + residual add + LayerNorm fused; o is already (B, Tq, D)
    return linear_add_layernorm_pallas(o, p["wo"], p["bo"], residual,
                                       ln["g"], ln["b"])


def sinusoid_pe(T, d_model):
    pos = jnp.arange(T, dtype=jnp.float32)[:, None]
    i2 = jnp.arange(0, d_model, 2, dtype=jnp.float32)[None, :]
    angle = pos / jnp.power(10000.0, i2 / d_model)
    pe = jnp.zeros((T, d_model), jnp.float32)
    pe = pe.at[:, 0::2].set(jnp.sin(angle))
    pe = pe.at[:, 1::2].set(jnp.cos(angle))
    return pe


def embed(tok_emb, tokens, d_model):
    # TODO(synk): token gather + PE add kept in plain JAX (XLA gather); negligible cost.
    T = tokens.shape[1]
    x = tok_emb[tokens] + sinusoid_pe(T, d_model)[None]
    return x.astype(jnp.bfloat16)


def encoder_forward(p, src, src_kmask, n_head, d_model):
    x = embed(p["tok_emb"], src, d_model)
    B, Ts = src.shape
    q_ones = jnp.ones((B, Ts, 1), jnp.int32)   # src_mask never masks query rows
    for lp in p["layers"]:
        x = multi_head_attention(lp["attn"], x, x, q_ones, src_kmask, False,
                                 n_head, x, lp["norm1"])
        h = linear_pallas(x, lp["ffn"]["w1"], lp["ffn"]["b1"], relu=True)
        x = linear_add_layernorm_pallas(h, lp["ffn"]["w2"], lp["ffn"]["b2"],
                                        x, lp["norm2"]["g"], lp["norm2"]["b"])
    return x


def decoder_forward(p, trg, enc_src, trg_qmask, src_kmask, n_head, d_model, vocab):
    x = embed(p["tok_emb"], trg, d_model)
    B, Tt = trg.shape
    q_ones = jnp.ones((B, Tt, 1), jnp.int32)
    k_ones = jnp.ones((B, 1, Tt), jnp.int32)   # trg pad mask acts on query rows only
    for lp in p["layers"]:
        x = multi_head_attention(lp["self_attn"], x, x, trg_qmask, k_ones, True,
                                 n_head, x, lp["norm1"])
        x = multi_head_attention(lp["cross_attn"], x, enc_src, q_ones, src_kmask,
                                 False, n_head, x, lp["norm2"])
        h = linear_pallas(x, lp["ffn"]["w1"], lp["ffn"]["b1"], relu=True)
        x = linear_add_layernorm_pallas(h, lp["ffn"]["w2"], lp["ffn"]["b2"],
                                        x, lp["norm3"]["g"], lp["norm3"]["b"])
    # vocab projection: weight pre-padded to a 128 multiple once in prepare_params,
    # N streamed in tn tiles; only one small slice of the logits remains.
    logits = linear_pallas(x, p["out"]["w"], p["out"]["b"], out_dtype=jnp.float32)
    return logits[..., :vocab]


@functools.partial(jax.jit, static_argnums=(3, 4, 5, 6, 7))
def transformer_forward(params, src, trg, src_pad_idx, trg_pad_idx, n_head, d_model,
                        vocab):
    # make_src_mask: (src != pad)[:, None, None, :] — masks KEY columns only
    src_kmask = (src != src_pad_idx).astype(jnp.int32)[:, None, :]   # (B, 1, Ts)
    # make_trg_mask: pad mask over QUERY rows & causal tril; causal part generated
    # in-kernel from iota, so no dense (B, T, T) mask ever touches HBM.
    trg_qmask = (trg != trg_pad_idx).astype(jnp.int32)[:, :, None]   # (B, Tt, 1)
    enc = encoder_forward(params["encoder"], src, src_kmask, n_head, d_model)
    return decoder_forward(params["decoder"], trg, enc, trg_qmask, src_kmask,
                           n_head, d_model, vocab)


# ----------------------------- one-time param transform -----------------------------

def prepare_params(raw, d_model, vocab):
    """Run ONCE (not per forward): cast weights to bf16, fuse QKV / KV projection
    weights, reshape biases/LN params to (1, N) f32, pad the vocab projection to a
    lane-dense 128 multiple.  Removes all per-step weight casts/pads/concats."""
    f32, bf16 = jnp.float32, jnp.bfloat16

    def ln(p):
        return {"g": p["g"].astype(f32).reshape(1, -1),
                "b": p["b"].astype(f32).reshape(1, -1)}

    def self_attn(p):
        w_qkv = jnp.concatenate([p["wq"]["w"], p["wk"]["w"], p["wv"]["w"]], axis=1)
        b_qkv = jnp.concatenate([p["wq"]["b"], p["wk"]["b"], p["wv"]["b"]], axis=0)
        return {"w_qkv": w_qkv.astype(bf16),
                "b_qkv": b_qkv.astype(f32).reshape(1, -1),
                "wo": p["wo"]["w"].astype(bf16),
                "bo": p["wo"]["b"].astype(f32).reshape(1, -1)}

    def cross_attn(p):
        w_kv = jnp.concatenate([p["wk"]["w"], p["wv"]["w"]], axis=1)
        b_kv = jnp.concatenate([p["wk"]["b"], p["wv"]["b"]], axis=0)
        return {"wq": p["wq"]["w"].astype(bf16),
                "bq": p["wq"]["b"].astype(f32).reshape(1, -1),
                "w_kv": w_kv.astype(bf16),
                "b_kv": b_kv.astype(f32).reshape(1, -1),
                "wo": p["wo"]["w"].astype(bf16),
                "bo": p["wo"]["b"].astype(f32).reshape(1, -1)}

    def ffn(p):
        return {"w1": p["lin1"]["w"].astype(bf16),
                "b1": p["lin1"]["b"].astype(f32).reshape(1, -1),
                "w2": p["lin2"]["w"].astype(bf16),
                "b2": p["lin2"]["b"].astype(f32).reshape(1, -1)}

    enc = {"tok_emb": raw["encoder"]["tok_emb"].astype(f32),
           "layers": [{"attn": self_attn(l["attn"]), "norm1": ln(l["norm1"]),
                       "ffn": ffn(l["ffn"]), "norm2": ln(l["norm2"])}
                      for l in raw["encoder"]["layers"]]}

    vp = _round_up(vocab, 128)
    w_out = jnp.pad(raw["decoder"]["out"]["w"], ((0, 0), (0, vp - vocab))).astype(bf16)
    b_out = jnp.pad(raw["decoder"]["out"]["b"], (0, vp - vocab)).astype(f32)
    dec = {"tok_emb": raw["decoder"]["tok_emb"].astype(f32),
           "layers": [{"self_attn": self_attn(l["self_attn"]), "norm1": ln(l["norm1"]),
                       "cross_attn": cross_attn(l["cross_attn"]), "norm2": ln(l["norm2"]),
                       "ffn": ffn(l["ffn"]), "norm3": ln(l["norm3"])}
                      for l in raw["decoder"]["layers"]],
           "out": {"w": w_out, "b": b_out.reshape(1, -1)}}
    return {"encoder": enc, "decoder": dec}


# ----------------------------- deterministic init -----------------------------

def init_linear_params(key, din, dout, scale=0.05):
    kw, kb = jax.random.split(key)
    return {"w": jax.random.normal(kw, (din, dout), jnp.float32) * scale,
            "b": jax.random.normal(kb, (dout,), jnp.float32) * 0.01}


def init_attention_params(key, d_model):
    ks = jax.random.split(key, 4)
    return {"wq": init_linear_params(ks[0], d_model, d_model),
            "wk": init_linear_params(ks[1], d_model, d_model),
            "wv": init_linear_params(ks[2], d_model, d_model),
            "wo": init_linear_params(ks[3], d_model, d_model)}


def init_ln_params(d_model):
    return {"g": jnp.ones((d_model,), jnp.float32),
            "b": jnp.zeros((d_model,), jnp.float32)}


def init_ffn_params(key, d_model, d_ff):
    k1, k2 = jax.random.split(key)
    return {"lin1": init_linear_params(k1, d_model, d_ff),
            "lin2": init_linear_params(k2, d_ff, d_model)}


def init_params(key, vocab, d_model, n_head, n_layer, d_ff):
    keys = jax.random.split(key, 4)

    def enc_layer(k):
        k1, k2 = jax.random.split(k)
        return {"attn": init_attention_params(k1, d_model),
                "norm1": init_ln_params(d_model),
                "ffn": init_ffn_params(k2, d_model, d_ff),
                "norm2": init_ln_params(d_model)}

    def dec_layer(k):
        k1, k2, k3 = jax.random.split(k, 3)
        return {"self_attn": init_attention_params(k1, d_model),
                "norm1": init_ln_params(d_model),
                "cross_attn": init_attention_params(k2, d_model),
                "norm2": init_ln_params(d_model),
                "ffn": init_ffn_params(k3, d_model, d_ff),
                "norm3": init_ln_params(d_model)}

    enc_keys = jax.random.split(keys[0], n_layer)
    dec_keys = jax.random.split(keys[1], n_layer)
    encoder = {"tok_emb": jax.random.normal(keys[2], (vocab, d_model), jnp.float32) * 0.05,
               "layers": [enc_layer(k) for k in enc_keys]}
    kemb, kout = jax.random.split(keys[3])
    decoder = {"tok_emb": jax.random.normal(kemb, (vocab, d_model), jnp.float32) * 0.05,
               "layers": [dec_layer(k) for k in dec_keys],
               "out": init_linear_params(kout, d_model, vocab)}
    return {"encoder": encoder, "decoder": decoder}


# ----------------------------- main -----------------------------

if __name__ == "__main__":
    key = jax.random.PRNGKey(0)
    B, Ts, Tt = 2, 8, 8
    vocab = 50                         # src_vocab_size == tgt_vocab_size (synthetic)
    d_model, n_head, n_layer, d_ff = 32, 4, 2, 64
    src_pad_idx = trg_pad_idx = 0

    kp, ksrc, ktrg = jax.random.split(key, 3)
    raw_params = init_params(kp, vocab, d_model, n_head, n_layer, d_ff)
    params = prepare_params(raw_params, d_model, vocab)   # one-time weight transform

    src = jax.random.randint(ksrc, (B, Ts), 1, vocab, dtype=jnp.int32)
    trg = jax.random.randint(ktrg, (B, Tt), 1, vocab, dtype=jnp.int32)
    src = src.at[:, Ts - 2:].set(src_pad_idx)   # exercise the pad masks
    trg = trg.at[:, Tt - 1:].set(trg_pad_idx)

    out = transformer_forward(params, src, trg, src_pad_idx, trg_pad_idx,
                              n_head, d_model, vocab)
    out = jax.block_until_ready(out)
    assert out.shape == (B, Tt, vocab)
    assert jnp.all(jnp.isfinite(out))
    print("KERNEL_OK")
</pallas_src>

<mosaic_0001>
module attributes {stable_mosaic.version = 11 : i64} {
  func.func @_linear_kernel(%arg0: i32, %arg1: i32, %arg2: i32, %arg3: memref<16x32xbf16, #tpu.memory_space<vmem>>, %arg4: memref<32x96xbf16, #tpu.memory_space<vmem>>, %arg5: memref<1x96xf32, #tpu.memory_space<vmem>>, %arg6: memref<16x96xbf16, #tpu.memory_space<vmem>>, %arg7: memref<16x96xf32, #tpu.memory_space<vmem>>) attributes {dimension_semantics = [#tpu.dimension_semantics<parallel>, #tpu.dimension_semantics<parallel>, #tpu.dimension_semantics<arbitrary>], iteration_bounds = array<i64: 1, 1, 1>, scalar_prefetch = 0 : i64, scratch_operands = 1 : i64, tpu.core_type = #tpu.core_type<tc>, window_params = [{transform_indices = @transform_0, window_bounds = array<i64: 16, 32>}, {transform_indices = @transform_1, window_bounds = array<i64: 32, 96>}, {transform_indices = @transform_2, window_bounds = array<i64: 1, 96>}, {transform_indices = @transform_3, window_bounds = array<i64: 16, 96>}]} {
    %c0_i32 = arith.constant 0 : i32
    %0 = arith.cmpi eq, %arg2, %c0_i32 : i32
    %1 = arith.extui %0 : i1 to i32
    %c0_i32_0 = arith.constant 0 : i32
    %2 = arith.cmpi ne, %1, %c0_i32_0 : i32
    scf.if %2 {
      %cst_10 = arith.constant 0.000000e+00 : f32
      %12 = vector.broadcast %cst_10 : f32 to vector<16x96xf32>
      %c0_11 = arith.constant 0 : index
      %c0_12 = arith.constant 0 : index
      %13 = vector.load %arg7[%c0_11, %c0_12] : memref<16x96xf32, #tpu.memory_space<vmem>>, vector<16x96xf32>
      tpu.vector_store %arg7[%c0_11, %c0_12], %12 {strides = array<i32>} : memref<16x96xf32, #tpu.memory_space<vmem>>, vector<16x96xf32>,
    } else {
    }
    %c0 = arith.constant 0 : index
    %c0_1 = arith.constant 0 : index
    %3 = vector.load %arg7[%c0, %c0_1] : memref<16x96xf32, #tpu.memory_space<vmem>>, vector<16x96xf32>
    %c0_2 = arith.constant 0 : index
    %c0_3 = arith.constant 0 : index
    %4 = vector.load %arg3[%c0_2, %c0_3] : memref<16x32xbf16, #tpu.memory_space<vmem>>, vector<16x32xbf16>
    %c0_4 = arith.constant 0 : index
    %c0_5 = arith.constant 0 : index
    %5 = vector.load %arg4[%c0_4, %c0_5] : memref<32x96xbf16, #tpu.memory_space<vmem>>, vector<32x96xbf16>
    %cst = arith.constant dense<0.000000e+00> : vector<16x96xf32>
    %6 = tpu.matmul %4, %5, %cst {dimension_numbers = #tpu.dot_dimension_numbers<[1], [0], [0], [1], [0, 0, 1, 1], [], []>} : vector<16x32xbf16>, vector<32x96xbf16>, vector<16x96xf32> -> vector<16x96xf32>
    %7 = arith.addf %3, %6 : vector<16x96xf32>
    %c0_6 = arith.constant 0 : index
    %c0_7 = arith.constant 0 : index
    %8 = vector.load %arg7[%c0_6, %c0_7] : memref<16x96xf32, #tpu.memory_space<vmem>>, vector<16x96xf32>
    tpu.vector_store %arg7[%c0_6, %c0_7], %7 {strides = array<i32>} : memref<16x96xf32, #tpu.memory_space<vmem>>, vector<16x96xf32>,
    %c0_i32_8 = arith.constant 0 : i32
    %9 = arith.cmpi eq, %arg2, %c0_i32_8 : i32
    %10 = arith.extui %9 : i1 to i32
    %c0_i32_9 = arith.constant 0 : i32
    %11 = arith.cmpi ne, %10, %c0_i32_9 : i32
    scf.if %11 {
      %c0_10 = arith.constant 0 : index
      %c0_11 = arith.constant 0 : index
      %12 = vector.load %arg7[%c0_10, %c0_11] : memref<16x96xf32, #tpu.memory_space<vmem>>, vector<16x96xf32>
      %c0_12 = arith.constant 0 : index
      %c0_13 = arith.constant 0 : index
      %13 = vector.load %arg5[%c0_12, %c0_13] : memref<1x96xf32, #tpu.memory_space<vmem>>, vector<1x96xf32>
      %14 = vector.broadcast %13 : vector<1x96xf32> to vector<16x96xf32>
      %15 = arith.addf %12, %14 : vector<16x96xf32>
      %16 = arith.truncf %15 : vector<16x96xf32> to vector<16x96xbf16>
      %c0_14 = arith.constant 0 : index
      %c0_15 = arith.constant 0 : index
      %17 = vector.load %arg6[%c0_14, %c0_15] : memref<16x96xbf16, #tpu.memory_space<vmem>>, vector<16x96xbf16>
      tpu.vector_store %arg6[%c0_14, %c0_15], %16 {strides = array<i32>} : memref<16x96xbf16, #tpu.memory_space<vmem>>, vector<16x96xbf16>,
    } else {
    }
    return
  }
  func.func @transform_0(%arg0: i32, %arg1: i32, %arg2: i32) -> (i32, i32) {
    %c0_i32 = arith.constant 0 : i32
    return %arg0, %arg2 : i32, i32
  }
  func.func @transform_1(%arg0: i32, %arg1: i32, %arg2: i32) -> (i32, i32) {
    %c0_i32 = arith.constant 0 : i32
    return %arg2, %arg1 : i32, i32
  }
  func.func @transform_2(%arg0: i32, %arg1: i32, %arg2: i32) -> (i32, i32) {
    %c0_i32 = arith.constant 0 : i32
    %c0_i32_0 = arith.constant 0 : i32
    return %c0_i32, %arg1 : i32, i32
  }
  func.func @transform_3(%arg0: i32, %arg1: i32, %arg2: i32) -> (i32, i32) {
    %c0_i32 = arith.constant 0 : i32
    return %arg0, %arg1 : i32, i32
  }
}

module attributes {stable_mosaic.version = 11 : i64} {
  func.func @_linear_addln_kernel(%arg0: i32, %arg1: i32, %arg2: memref<16x32xbf16, #tpu.memory_space<vmem>>, %arg3: memref<32x32xbf16, #tpu.memory_space<vmem>>, %arg4: memref<1x32xf32, #tpu.memory_space<vmem>>, %arg5: memref<16x32xbf16, #tpu.memory_space<vmem>>, %arg6: memref<1x32xf32, #tpu.memory_space<vmem>>, %arg7: memref<1x32xf32, #tpu.memory_space<vmem>>, %arg8: memref<16x32xbf16, #tpu.memory_space<vmem>>, %arg9: memref<16x32xf32, #tpu.memory_space<vmem>>) attributes {dimension_semantics = [#tpu.dimension_semantics<parallel>, #tpu.dimension_semantics<arbitrary>], iteration_bounds = array<i64: 1, 1>, scalar_prefetch = 0 : i64, scratch_operands = 1 : i64, tpu.core_type = #tpu.core_type<tc>, window_params = [{transform_indices = @transform_0, window_bounds = array<i64: 16, 32>}, {transform_indices = @transform_1, window_bounds = array<i64: 32, 32>}, {pipeline_mode = #tpu.pipeline_mode<synchronous>, transform_indices = @transform_2, window_bounds = array<i64: 1, 32>}, {transform_indices = @transform_3, window_bounds = array<i64: 16, 32>}, {pipeline_mode = #tpu.pipeline_mode<synchronous>, transform_indices = @transform_4, window_bounds = array<i64: 1, 32>}, {pipeline_mode = #tpu.pipeline_mode<synchronous>, transform_indices = @transform_5, window_bounds = array<i64: 1, 32>}, {transform_indices = @transform_6, window_bounds = array<i64: 16, 32>}]} {
    %c0_i32 = arith.constant 0 : i32
    %0 = arith.cmpi eq, %arg1, %c0_i32 : i32
    %1 = arith.extui %0 : i1 to i32
    %c0_i32_0 = arith.constant 0 : i32
    %2 = arith.cmpi ne, %1, %c0_i32_0 : i32
    scf.if %2 {
      %cst_10 = arith.constant 0.000000e+00 : f32
      %12 = vector.broadcast %cst_10 : f32 to vector<16x32xf32>
      %c0_11 = arith.constant 0 : index
      %c0_12 = arith.constant 0 : index
      %13 = vector.load %arg9[%c0_11, %c0_12] : memref<16x32xf32, #tpu.memory_space<vmem>>, vector<16x32xf32>
      tpu.vector_store %arg9[%c0_11, %c0_12], %12 {strides = array<i32>} : memref<16x32xf32, #tpu.memory_space<vmem>>, vector<16x32xf32>,
    } else {
    }
    %c0 = arith.constant 0 : index
    %c0_1 = arith.constant 0 : index
    %3 = vector.load %arg9[%c0, %c0_1] : memref<16x32xf32, #tpu.memory_space<vmem>>, vector<16x32xf32>
    %c0_2 = arith.constant 0 : index
    %c0_3 = arith.constant 0 : index
    %4 = vector.load %arg2[%c0_2, %c0_3] : memref<16x32xbf16, #tpu.memory_space<vmem>>, vector<16x32xbf16>
    %c0_4 = arith.constant 0 : index
    %c0_5 = arith.constant 0 : index
    %5 = vector.load %arg3[%c0_4, %c0_5] : memref<32x32xbf16, #tpu.memory_space<vmem>>, vector<32x32xbf16>
    %cst = arith.constant dense<0.000000e+00> : vector<16x32xf32>
    %6 = tpu.matmul %4, %5, %cst {dimension_numbers = #tpu.dot_dimension_numbers<[1], [0], [0], [1], [0, 0, 1, 1], [], []>} : vector<16x32xbf16>, vector<32x32xbf16>, vector<16x32xf32> -> vector<16x32xf32>
    %7 = arith.addf %3, %6 : vector<16x32xf32>
    %c0_6 = arith.constant 0 : index
    %c0_7 = arith.constant 0 : index
    %8 = vector.load %arg9[%c0_6, %c0_7] : memref<16x32xf32, #tpu.memory_space<vmem>>, vector<16x32xf32>
    tpu.vector_store %arg9[%c0_6, %c0_7], %7 {strides = array<i32>} : memref<16x32xf32, #tpu.memory_space<vmem>>, vector<16x32xf32>,
    %c0_i32_8 = arith.constant 0 : i32
    %9 = arith.cmpi eq, %arg1, %c0_i32_8 : i32
    %10 = arith.extui %9 : i1 to i32
    %c0_i32_9 = arith.constant 0 : i32
    %11 = arith.cmpi ne, %10, %c0_i32_9 : i32
    scf.if %11 {
      %c0_10 = arith.constant 0 : index
      %c0_11 = arith.constant 0 : index
      %12 = vector.load %arg9[%c0_10, %c0_11] : memref<16x32xf32, #tpu.memory_space<vmem>>, vector<16x32xf32>
      %c0_12 = arith.constant 0 : index
      %c0_13 = arith.constant 0 : index
      %13 = vector.load %arg4[%c0_12, %c0_13] : memref<1x32xf32, #tpu.memory_space<vmem>>, vector<1x32xf32>
      %14 = vector.broadcast %13 : vector<1x32xf32> to vector<16x32xf32>
      %15 = arith.addf %12, %14 : vector<16x32xf32>
      %c0_14 = arith.constant 0 : index
      %c0_15 = arith.constant 0 : index
      %16 = vector.load %arg5[%c0_14, %c0_15] : memref<16x32xbf16, #tpu.memory_space<vmem>>, vector<16x32xbf16>
      %17 = arith.extf %16 : vector<16x32xbf16> to vector<16x32xf32>
      %18 = arith.addf %15, %17 : vector<16x32xf32>
      %cst_16 = arith.constant dense<0.000000e+00> : vector<16xf32>
      %19 = vector.multi_reduction <add>, %18, %cst_16 [1] : vector<16x32xf32> to vector<16xf32>
      %20 = vector.shape_cast %19 : vector<16xf32> to vector<16x1xf32>
      %cst_17 = arith.constant 3.200000e+01 : f32
      %21 = vector.broadcast %cst_17 : f32 to vector<16x1xf32>
      %22 = arith.divf %20, %21 : vector<16x1xf32>
      %23 = vector.broadcast %22 : vector<16x1xf32> to vector<16x32xf32>
      %24 = arith.subf %18, %23 : vector<16x32xf32>
      %25 = arith.mulf %24, %24 : vector<16x32xf32>
      %cst_18 = arith.constant dense<0.000000e+00> : vector<16xf32>
      %26 = vector.multi_reduction <add>, %25, %cst_18 [1] : vector<16x32xf32> to vector<16xf32>
      %27 = vector.shape_cast %26 : vector<16xf32> to vector<16x1xf32>
      %cst_19 = arith.constant 3.200000e+01 : f32
      %28 = vector.broadcast %cst_19 : f32 to vector<16x1xf32>
      %29 = arith.divf %27, %28 : vector<16x1xf32>
      %30 = vector.broadcast %22 : vector<16x1xf32> to vector<16x32xf32>
      %31 = arith.subf %18, %30 : vector<16x32xf32>
      %cst_20 = arith.constant 9.99999996E-13 : f32
      %32 = vector.broadcast %cst_20 : f32 to vector<16x1xf32>
      %33 = arith.addf %29, %32 : vector<16x1xf32>
      %34 = math.rsqrt %33 : vector<16x1xf32>
      %35 = vector.broadcast %34 : vector<16x1xf32> to vector<16x32xf32>
      %36 = arith.mulf %31, %35 : vector<16x32xf32>
      %c0_21 = arith.constant 0 : index
      %c0_22 = arith.constant 0 : index
      %37 = vector.load %arg6[%c0_21, %c0_22] : memref<1x32xf32, #tpu.memory_space<vmem>>, vector<1x32xf32>
      %38 = vector.broadcast %37 : vector<1x32xf32> to vector<16x32xf32>
      %39 = arith.mulf %36, %38 : vector<16x32xf32>
      %c0_23 = arith.constant 0 : index
      %c0_24 = arith.constant 0 : index
      %40 = vector.load %arg7[%c0_23, %c0_24] : memref<1x32xf32, #tpu.memory_space<vmem>>, vector<1x32xf32>
      %41 = vector.broadcast %40 : vector<1x32xf32> to vector<16x32xf32>
      %42 = arith.addf %39, %41 : vector<16x32xf32>
      %43 = arith.truncf %42 : vector<16x32xf32> to vector<16x32xbf16>
      %c0_25 = arith.constant 0 : index
      %c0_26 = arith.constant 0 : index
      %44 = vector.load %arg8[%c0_25, %c0_26] : memref<16x32xbf16, #tpu.memory_space<vmem>>, vector<16x32xbf16>
      tpu.vector_store %arg8[%c0_25, %c0_26], %43 {strides = array<i32>} : memref<16x32xbf16, #tpu.memory_space<vmem>>, vector<16x32xbf16>,
    } else {
    }
    return
  }
  func.func @transform_0(%arg0: i32, %arg1: i32) -> (i32, i32) {
    %c0_i32 = arith.constant 0 : i32
    return %arg0, %arg1 : i32, i32
  }
  func.func @transform_1(%arg0: i32, %arg1: i32) -> (i32, i32) {
    %c0_i32 = arith.constant 0 : i32
    %c0_i32_0 = arith.constant 0 : i32
    return %arg1, %c0_i32 : i32, i32
  }
  func.func @transform_2(%arg0: i32, %arg1: i32) -> (i32, i32) {
    %c0_i32 = arith.constant 0 : i32
    %c0_i32_0 = arith.constant 0 : i32
    %c0_i32_1 = arith.constant 0 : i32
    return %c0_i32, %c0_i32_0 : i32, i32
  }
  func.func @transform_3(%arg0: i32, %arg1: i32) -> (i32, i32) {
    %c0_i32 = arith.constant 0 : i32
    %c0_i32_0 = arith.constant 0 : i32
    return %arg0, %c0_i32 : i32, i32
  }
  func.func @transform_4(%arg0: i32, %arg1: i32) -> (i32, i32) {
    %c0_i32 = arith.constant 0 : i32
    %c0_i32_0 = arith.constant 0 : i32
    %c0_i32_1 = arith.constant 0 : i32
    return %c0_i32, %c0_i32_0 : i32, i32
  }
  func.func @transform_5(%arg0: i32, %arg1: i32) -> (i32, i32) {
    %c0_i32 = arith.constant 0 : i32
    %c0_i32_0 = arith.constant 0 : i32
    %c0_i32_1 = arith.constant 0 : i32
    return %c0_i32, %c0_i32_0 : i32, i32
  }
  func.func @transform_6(%arg0: i32, %arg1: i32) -> (i32, i32) {
    %c0_i32 = arith.constant 0 : i32
    %c0_i32_0 = arith.constant 0 : i32
    return %arg0, %c0_i32 : i32, i32
  }
}

module attributes {stable_mosaic.version = 11 : i64} {
  func.func @_mha_flash_kernel(%arg0: i32, %arg1: i32, %arg2: i32, %arg3: memref<1x8x1xi32, #tpu.memory_space<vmem>>, %arg4: memref<1x1x8xi32, #tpu.memory_space<vmem>>, %arg5: memref<1x8x32xbf16, #tpu.memory_space<vmem>>, %arg6: memref<1x8x32xbf16, #tpu.memory_space<vmem>>, %arg7: memref<1x8x32xbf16, #tpu.memory_space<vmem>>, %arg8: memref<1x8x32xbf16, #tpu.memory_space<vmem>>, %arg9: memref<4x8x1xf32, #tpu.memory_space<vmem>>, %arg10: memref<4x8x1xf32, #tpu.memory_space<vmem>>, %arg11: memref<4x8x8xf32, #tpu.memory_space<vmem>>) attributes {dimension_semantics = [#tpu.dimension_semantics<parallel>, #tpu.dimension_semantics<parallel>, #tpu.dimension_semantics<arbitrary>], iteration_bounds = array<i64: 2, 1, 1>, scalar_prefetch = 0 : i64, scratch_operands = 3 : i64, tpu.core_type = #tpu.core_type<tc>, window_params = [{transform_indices = @transform_0, window_bounds = array<i64: 1, 8, 1>}, {transform_indices = @transform_1, window_bounds = array<i64: 1, 1, 8>}, {transform_indices = @transform_2, window_bounds = array<i64: 1, 8, 32>}, {transform_indices = @transform_3, window_bounds = array<i64: 1, 8, 32>}, {transform_indices = @transform_4, window_bounds = array<i64: 1, 8, 32>}, {transform_indices = @transform_5, window_bounds = array<i64: 1, 8, 32>}]} {
    %c0_i32 = arith.constant 0 : i32
    %0 = arith.cmpi eq, %arg2, %c0_i32 : i32
    %1 = arith.extui %0 : i1 to i32
    %c0_i32_0 = arith.constant 0 : i32
    %2 = arith.cmpi ne, %1, %c0_i32_0 : i32
    scf.if %2 {
      %cst_111 = arith.constant -1.000000e+30 : f32
      %183 = vector.broadcast %cst_111 : f32 to vector<4x8x1xf32>
      %c0_112 = arith.constant 0 : index
      %c0_113 = arith.constant 0 : index
      %c0_114 = arith.constant 0 : index
      %184 = vector.load %arg9[%c0_112, %c0_113, %c0_114] : memref<4x8x1xf32, #tpu.memory_space<vmem>>, vector<4x8x1xf32>
      tpu.vector_store %arg9[%c0_112, %c0_113, %c0_114], %183 {strides = array<i32>} : memref<4x8x1xf32, #tpu.memory_space<vmem>>, vector<4x8x1xf32>,
      %cst_115 = arith.constant 0.000000e+00 : f32
      %185 = vector.broadcast %cst_115 : f32 to vector<4x8x1xf32>
      %c0_116 = arith.constant 0 : index
      %c0_117 = arith.constant 0 : index
      %c0_118 = arith.constant 0 : index
      %186 = vector.load %arg10[%c0_116, %c0_117, %c0_118] : memref<4x8x1xf32, #tpu.memory_space<vmem>>, vector<4x8x1xf32>
      tpu.vector_store %arg10[%c0_116, %c0_117, %c0_118], %185 {strides = array<i32>} : memref<4x8x1xf32, #tpu.memory_space<vmem>>, vector<4x8x1xf32>,
      %cst_119 = arith.constant 0.000000e+00 : f32
      %187 = vector.broadcast %cst_119 : f32 to vector<4x8x8xf32>
      %c0_120 = arith.constant 0 : index
      %c0_121 = arith.constant 0 : index
      %c0_122 = arith.constant 0 : index
      %188 = vector.load %arg11[%c0_120, %c0_121, %c0_122] : memref<4x8x8xf32, #tpu.memory_space<vmem>>, vector<4x8x8xf32>
      tpu.vector_store %arg11[%c0_120, %c0_121, %c0_122], %187 {strides = array<i32>} : memref<4x8x8xf32, #tpu.memory_space<vmem>>, vector<4x8x8xf32>,
    } else {
    }
    %c0 = arith.constant 0 : index
    %c0_1 = arith.constant 0 : index
    %c0_2 = arith.constant 0 : index
    %3 = vector.load %arg4[%c0, %c0_1, %c0_2] : memref<1x1x8xi32, #tpu.memory_space<vmem>>, vector<1x1x8xi32>
    %4 = vector.shape_cast %3 : vector<1x1x8xi32> to vector<1x8xi32>
    %c0_i32_3 = arith.constant 0 : i32
    %5 = vector.broadcast %c0_i32_3 : i32 to vector<1x8xi32>
    %6 = arith.cmpi sgt, %4, %5 : vector<1x8xi32>
    %c0_4 = arith.constant 0 : index
    %c0_5 = arith.constant 0 : index
    %c0_6 = arith.constant 0 : index
    %7 = vector.load %arg3[%c0_4, %c0_5, %c0_6] : memref<1x8x1xi32, #tpu.memory_space<vmem>>, vector<1x8x1xi32>
    %8 = vector.shape_cast %7 : vector<1x8x1xi32> to vector<8x1xi32>
    %c0_i32_7 = arith.constant 0 : i32
    %9 = vector.broadcast %c0_i32_7 : i32 to vector<8x1xi32>
    %10 = arith.cmpi sgt, %8, %9 : vector<8x1xi32>
    %11 = vector.broadcast %6 : vector<1x8xi1> to vector<8x8xi1>
    %12 = vector.broadcast %10 : vector<8x1xi1> to vector<8x8xi1>
    %13 = arith.andi %11, %12 : vector<8x8xi1>
    %c0_8 = arith.constant 0 : index
    %c0_9 = arith.constant 0 : index
    %c0_10 = arith.constant 0 : index
    %14 = vector.load %arg5[%c0_8, %c0_9, %c0_10] : memref<1x8x32xbf16, #tpu.memory_space<vmem>>, vector<1x8x32xbf16>
    %15 = vector.shape_cast %14 : vector<1x8x32xbf16> to vector<8x32xbf16>
    %c0_11 = arith.constant 0 : index
    %c0_12 = arith.constant 0 : index
    %c0_13 = arith.constant 0 : index
    %16 = vector.load %arg6[%c0_11, %c0_12, %c0_13] : memref<1x8x32xbf16, #tpu.memory_space<vmem>>, vector<1x8x32xbf16>
    %17 = vector.shape_cast %16 : vector<1x8x32xbf16> to vector<8x32xbf16>
    %c0_14 = arith.constant 0 : index
    %c0_15 = arith.constant 0 : index
    %c0_16 = arith.constant 0 : index
    %18 = vector.load %arg7[%c0_14, %c0_15, %c0_16] : memref<1x8x32xbf16, #tpu.memory_space<vmem>>, vector<1x8x32xbf16>
    %19 = vector.shape_cast %18 : vector<1x8x32xbf16> to vector<8x32xbf16>
    %20 = vector.extract_strided_slice %15 {offsets = [0, 0], sizes = [8, 8], strides = [1, 1]} : vector<8x32xbf16> to vector<8x8xbf16>
    %21 = vector.extract_strided_slice %17 {offsets = [0, 0], sizes = [8, 8], strides = [1, 1]} : vector<8x32xbf16> to vector<8x8xbf16>
    %cst = arith.constant dense<0.000000e+00> : vector<8x8xf32>
    %22 = tpu.matmul %20, %21, %cst {dimension_numbers = #tpu.dot_dimension_numbers<[1], [1], [0], [0], [0, 0, 1, 0], [], []>} : vector<8x8xbf16>, vector<8x8xbf16>, vector<8x8xf32> -> vector<8x8xf32>
    %cst_17 = arith.constant 0.353553385 : f32
    %23 = vector.broadcast %cst_17 : f32 to vector<8x8xf32>
    %24 = arith.mulf %22, %23 : vector<8x8xf32>
    %cst_18 = arith.constant -1.000000e+04 : f32
    %25 = vector.broadcast %cst_18 : f32 to vector<8x8xf32>
    %26 = arith.select %13, %24, %25 : vector<8x8xi1>, vector<8x8xf32>
    %c0_19 = arith.constant 0 : index
    %c0_20 = arith.constant 0 : index
    %c0_21 = arith.constant 0 : index
    %27 = vector.load %arg9[%c0_19, %c0_20, %c0_21] : memref<4x8x1xf32, #tpu.memory_space<vmem>>, vector<1x8x1xf32>
    %28 = vector.shape_cast %27 : vector<1x8x1xf32> to vector<8x1xf32>
    %cst_22 = arith.constant dense<0xFF800000> : vector<8xf32>
    %29 = vector.multi_reduction <maximumf>, %26, %cst_22 [1] : vector<8x8xf32> to vector<8xf32>
    %30 = vector.shape_cast %29 : vector<8xf32> to vector<8x1xf32>
    %31 = arith.maximumf %28, %30 : vector<8x1xf32>
    %32 = arith.subf %28, %31 : vector<8x1xf32>
    %33 = math.exp %32 : vector<8x1xf32>
    %34 = vector.broadcast %31 : vector<8x1xf32> to vector<8x8xf32>
    %35 = arith.subf %26, %34 : vector<8x8xf32>
    %36 = math.exp %35 : vector<8x8xf32>
    %c0_23 = arith.constant 0 : index
    %c0_24 = arith.constant 0 : index
    %c0_25 = arith.constant 0 : index
    %37 = vector.load %arg10[%c0_23, %c0_24, %c0_25] : memref<4x8x1xf32, #tpu.memory_space<vmem>>, vector<1x8x1xf32>
    %38 = vector.shape_cast %37 : vector<1x8x1xf32> to vector<8x1xf32>
    %39 = arith.mulf %33, %38 : vector<8x1xf32>
    %cst_26 = arith.constant dense<0.000000e+00> : vector<8xf32>
    %40 = vector.multi_reduction <add>, %36, %cst_26 [1] : vector<8x8xf32> to vector<8xf32>
    %41 = vector.shape_cast %40 : vector<8xf32> to vector<8x1xf32>
    %42 = arith.addf %39, %41 : vector<8x1xf32>
    %c0_27 = arith.constant 0 : index
    %c0_28 = arith.constant 0 : index
    %c0_29 = arith.constant 0 : index
    %43 = vector.load %arg10[%c0_27, %c0_28, %c0_29] : memref<4x8x1xf32, #tpu.memory_space<vmem>>, vector<1x8x1xf32>
    %44 = vector.shape_cast %43 : vector<1x8x1xf32> to vector<8x1xf32>
    %45 = vector.shape_cast %42 : vector<8x1xf32> to vector<1x8x1xf32>
    tpu.vector_store %arg10[%c0_27, %c0_28, %c0_29], %45 {strides = array<i32>} : memref<4x8x1xf32, #tpu.memory_space<vmem>>, vector<1x8x1xf32>,
    %c0_30 = arith.constant 0 : index
    %c0_31 = arith.constant 0 : index
    %c0_32 = arith.constant 0 : index
    %46 = vector.load %arg11[%c0_30, %c0_31, %c0_32] : memref<4x8x8xf32, #tpu.memory_space<vmem>>, vector<1x8x8xf32>
    %47 = vector.shape_cast %46 : vector<1x8x8xf32> to vector<8x8xf32>
    %48 = vector.broadcast %33 : vector<8x1xf32> to vector<8x8xf32>
    %49 = arith.mulf %48, %47 : vector<8x8xf32>
    %50 = arith.truncf %36 : vector<8x8xf32> to vector<8x8xbf16>
    %51 = vector.extract_strided_slice %19 {offsets = [0, 0], sizes = [8, 8], strides = [1, 1]} : vector<8x32xbf16> to vector<8x8xbf16>
    %cst_33 = arith.constant dense<0.000000e+00> : vector<8x8xf32>
    %52 = tpu.matmul %50, %51, %cst_33 {dimension_numbers = #tpu.dot_dimension_numbers<[1], [0], [0], [1], [0, 0, 1, 1], [], []>} : vector<8x8xbf16>, vector<8x8xbf16>, vector<8x8xf32> -> vector<8x8xf32>
    %53 = arith.addf %49, %52 : vector<8x8xf32>
    %c0_34 = arith.constant 0 : index
    %c0_35 = arith.constant 0 : index
    %c0_36 = arith.constant 0 : index
    %54 = vector.load %arg11[%c0_34, %c0_35, %c0_36] : memref<4x8x8xf32, #tpu.memory_space<vmem>>, vector<1x8x8xf32>
    %55 = vector.shape_cast %54 : vector<1x8x8xf32> to vector<8x8xf32>
    %56 = vector.shape_cast %53 : vector<8x8xf32> to vector<1x8x8xf32>
    tpu.vector_store %arg11[%c0_34, %c0_35, %c0_36], %56 {strides = array<i32>} : memref<4x8x8xf32, #tpu.memory_space<vmem>>, vector<1x8x8xf32>,
    %c0_37 = arith.constant 0 : index
    %c0_38 = arith.constant 0 : index
    %c0_39 = arith.constant 0 : index
    %57 = vector.load %arg9[%c0_37, %c0_38, %c0_39] : memref<4x8x1xf32, #tpu.memory_space<vmem>>, vector<1x8x1xf32>
    %58 = vector.shape_cast %57 : vector<1x8x1xf32> to vector<8x1xf32>
    %59 = vector.shape_cast %31 : vector<8x1xf32> to vector<1x8x1xf32>
    tpu.vector_store %arg9[%c0_37, %c0_38, %c0_39], %59 {strides = array<i32>} : memref<4x8x1xf32, #tpu.memory_space<vmem>>, vector<1x8x1xf32>,
    %60 = vector.extract_strided_slice %15 {offsets = [0, 8], sizes = [8, 8], strides = [1, 1]} : vector<8x32xbf16> to vector<8x8xbf16>
    %61 = vector.extract_strided_slice %17 {offsets = [0, 8], sizes = [8, 8], strides = [1, 1]} : vector<8x32xbf16> to vector<8x8xbf16>
    %cst_40 = arith.constant dense<0.000000e+00> : vector<8x8xf32>
    %62 = tpu.matmul %60, %61, %cst_40 {dimension_numbers = #tpu.dot_dimension_numbers<[1], [1], [0], [0], [0, 0, 1, 0], [], []>} : vector<8x8xbf16>, vector<8x8xbf16>, vector<8x8xf32> -> vector<8x8xf32>
    %cst_41 = arith.constant 0.353553385 : f32
    %63 = vector.broadcast %cst_41 : f32 to vector<8x8xf32>
    %64 = arith.mulf %62, %63 : vector<8x8xf32>
    %cst_42 = arith.constant -1.000000e+04 : f32
    %65 = vector.broadcast %cst_42 : f32 to vector<8x8xf32>
    %66 = arith.select %13, %64, %65 : vector<8x8xi1>, vector<8x8xf32>
    %c1 = arith.constant 1 : index
    %c0_43 = arith.constant 0 : index
    %c0_44 = arith.constant 0 : index
    %67 = vector.load %arg9[%c1, %c0_43, %c0_44] : memref<4x8x1xf32, #tpu.memory_space<vmem>>, vector<1x8x1xf32>
    %68 = vector.shape_cast %67 : vector<1x8x1xf32> to vector<8x1xf32>
    %cst_45 = arith.constant dense<0xFF800000> : vector<8xf32>
    %69 = vector.multi_reduction <maximumf>, %66, %cst_45 [1] : vector<8x8xf32> to vector<8xf32>
    %70 = vector.shape_cast %69 : vector<8xf32> to vector<8x1xf32>
    %71 = arith.maximumf %68, %70 : vector<8x1xf32>
    %72 = arith.subf %68, %71 : vector<8x1xf32>
    %73 = math.exp %72 : vector<8x1xf32>
    %74 = vector.broadcast %71 : vector<8x1xf32> to vector<8x8xf32>
    %75 = arith.subf %66, %74 : vector<8x8xf32>
    %76 = math.exp %75 : vector<8x8xf32>
    %c1_46 = arith.constant 1 : index
    %c0_47 = arith.constant 0 : index
    %c0_48 = arith.constant 0 : index
    %77 = vector.load %arg10[%c1_46, %c0_47, %c0_48] : memref<4x8x1xf32, #tpu.memory_space<vmem>>, vector<1x8x1xf32>
    %78 = vector.shape_cast %77 : vector<1x8x1xf32> to vector<8x1xf32>
    %79 = arith.mulf %73, %78 : vector<8x1xf32>
    %cst_49 = arith.constant dense<0.000000e+00> : vector<8xf32>
    %80 = vector.multi_reduction <add>, %76, %cst_49 [1] : vector<8x8xf32> to vector<8xf32>
    %81 = vector.shape_cast %80 : vector<8xf32> to vector<8x1xf32>
    %82 = arith.addf %79, %81 : vector<8x1xf32>
    %c1_50 = arith.constant 1 : index
    %c0_51 = arith.constant 0 : index
    %c0_52 = arith.constant 0 : index
    %83 = vector.load %arg10[%c1_50, %c0_51, %c0_52] : memref<4x8x1xf32, #tpu.memory_space<vmem>>, vector<1x8x1xf32>
    %84 = vector.shape_cast %83 : vector<1x8x1xf32> to vector<8x1xf32>
    %85 = vector.shape_cast %82 : vector<8x1xf32> to vector<1x8x1xf32>
    tpu.vector_store %arg10[%c1_50, %c0_51, %c0_52], %85 {strides = array<i32>} : memref<4x8x1xf32, #tpu.memory_space<vmem>>, vector<1x8x1xf32>,
    %c1_53 = arith.constant 1 : index
    %c0_54 = arith.constant 0 : index
    %c0_55 = arith.constant 0 : index
    %86 = vector.load %arg11[%c1_53, %c0_54, %c0_55] : memref<4x8x8xf32, #tpu.memory_space<vmem>>, vector<1x8x8xf32>
    %87 = vector.shape_cast %86 : vector<1x8x8xf32> to vector<8x8xf32>
    %88 = vector.broadcast %73 : vector<8x1xf32> to vector<8x8xf32>
    %89 = arith.mulf %88, %87 : vector<8x8xf32>
    %90 = arith.truncf %76 : vector<8x8xf32> to vector<8x8xbf16>
    %91 = vector.extract_strided_slice %19 {offsets = [0, 8], sizes = [8, 8], strides = [1, 1]} : vector<8x32xbf16> to vector<8x8xbf16>
    %cst_56 = arith.constant dense<0.000000e+00> : vector<8x8xf32>
    %92 = tpu.matmul %90, %91, %cst_56 {dimension_numbers = #tpu.dot_dimension_numbers<[1], [0], [0], [1], [0, 0, 1, 1], [], []>} : vector<8x8xbf16>, vector<8x8xbf16>, vector<8x8xf32> -> vector<8x8xf32>
    %93 = arith.addf %89, %92 : vector<8x8xf32>
    %c1_57 = arith.constant 1 : index
    %c0_58 = arith.constant 0 : index
    %c0_59 = arith.constant 0 : index
    %94 = vector.load %arg11[%c1_57, %c0_58, %c0_59] : memref<4x8x8xf32, #tpu.memory_space<vmem>>, vector<1x8x8xf32>
    %95 = vector.shape_cast %94 : vector<1x8x8xf32> to vector<8x8xf32>
    %96 = vector.shape_cast %93 : vector<8x8xf32> to vector<1x8x8xf32>
    tpu.vector_store %arg11[%c1_57, %c0_58, %c0_59], %96 {strides = array<i32>} : memref<4x8x8xf32, #tpu.memory_space<vmem>>, vector<1x8x8xf32>,
    %c1_60 = arith.constant 1 : index
    %c0_61 = arith.constant 0 : index
    %c0_62 = arith.constant 0 : index
    %97 = vector.load %arg9[%c1_60, %c0_61, %c0_62] : memref<4x8x1xf32, #tpu.memory_space<vmem>>, vector<1x8x1xf32>
    %98 = vector.shape_cast %97 : vector<1x8x1xf32> to vector<8x1xf32>
    %99 = vector.shape_cast %71 : vector<8x1xf32> to vector<1x8x1xf32>
    tpu.vector_store %arg9[%c1_60, %c0_61, %c0_62], %99 {strides = array<i32>} : memref<4x8x1xf32, #tpu.memory_space<vmem>>, vector<1x8x1xf32>,
    %100 = vector.extract_strided_slice %15 {offsets = [0, 16], sizes = [8, 8], strides = [1, 1]} : vector<8x32xbf16> to vector<8x8xbf16>
    %101 = vector.extract_strided_slice %17 {offsets = [0, 16], sizes = [8, 8], strides = [1, 1]} : vector<8x32xbf16> to vector<8x8xbf16>
    %cst_63 = arith.constant dense<0.000000e+00> : vector<8x8xf32>
    %102 = tpu.matmul %100, %101, %cst_63 {dimension_numbers = #tpu.dot_dimension_numbers<[1], [1], [0], [0], [0, 0, 1, 0], [], []>} : vector<8x8xbf16>, vector<8x8xbf16>, vector<8x8xf32> -> vector<8x8xf32>
    %cst_64 = arith.constant 0.353553385 : f32
    %103 = vector.broadcast %cst_64 : f32 to vector<8x8xf32>
    %104 = arith.mulf %102, %103 : vector<8x8xf32>
    %cst_65 = arith.constant -1.000000e+04 : f32
    %105 = vector.broadcast %cst_65 : f32 to vector<8x8xf32>
    %106 = arith.select %13, %104, %105 : vector<8x8xi1>, vector<8x8xf32>
    %c2 = arith.constant 2 : index
    %c0_66 = arith.constant 0 : index
    %c0_67 = arith.constant 0 : index
    %107 = vector.load %arg9[%c2, %c0_66, %c0_67] : memref<4x8x1xf32, #tpu.memory_space<vmem>>, vector<1x8x1xf32>
    %108 = vector.shape_cast %107 : vector<1x8x1xf32> to vector<8x1xf32>
    %cst_68 = arith.constant dense<0xFF800000> : vector<8xf32>
    %109 = vector.multi_reduction <maximumf>, %106, %cst_68 [1] : vector<8x8xf32> to vector<8xf32>
    %110 = vector.shape_cast %109 : vector<8xf32> to vector<8x1xf32>
    %111 = arith.maximumf %108, %110 : vector<8x1xf32>
    %112 = arith.subf %108, %111 : vector<8x1xf32>
    %113 = math.exp %112 : vector<8x1xf32>
    %114 = vector.broadcast %111 : vector<8x1xf32> to vector<8x8xf32>
    %115 = arith.subf %106, %114 : vector<8x8xf32>
    %116 = math.exp %115 : vector<8x8xf32>
    %c2_69 = arith.constant 2 : index
    %c0_70 = arith.constant 0 : index
    %c0_71 = arith.constant 0 : index
    %117 = vector.load %arg10[%c2_69, %c0_70, %c0_71] : memref<4x8x1xf32, #tpu.memory_space<vmem>>, vector<1x8x1xf32>
    %118 = vector.shape_cast %117 : vector<1x8x1xf32> to vector<8x1xf32>
    %119 = arith.mulf %113, %118 : vector<8x1xf32>
    %cst_72 = arith.constant dense<0.000000e+00> : vector<8xf32>
    %120 = vector.multi_reduction <add>, %116, %cst_72 [1] : vector<8x8xf32> to vector<8xf32>
    %121 = vector.shape_cast %120 : vector<8xf32> to vector<8x1xf32>
    %122 = arith.addf %119, %121 : vector<8x1xf32>
    %c2_73 = arith.constant 2 : index
    %c0_74 = arith.constant 0 : index
    %c0_75 = arith.constant 0 : index
    %123 = vector.load %arg10[%c2_73, %c0_74, %c0_75] : memref<4x8x1xf32, #tpu.memory_space<vmem>>, vector<1x8x1xf32>
    %124 = vector.shape_cast %123 : vector<1x8x1xf32> to vector<8x1xf32>
    %125 = vector.shape_cast %122 : vector<8x1xf32> to vector<1x8x1xf32>
    tpu.vector_store %arg10[%c2_73, %c0_74, %c0_75], %125 {strides = array<i32>} : memref<4x8x1xf32, #tpu.memory_space<vmem>>, vector<1x8x1xf32>,
    %c2_76 = arith.constant 2 : index
    %c0_77 = arith.constant 0 : index
    %c0_78 = arith.constant 0 : index
    %126 = vector.load %arg11[%c2_76, %c0_77, %c0_78] : memref<4x8x8xf32, #tpu.memory_space<vmem>>, vector<1x8x8xf32>
    %127 = vector.shape_cast %126 : vector<1x8x8xf32> to vector<8x8xf32>
    %128 = vector.broadcast %113 : vector<8x1xf32> to vector<8x8xf32>
    %129 = arith.mulf %128, %127 : vector<8x8xf32>
    %130 = arith.truncf %116 : vector<8x8xf32> to vector<8x8xbf16>
    %131 = vector.extract_strided_slice %19 {offsets = [0, 16], sizes = [8, 8], strides = [1, 1]} : vector<8x32xbf16> to vector<8x8xbf16>
    %cst_79 = arith.constant dense<0.000000e+00> : vector<8x8xf32>
    %132 = tpu.matmul %130, %131, %cst_79 {dimension_numbers = #tpu.dot_dimension_numbers<[1], [0], [0], [1], [0, 0, 1, 1], [], []>} : vector<8x8xbf16>, vector<8x8xbf16>, vector<8x8xf32> -> vector<8x8xf32>
    %133 = arith.addf %129, %132 : vector<8x8xf32>
    %c2_80 = arith.constant 2 : index
    %c0_81 = arith.constant 0 : index
    %c0_82 = arith.constant 0 : index
    %134 = vector.load %arg11[%c2_80, %c0_81, %c0_82] : memref<4x8x8xf32, #tpu.memory_space<vmem>>, vector<1x8x8xf32>
    %135 = vector.shape_cast %134 : vector<1x8x8xf32> to vector<8x8xf32>
    %136 = vector.shape_cast %133 : vector<8x8xf32> to vector<1x8x8xf32>
    tpu.vector_store %arg11[%c2_80, %c0_81, %c0_82], %136 {strides = array<i32>} : memref<4x8x8xf32, #tpu.memory_space<vmem>>, vector<1x8x8xf32>,
    %c2_83 = arith.constant 2 : index
    %c0_84 = arith.constant 0 : index
    %c0_85 = arith.constant 0 : index
    %137 = vector.load %arg9[%c2_83, %c0_84, %c0_85] : memref<4x8x1xf32, #tpu.memory_space<vmem>>, vector<1x8x1xf32>
    %138 = vector.shape_cast %137 : vector<1x8x1xf32> to vector<8x1xf32>
    %139 = vector.shape_cast %111 : vector<8x1xf32> to vector<1x8x1xf32>
    tpu.vector_store %arg9[%c2_83, %c0_84, %c0_85], %139 {strides = array<i32>} : memref<4x8x1xf32, #tpu.memory_space<vmem>>, vector<1x8x1xf32>,
    %140 = vector.extract_strided_slice %15 {offsets = [0, 24], sizes = [8, 8], strides = [1, 1]} : vector<8x32xbf16> to vector<8x8xbf16>
    %141 = vector.extract_strided_slice %17 {offsets = [0, 24], sizes = [8, 8], strides = [1, 1]} : vector<8x32xbf16> to vector<8x8xbf16>
    %cst_86 = arith.constant dense<0.000000e+00> : vector<8x8xf32>
    %142 = tpu.matmul %140, %141, %cst_86 {dimension_numbers = #tpu.dot_dimension_numbers<[1], [1], [0], [0], [0, 0, 1, 0], [], []>} : vector<8x8xbf16>, vector<8x8xbf16>, vector<8x8xf32> -> vector<8x8xf32>
    %cst_87 = arith.constant 0.353553385 : f32
    %143 = vector.broadcast %cst_87 : f32 to vector<8x8xf32>
    %144 = arith.mulf %142, %143 : vector<8x8xf32>
    %cst_88 = arith.constant -1.000000e+04 : f32
    %145 = vector.broadcast %cst_88 : f32 to vector<8x8xf32>
    %146 = arith.select %13, %144, %145 : vector<8x8xi1>, vector<8x8xf32>
    %c3 = arith.constant 3 : index
    %c0_89 = arith.constant 0 : index
    %c0_90 = arith.constant 0 : index
    %147 = vector.load %arg9[%c3, %c0_89, %c0_90] : memref<4x8x1xf32, #tpu.memory_space<vmem>>, vector<1x8x1xf32>
    %148 = vector.shape_cast %147 : vector<1x8x1xf32> to vector<8x1xf32>
    %cst_91 = arith.constant dense<0xFF800000> : vector<8xf32>
    %149 = vector.multi_reduction <maximumf>, %146, %cst_91 [1] : vector<8x8xf32> to vector<8xf32>
    %150 = vector.shape_cast %149 : vector<8xf32> to vector<8x1xf32>
    %151 = arith.maximumf %148, %150 : vector<8x1xf32>
    %152 = arith.subf %148, %151 : vector<8x1xf32>
    %153 = math.exp %152 : vector<8x1xf32>
    %154 = vector.broadcast %151 : vector<8x1xf32> to vector<8x8xf32>
    %155 = arith.subf %146, %154 : vector<8x8xf32>
    %156 = math.exp %155 : vector<8x8xf32>
    %c3_92 = arith.constant 3 : index
    %c0_93 = arith.constant 0 : index
    %c0_94 = arith.constant 0 : index
    %157 = vector.load %arg10[%c3_92, %c0_93, %c0_94] : memref<4x8x1xf32, #tpu.memory_space<vmem>>, vector<1x8x1xf32>
    %158 = vector.shape_cast %157 : vector<1x8x1xf32> to vector<8x1xf32>
    %159 = arith.mulf %153, %158 : vector<8x1xf32>
    %cst_95 = arith.constant dense<0.000000e+00> : vector<8xf32>
    %160 = vector.multi_reduction <add>, %156, %cst_95 [1] : vector<8x8xf32> to vector<8xf32>
    %161 = vector.shape_cast %160 : vector<8xf32> to vector<8x1xf32>
    %162 = arith.addf %159, %161 : vector<8x1xf32>
    %c3_96 = arith.constant 3 : index
    %c0_97 = arith.constant 0 : index
    %c0_98 = arith.constant 0 : index
    %163 = vector.load %arg10[%c3_96, %c0_97, %c0_98] : memref<4x8x1xf32, #tpu.memory_space<vmem>>, vector<1x8x1xf32>
    %164 = vector.shape_cast %163 : vector<1x8x1xf32> to vector<8x1xf32>
    %165 = vector.shape_cast %162 : vector<8x1xf32> to vector<1x8x1xf32>
    tpu.vector_store %arg10[%c3_96, %c0_97, %c0_98], %165 {strides = array<i32>} : memref<4x8x1xf32, #tpu.memory_space<vmem>>, vector<1x8x1xf32>,
    %c3_99 = arith.constant 3 : index
    %c0_100 = arith.constant 0 : index
    %c0_101 = arith.constant 0 : index
    %166 = vector.load %arg11[%c3_99, %c0_100, %c0_101] : memref<4x8x8xf32, #tpu.memory_space<vmem>>, vector<1x8x8xf32>
    %167 = vector.shape_cast %166 : vector<1x8x8xf32> to vector<8x8xf32>
    %168 = vector.broadcast %153 : vector<8x1xf32> to vector<8x8xf32>
    %169 = arith.mulf %168, %167 : vector<8x8xf32>
    %170 = arith.truncf %156 : vector<8x8xf32> to vector<8x8xbf16>
    %171 = vector.extract_strided_slice %19 {offsets = [0, 24], sizes = [8, 8], strides = [1, 1]} : vector<8x32xbf16> to vector<8x8xbf16>
    %cst_102 = arith.constant dense<0.000000e+00> : vector<8x8xf32>
    %172 = tpu.matmul %170, %171, %cst_102 {dimension_numbers = #tpu.dot_dimension_numbers<[1], [0], [0], [1], [0, 0, 1, 1], [], []>} : vector<8x8xbf16>, vector<8x8xbf16>, vector<8x8xf32> -> vector<8x8xf32>
    %173 = arith.addf %169, %172 : vector<8x8xf32>
    %c3_103 = arith.constant 3 : index
    %c0_104 = arith.constant 0 : index
    %c0_105 = arith.constant 0 : index
    %174 = vector.load %arg11[%c3_103, %c0_104, %c0_105] : memref<4x8x8xf32, #tpu.memory_space<vmem>>, vector<1x8x8xf32>
    %175 = vector.shape_cast %174 : vector<1x8x8xf32> to vector<8x8xf32>
    %176 = vector.shape_cast %173 : vector<8x8xf32> to vector<1x8x8xf32>
    tpu.vector_store %arg11[%c3_103, %c0_104, %c0_105], %176 {strides = array<i32>} : memref<4x8x8xf32, #tpu.memory_space<vmem>>, vector<1x8x8xf32>,
    %c3_106 = arith.constant 3 : index
    %c0_107 = arith.constant 0 : index
    %c0_108 = arith.constant 0 : index
    %177 = vector.load %arg9[%c3_106, %c0_107, %c0_108] : memref<4x8x1xf32, #tpu.memory_space<vmem>>, vector<1x8x1xf32>
    %178 = vector.shape_cast %177 : vector<1x8x1xf32> to vector<8x1xf32>
    %179 = vector.shape_cast %151 : vector<8x1xf32> to vector<1x8x1xf32>
    tpu.vector_store %arg9[%c3_106, %c0_107, %c0_108], %179 {strides = array<i32>} : memref<4x8x1xf32, #tpu.memory_space<vmem>>, vector<1x8x1xf32>,
    %c0_i32_109 = arith.constant 0 : i32
    %180 = arith.cmpi eq, %arg2, %c0_i32_109 : i32
    %181 = arith.extui %180 : i1 to i32
    %c0_i32_110 = arith.constant 0 : i32
    %182 = arith.cmpi ne, %181, %c0_i32_110 : i32
    scf.if %182 {
      %c0_111 = arith.constant 0 : index
      %c0_112 = arith.constant 0 : index
      %c0_113 = arith.constant 0 : index
      %183 = vector.load %arg11[%c0_111, %c0_112, %c0_113] : memref<4x8x8xf32, #tpu.memory_space<vmem>>, vector<1x8x8xf32>
      %184 = vector.shape_cast %183 : vector<1x8x8xf32> to vector<8x8xf32>
      %c0_114 = arith.constant 0 : index
      %c0_115 = arith.constant 0 : index
      %c0_116 = arith.constant 0 : index
      %185 = vector.load %arg10[%c0_114, %c0_115, %c0_116] : memref<4x8x1xf32, #tpu.memory_space<vmem>>, vector<1x8x1xf32>
      %186 = vector.shape_cast %185 : vector<1x8x1xf32> to vector<8x1xf32>
      %187 = tpu.reciprocal %186 {approx = true} : vector<8x1xf32> -> vector<8x1xf32>
      %188 = vector.broadcast %187 : vector<8x1xf32> to vector<8x8xf32>
      %189 = arith.mulf %184, %188 : vector<8x8xf32>
      %c1_117 = arith.constant 1 : index
      %c0_118 = arith.constant 0 : index
      %c0_119 = arith.constant 0 : index
      %190 = vector.load %arg11[%c1_117, %c0_118, %c0_119] : memref<4x8x8xf32, #tpu.memory_space<vmem>>, vector<1x8x8xf32>
      %191 = vector.shape_cast %190 : vector<1x8x8xf32> to vector<8x8xf32>
      %c1_120 = arith.constant 1 : index
      %c0_121 = arith.constant 0 : index
      %c0_122 = arith.constant 0 : index
      %192 = vector.load %arg10[%c1_120, %c0_121, %c0_122] : memref<4x8x1xf32, #tpu.memory_space<vmem>>, vector<1x8x1xf32>
      %193 = vector.shape_cast %192 : vector<1x8x1xf32> to vector<8x1xf32>
      %194 = tpu.reciprocal %193 {approx = true} : vector<8x1xf32> -> vector<8x1xf32>
      %195 = vector.broadcast %194 : vector<8x1xf32> to vector<8x8xf32>
      %196 = arith.mulf %191, %195 : vector<8x8xf32>
      %c2_123 = arith.constant 2 : index
      %c0_124 = arith.constant 0 : index
      %c0_125 = arith.constant 0 : index
      %197 = vector.load %arg11[%c2_123, %c0_124, %c0_125] : memref<4x8x8xf32, #tpu.memory_space<vmem>>, vector<1x8x8xf32>
      %198 = vector.shape_cast %197 : vector<1x8x8xf32> to vector<8x8xf32>
      %c2_126 = arith.constant 2 : index
      %c0_127 = arith.constant 0 : index
      %c0_128 = arith.constant 0 : index
      %199 = vector.load %arg10[%c2_126, %c0_127, %c0_128] : memref<4x8x1xf32, #tpu.memory_space<vmem>>, vector<1x8x1xf32>
      %200 = vector.shape_cast %199 : vector<1x8x1xf32> to vector<8x1xf32>
      %201 = tpu.reciprocal %200 {approx = true} : vector<8x1xf32> -> vector<8x1xf32>
      %202 = vector.broadcast %201 : vector<8x1xf32> to vector<8x8xf32>
      %203 = arith.mulf %198, %202 : vector<8x8xf32>
      %c3_129 = arith.constant 3 : index
      %c0_130 = arith.constant 0 : index
      %c0_131 = arith.constant 0 : index
      %204 = vector.load %arg11[%c3_129, %c0_130, %c0_131] : memref<4x8x8xf32, #tpu.memory_space<vmem>>, vector<1x8x8xf32>
      %205 = vector.shape_cast %204 : vector<1x8x8xf32> to vector<8x8xf32>
      %c3_132 = arith.constant 3 : index
      %c0_133 = arith.constant 0 : index
      %c0_134 = arith.constant 0 : index
      %206 = vector.load %arg10[%c3_132, %c0_133, %c0_134] : memref<4x8x1xf32, #tpu.memory_space<vmem>>, vector<1x8x1xf32>
      %207 = vector.shape_cast %206 : vector<1x8x1xf32> to vector<8x1xf32>
      %208 = tpu.reciprocal %207 {approx = true} : vector<8x1xf32> -> vector<8x1xf32>
      %209 = vector.broadcast %208 : vector<8x1xf32> to vector<8x8xf32>
      %210 = arith.mulf %205, %209 : vector<8x8xf32>
      %211 = tpu.concatenate %189, %196, %203, %210 in 1 : vector<8x8xf32>, vector<8x8xf32>, vector<8x8xf32>, vector<8x8xf32> -> vector<8x32xf32>
      %212 = arith.truncf %211 : vector<8x32xf32> to vector<8x32xbf16>
      %c0_135 = arith.constant 0 : index
      %c0_136 = arith.constant 0 : index
      %c0_137 = arith.constant 0 : index
      %213 = vector.load %arg8[%c0_135, %c0_136, %c0_137] : memref<1x8x32xbf16, #tpu.memory_space<vmem>>, vector<1x8x32xbf16>
      %214 = vector.shape_cast %213 : vector<1x8x32xbf16> to vector<8x32xbf16>
      %215 = vector.shape_cast %212 : vector<8x32xbf16> to vector<1x8x32xbf16>
      tpu.vector_store %arg8[%c0_135, %c0_136, %c0_137], %215 {strides = array<i32>} : memref<1x8x32xbf16, #tpu.memory_space<vmem>>, vector<1x8x32xbf16>,
    } else {
    }
    return
  }
  func.func @transform_0(%arg0: i32, %arg1: i32, %arg2: i32) -> (i32, i32, i32) {
    %c0_i32 = arith.constant 0 : i32
    %c0_i32_0 = arith.constant 0 : i32
    return %arg0, %arg1, %c0_i32 : i32, i32, i32
  }
  func.func @transform_1(%arg0: i32, %arg1: i32, %arg2: i32) -> (i32, i32, i32) {
    %c0_i32 = arith.constant 0 : i32
    %c0_i32_0 = arith.constant 0 : i32
    return %arg0, %c0_i32, %arg2 : i32, i32, i32
  }
  func.func @transform_2(%arg0: i32, %arg1: i32, %arg2: i32) -> (i32, i32, i32) {
    %c0_i32 = arith.constant 0 : i32
    %c0_i32_0 = arith.constant 0 : i32
    return %arg0, %arg1, %c0_i32 : i32, i32, i32
  }
  func.func @transform_3(%arg0: i32, %arg1: i32, %arg2: i32) -> (i32, i32, i32) {
    %c0_i32 = arith.constant 0 : i32
    %c0_i32_0 = arith.constant 0 : i32
    return %arg0, %arg2, %c0_i32 : i32, i32, i32
  }
  func.func @transform_4(%arg0: i32, %arg1: i32, %arg2: i32) -> (i32, i32, i32) {
    %c0_i32 = arith.constant 0 : i32
    %c0_i32_0 = arith.constant 0 : i32
    return %arg0, %arg2, %c0_i32 : i32, i32, i32
  }
  func.func @transform_5(%arg0: i32, %arg1: i32, %arg2: i32) -> (i32, i32, i32) {
    %c0_i32 = arith.constant 0 : i32
    %c0_i32_0 = arith.constant 0 : i32
    return %arg0, %arg1, %c0_i32 : i32, i32, i32
  }
}

module attributes {stable_mosaic.version = 11 : i64} {
  func.func @_linear_kernel(%arg0: i32, %arg1: i32, %arg2: i32, %arg3: memref<16x32xbf16, #tpu.memory_space<vmem>>, %arg4: memref<32x64xbf16, #tpu.memory_space<vmem>>, %arg5: memref<1x64xf32, #tpu.memory_space<vmem>>, %arg6: memref<16x64xbf16, #tpu.memory_space<vmem>>, %arg7: memref<16x64xf32, #tpu.memory_space<vmem>>) attributes {dimension_semantics = [#tpu.dimension_semantics<parallel>, #tpu.dimension_semantics<parallel>, #tpu.dimension_semantics<arbitrary>], iteration_bounds = array<i64: 1, 1, 1>, scalar_prefetch = 0 : i64, scratch_operands = 1 : i64, tpu.core_type = #tpu.core_type<tc>, window_params = [{transform_indices = @transform_0, window_bounds = array<i64: 16, 32>}, {transform_indices = @transform_1, window_bounds = array<i64: 32, 64>}, {transform_indices = @transform_2, window_bounds = array<i64: 1, 64>}, {transform_indices = @transform_3, window_bounds = array<i64: 16, 64>}]} {
    %c0_i32 = arith.constant 0 : i32
    %0 = arith.cmpi eq, %arg2, %c0_i32 : i32
    %1 = arith.extui %0 : i1 to i32
    %c0_i32_0 = arith.constant 0 : i32
    %2 = arith.cmpi ne, %1, %c0_i32_0 : i32
    scf.if %2 {
      %cst_10 = arith.constant 0.000000e+00 : f32
      %12 = vector.broadcast %cst_10 : f32 to vector<16x64xf32>
      %c0_11 = arith.constant 0 : index
      %c0_12 = arith.constant 0 : index
      %13 = vector.load %arg7[%c0_11, %c0_12] : memref<16x64xf32, #tpu.memory_space<vmem>>, vector<16x64xf32>
      tpu.vector_store %arg7[%c0_11, %c0_12], %12 {strides = array<i32>} : memref<16x64xf32, #tpu.memory_space<vmem>>, vector<16x64xf32>,
    } else {
    }
    %c0 = arith.constant 0 : index
    %c0_1 = arith.constant 0 : index
    %3 = vector.load %arg7[%c0, %c0_1] : memref<16x64xf32, #tpu.memory_space<vmem>>, vector<16x64xf32>
    %c0_2 = arith.constant 0 : index
    %c0_3 = arith.constant 0 : index
    %4 = vector.load %arg3[%c0_2, %c0_3] : memref<16x32xbf16, #tpu.memory_space<vmem>>, vector<16x32xbf16>
    %c0_4 = arith.constant 0 : index
    %c0_5 = arith.constant 0 : index
    %5 = vector.load %arg4[%c0_4, %c0_5] : memref<32x64xbf16, #tpu.memory_space<vmem>>, vector<32x64xbf16>
    %cst = arith.constant dense<0.000000e+00> : vector<16x64xf32>
    %6 = tpu.matmul %4, %5, %cst {dimension_numbers = #tpu.dot_dimension_numbers<[1], [0], [0], [1], [0, 0, 1, 1], [], []>} : vector<16x32xbf16>, vector<32x64xbf16>, vector<16x64xf32> -> vector<16x64xf32>
    %7 = arith.addf %3, %6 : vector<16x64xf32>
    %c0_6 = arith.constant 0 : index
    %c0_7 = arith.constant 0 : index
    %8 = vector.load %arg7[%c0_6, %c0_7] : memref<16x64xf32, #tpu.memory_space<vmem>>, vector<16x64xf32>
    tpu.vector_store %arg7[%c0_6, %c0_7], %7 {strides = array<i32>} : memref<16x64xf32, #tpu.memory_space<vmem>>, vector<16x64xf32>,
    %c0_i32_8 = arith.constant 0 : i32
    %9 = arith.cmpi eq, %arg2, %c0_i32_8 : i32
    %10 = arith.extui %9 : i1 to i32
    %c0_i32_9 = arith.constant 0 : i32
    %11 = arith.cmpi ne, %10, %c0_i32_9 : i32
    scf.if %11 {
      %c0_10 = arith.constant 0 : index
      %c0_11 = arith.constant 0 : index
      %12 = vector.load %arg7[%c0_10, %c0_11] : memref<16x64xf32, #tpu.memory_space<vmem>>, vector<16x64xf32>
      %c0_12 = arith.constant 0 : index
      %c0_13 = arith.constant 0 : index
      %13 = vector.load %arg5[%c0_12, %c0_13] : memref<1x64xf32, #tpu.memory_space<vmem>>, vector<1x64xf32>
      %14 = vector.broadcast %13 : vector<1x64xf32> to vector<16x64xf32>
      %15 = arith.addf %12, %14 : vector<16x64xf32>
      %cst_14 = arith.constant 0.000000e+00 : f32
      %16 = vector.broadcast %cst_14 : f32 to vector<16x64xf32>
      %17 = arith.maximumf %15, %16 : vector<16x64xf32>
      %18 = arith.truncf %17 : vector<16x64xf32> to vector<16x64xbf16>
      %c0_15 = arith.constant 0 : index
      %c0_16 = arith.constant 0 : index
      %19 = vector.load %arg6[%c0_15, %c0_16] : memref<16x64xbf16, #tpu.memory_space<vmem>>, vector<16x64xbf16>
      tpu.vector_store %arg6[%c0_15, %c0_16], %18 {strides = array<i32>} : memref<16x64xbf16, #tpu.memory_space<vmem>>, vector<16x64xbf16>,
    } else {
    }
    return
  }
  func.func @transform_0(%arg0: i32, %arg1: i32, %arg2: i32) -> (i32, i32) {
    %c0_i32 = arith.constant 0 : i32
    return %arg0, %arg2 : i32, i32
  }
  func.func @transform_1(%arg0: i32, %arg1: i32, %arg2: i32) -> (i32, i32) {
    %c0_i32 = arith.constant 0 : i32
    return %arg2, %arg1 : i32, i32
  }
  func.func @transform_2(%arg0: i32, %arg1: i32, %arg2: i32) -> (i32, i32) {
    %c0_i32 = arith.constant 0 : i32
    %c0_i32_0 = arith.constant 0 : i32
    return %c0_i32, %arg1 : i32, i32
  }
  func.func @transform_3(%arg0: i32, %arg1: i32, %arg2: i32) -> (i32, i32) {
    %c0_i32 = arith.constant 0 : i32
    return %arg0, %arg1 : i32, i32
  }
}

module attributes {stable_mosaic.version = 11 : i64} {
  func.func @_linear_addln_kernel(%arg0: i32, %arg1: i32, %arg2: memref<16x64xbf16, #tpu.memory_space<vmem>>, %arg3: memref<64x32xbf16, #tpu.memory_space<vmem>>, %arg4: memref<1x32xf32, #tpu.memory_space<vmem>>, %arg5: memref<16x32xbf16, #tpu.memory_space<vmem>>, %arg6: memref<1x32xf32, #tpu.memory_space<vmem>>, %arg7: memref<1x32xf32, #tpu.memory_space<vmem>>, %arg8: memref<16x32xbf16, #tpu.memory_space<vmem>>, %arg9: memref<16x32xf32, #tpu.memory_space<vmem>>) attributes {dimension_semantics = [#tpu.dimension_semantics<parallel>, #tpu.dimension_semantics<arbitrary>], iteration_bounds = array<i64: 1, 1>, scalar_prefetch = 0 : i64, scratch_operands = 1 : i64, tpu.core_type = #tpu.core_type<tc>, window_params = [{transform_indices = @transform_0, window_bounds = array<i64: 16, 64>}, {transform_indices = @transform_1, window_bounds = array<i64: 64, 32>}, {pipeline_mode = #tpu.pipeline_mode<synchronous>, transform_indices = @transform_2, window_bounds = array<i64: 1, 32>}, {transform_indices = @transform_3, window_bounds = array<i64: 16, 32>}, {pipeline_mode = #tpu.pipeline_mode<synchronous>, transform_indices = @transform_4, window_bounds = array<i64: 1, 32>}, {pipeline_mode = #tpu.pipeline_mode<synchronous>, transform_indices = @transform_5, window_bounds = array<i64: 1, 32>}, {transform_indices = @transform_6, window_bounds = array<i64: 16, 32>}]} {
    %c0_i32 = arith.constant 0 : i32
    %0 = arith.cmpi eq, %arg1, %c0_i32 : i32
    %1 = arith.extui %0 : i1 to i32
    %c0_i32_0 = arith.constant 0 : i32
    %2 = arith.cmpi ne, %1, %c0_i32_0 : i32
    scf.if %2 {
      %cst_10 = arith.constant 0.000000e+00 : f32
      %12 = vector.broadcast %cst_10 : f32 to vector<16x32xf32>
      %c0_11 = arith.constant 0 : index
      %c0_12 = arith.constant 0 : index
      %13 = vector.load %arg9[%c0_11, %c0_12] : memref<16x32xf32, #tpu.memory_space<vmem>>, vector<16x32xf32>
      tpu.vector_store %arg9[%c0_11, %c0_12], %12 {strides = array<i32>} : memref<16x32xf32, #tpu.memory_space<vmem>>, vector<16x32xf32>,
    } else {
    }
    %c0 = arith.constant 0 : index
    %c0_1 = arith.constant 0 : index
    %3 = vector.load %arg9[%c0, %c0_1] : memref<16x32xf32, #tpu.memory_space<vmem>>, vector<16x32xf32>
    %c0_2 = arith.constant 0 : index
    %c0_3 = arith.constant 0 : index
    %4 = vector.load %arg2[%c0_2, %c0_3] : memref<16x64xbf16, #tpu.memory_space<vmem>>, vector<16x64xbf16>
    %c0_4 = arith.constant 0 : index
    %c0_5 = arith.constant 0 : index
    %5 = vector.load %arg3[%c0_4, %c0_5] : memref<64x32xbf16, #tpu.memory_space<vmem>>, vector<64x32xbf16>
    %cst = arith.constant dense<0.000000e+00> : vector<16x32xf32>
    %6 = tpu.matmul %4, %5, %cst {dimension_numbers = #tpu.dot_dimension_numbers<[1], [0], [0], [1], [0, 0, 1, 1], [], []>} : vector<16x64xbf16>, vector<64x32xbf16>, vector<16x32xf32> -> vector<16x32xf32>
    %7 = arith.addf %3, %6 : vector<16x32xf32>
    %c0_6 = arith.constant 0 : index
    %c0_7 = arith.constant 0 : index
    %8 = vector.load %arg9[%c0_6, %c0_7] : memref<16x32xf32, #tpu.memory_space<vmem>>, vector<16x32xf32>
    tpu.vector_store %arg9[%c0_6, %c0_7], %7 {strides = array<i32>} : memref<16x32xf32, #tpu.memory_space<vmem>>, vector<16x32xf32>,
    %c0_i32_8 = arith.constant 0 : i32
    %9 = arith.cmpi eq, %arg1, %c0_i32_8 : i32
    %10 = arith.extui %9 : i1 to i32
    %c0_i32_9 = arith.constant 0 : i32
    %11 = arith.cmpi ne, %10, %c0_i32_9 : i32
    scf.if %11 {
      %c0_10 = arith.constant 0 : index
      %c0_11 = arith.constant 0 : index
      %12 = vector.load %arg9[%c0_10, %c0_11] : memref<16x32xf32, #tpu.memory_space<vmem>>, vector<16x32xf32>
      %c0_12 = arith.constant 0 : index
      %c0_13 = arith.constant 0 : index
      %13 = vector.load %arg4[%c0_12, %c0_13] : memref<1x32xf32, #tpu.memory_space<vmem>>, vector<1x32xf32>
      %14 = vector.broadcast %13 : vector<1x32xf32> to vector<16x32xf32>
      %15 = arith.addf %12, %14 : vector<16x32xf32>
      %c0_14 = arith.constant 0 : index
      %c0_15 = arith.constant 0 : index
      %16 = vector.load %arg5[%c0_14, %c0_15] : memref<16x32xbf16, #tpu.memory_space<vmem>>, vector<16x32xbf16>
      %17 = arith.extf %16 : vector<16x32xbf16> to vector<16x32xf32>
      %18 = arith.addf %15, %17 : vector<16x32xf32>
      %cst_16 = arith.constant dense<0.000000e+00> : vector<16xf32>
      %19 = vector.multi_reduction <add>, %18, %cst_16 [1] : vector<16x32xf32> to vector<16xf32>
      %20 = vector.shape_cast %19 : vector<16xf32> to vector<16x1xf32>
      %cst_17 = arith.constant 3.200000e+01 : f32
      %21 = vector.broadcast %cst_17 : f32 to vector<16x1xf32>
      %22 = arith.divf %20, %21 : vector<16x1xf32>
      %23 = vector.broadcast %22 : vector<16x1xf32> to vector<16x32xf32>
      %24 = arith.subf %18, %23 : vector<16x32xf32>
      %25 = arith.mulf %24, %24 : vector<16x32xf32>
      %cst_18 = arith.constant dense<0.000000e+00> : vector<16xf32>
      %26 = vector.multi_reduction <add>, %25, %cst_18 [1] : vector<16x32xf32> to vector<16xf32>
      %27 = vector.shape_cast %26 : vector<16xf32> to vector<16x1xf32>
      %cst_19 = arith.constant 3.200000e+01 : f32
      %28 = vector.broadcast %cst_19 : f32 to vector<16x1xf32>
      %29 = arith.divf %27, %28 : vector<16x1xf32>
      %30 = vector.broadcast %22 : vector<16x1xf32> to vector<16x32xf32>
      %31 = arith.subf %18, %30 : vector<16x32xf32>
      %cst_20 = arith.constant 9.99999996E-13 : f32
      %32 = vector.broadcast %cst_20 : f32 to vector<16x1xf32>
      %33 = arith.addf %29, %32 : vector<16x1xf32>
      %34 = math.rsqrt %33 : vector<16x1xf32>
      %35 = vector.broadcast %34 : vector<16x1xf32> to vector<16x32xf32>
      %36 = arith.mulf %31, %35 : vector<16x32xf32>
      %c0_21 = arith.constant 0 : index
      %c0_22 = arith.constant 0 : index
      %37 = vector.load %arg6[%c0_21, %c0_22] : memref<1x32xf32, #tpu.memory_space<vmem>>, vector<1x32xf32>
      %38 = vector.broadcast %37 : vector<1x32xf32> to vector<16x32xf32>
      %39 = arith.mulf %36, %38 : vector<16x32xf32>
      %c0_23 = arith.constant 0 : index
      %c0_24 = arith.constant 0 : index
      %40 = vector.load %arg7[%c0_23, %c0_24] : memref<1x32xf32, #tpu.memory_space<vmem>>, vector<1x32xf32>
      %41 = vector.broadcast %40 : vector<1x32xf32> to vector<16x32xf32>
      %42 = arith.addf %39, %41 : vector<16x32xf32>
      %43 = arith.truncf %42 : vector<16x32xf32> to vector<16x32xbf16>
      %c0_25 = arith.constant 0 : index
      %c0_26 = arith.constant 0 : index
      %44 = vector.load %arg8[%c0_25, %c0_26] : memref<16x32xbf16, #tpu.memory_space<vmem>>, vector<16x32xbf16>
      tpu.vector_store %arg8[%c0_25, %c0_26], %43 {strides = array<i32>} : memref<16x32xbf16, #tpu.memory_space<vmem>>, vector<16x32xbf16>,
    } else {
    }
    return
  }
  func.func @transform_0(%arg0: i32, %arg1: i32) -> (i32, i32) {
    %c0_i32 = arith.constant 0 : i32
    return %arg0, %arg1 : i32, i32
  }
  func.func @transform_1(%arg0: i32, %arg1: i32) -> (i32, i32) {
    %c0_i32 = arith.constant 0 : i32
    %c0_i32_0 = arith.constant 0 : i32
    return %arg1, %c0_i32 : i32, i32
  }
  func.func @transform_2(%arg0: i32, %arg1: i32) -> (i32, i32) {
    %c0_i32 = arith.constant 0 : i32
    %c0_i32_0 = arith.constant 0 : i32
    %c0_i32_1 = arith.constant 0 : i32
    return %c0_i32, %c0_i32_0 : i32, i32
  }
  func.func @transform_3(%arg0: i32, %arg1: i32) -> (i32, i32) {
    %c0_i32 = arith.constant 0 : i32
    %c0_i32_0 = arith.constant 0 : i32
    return %arg0, %c0_i32 : i32, i32
  }
  func.func @transform_4(%arg0: i32, %arg1: i32) -> (i32, i32) {
    %c0_i32 = arith.constant 0 : i32
    %c0_i32_0 = arith.constant 0 : i32
    %c0_i32_1 = arith.constant 0 : i32
    return %c0_i32, %c0_i32_0 : i32, i32
  }
  func.func @transform_5(%arg0: i32, %arg1: i32) -> (i32, i32) {
    %c0_i32 = arith.constant 0 : i32
    %c0_i32_0 = arith.constant 0 : i32
    %c0_i32_1 = arith.constant 0 : i32
    return %c0_i32, %c0_i32_0 : i32, i32
  }
  func.func @transform_6(%arg0: i32, %arg1: i32) -> (i32, i32) {
    %c0_i32 = arith.constant 0 : i32
    %c0_i32_0 = arith.constant 0 : i32
    return %arg0, %c0_i32 : i32, i32
  }
}

module attributes {stable_mosaic.version = 11 : i64} {
  func.func @_mha_flash_kernel(%arg0: i32, %arg1: i32, %arg2: i32, %arg3: memref<1x8x1xi32, #tpu.memory_space<vmem>>, %arg4: memref<1x1x8xi32, #tpu.memory_space<vmem>>, %arg5: memref<1x8x32xbf16, #tpu.memory_space<vmem>>, %arg6: memref<1x8x32xbf16, #tpu.memory_space<vmem>>, %arg7: memref<1x8x32xbf16, #tpu.memory_space<vmem>>, %arg8: memref<1x8x32xbf16, #tpu.memory_space<vmem>>, %arg9: memref<4x8x1xf32, #tpu.memory_space<vmem>>, %arg10: memref<4x8x1xf32, #tpu.memory_space<vmem>>, %arg11: memref<4x8x8xf32, #tpu.memory_space<vmem>>) attributes {dimension_semantics = [#tpu.dimension_semantics<parallel>, #tpu.dimension_semantics<parallel>, #tpu.dimension_semantics<arbitrary>], iteration_bounds = array<i64: 2, 1, 1>, scalar_prefetch = 0 : i64, scratch_operands = 3 : i64, tpu.core_type = #tpu.core_type<tc>, window_params = [{transform_indices = @transform_0, window_bounds = array<i64: 1, 8, 1>}, {transform_indices = @transform_1, window_bounds = array<i64: 1, 1, 8>}, {transform_indices = @transform_2, window_bounds = array<i64: 1, 8, 32>}, {transform_indices = @transform_3, window_bounds = array<i64: 1, 8, 32>}, {transform_indices = @transform_4, window_bounds = array<i64: 1, 8, 32>}, {transform_indices = @transform_5, window_bounds = array<i64: 1, 8, 32>}]} {
    %c0_i32 = arith.constant 0 : i32
    %0 = arith.cmpi eq, %arg2, %c0_i32 : i32
    %1 = arith.extui %0 : i1 to i32
    %c0_i32_0 = arith.constant 0 : i32
    %2 = arith.cmpi ne, %1, %c0_i32_0 : i32
    scf.if %2 {
      %cst_112 = arith.constant -1.000000e+30 : f32
      %193 = vector.broadcast %cst_112 : f32 to vector<4x8x1xf32>
      %c0_113 = arith.constant 0 : index
      %c0_114 = arith.constant 0 : index
      %c0_115 = arith.constant 0 : index
      %194 = vector.load %arg9[%c0_113, %c0_114, %c0_115] : memref<4x8x1xf32, #tpu.memory_space<vmem>>, vector<4x8x1xf32>
      tpu.vector_store %arg9[%c0_113, %c0_114, %c0_115], %193 {strides = array<i32>} : memref<4x8x1xf32, #tpu.memory_space<vmem>>, vector<4x8x1xf32>,
      %cst_116 = arith.constant 0.000000e+00 : f32
      %195 = vector.broadcast %cst_116 : f32 to vector<4x8x1xf32>
      %c0_117 = arith.constant 0 : index
      %c0_118 = arith.constant 0 : index
      %c0_119 = arith.constant 0 : index
      %196 = vector.load %arg10[%c0_117, %c0_118, %c0_119] : memref<4x8x1xf32, #tpu.memory_space<vmem>>, vector<4x8x1xf32>
      tpu.vector_store %arg10[%c0_117, %c0_118, %c0_119], %195 {strides = array<i32>} : memref<4x8x1xf32, #tpu.memory_space<vmem>>, vector<4x8x1xf32>,
      %cst_120 = arith.constant 0.000000e+00 : f32
      %197 = vector.broadcast %cst_120 : f32 to vector<4x8x8xf32>
      %c0_121 = arith.constant 0 : index
      %c0_122 = arith.constant 0 : index
      %c0_123 = arith.constant 0 : index
      %198 = vector.load %arg11[%c0_121, %c0_122, %c0_123] : memref<4x8x8xf32, #tpu.memory_space<vmem>>, vector<4x8x8xf32>
      tpu.vector_store %arg11[%c0_121, %c0_122, %c0_123], %197 {strides = array<i32>} : memref<4x8x8xf32, #tpu.memory_space<vmem>>, vector<4x8x8xf32>,
    } else {
    }
    %c0 = arith.constant 0 : index
    %c0_1 = arith.constant 0 : index
    %c0_2 = arith.constant 0 : index
    %3 = vector.load %arg4[%c0, %c0_1, %c0_2] : memref<1x1x8xi32, #tpu.memory_space<vmem>>, vector<1x1x8xi32>
    %4 = vector.shape_cast %3 : vector<1x1x8xi32> to vector<1x8xi32>
    %c0_i32_3 = arith.constant 0 : i32
    %5 = vector.broadcast %c0_i32_3 : i32 to vector<1x8xi32>
    %6 = arith.cmpi sgt, %4, %5 : vector<1x8xi32>
    %c0_4 = arith.constant 0 : index
    %c0_5 = arith.constant 0 : index
    %c0_6 = arith.constant 0 : index
    %7 = vector.load %arg3[%c0_4, %c0_5, %c0_6] : memref<1x8x1xi32, #tpu.memory_space<vmem>>, vector<1x8x1xi32>
    %8 = vector.shape_cast %7 : vector<1x8x1xi32> to vector<8x1xi32>
    %c0_i32_7 = arith.constant 0 : i32
    %9 = vector.broadcast %c0_i32_7 : i32 to vector<8x1xi32>
    %10 = arith.cmpi sgt, %8, %9 : vector<8x1xi32>
    %11 = vector.broadcast %6 : vector<1x8xi1> to vector<8x8xi1>
    %12 = vector.broadcast %10 : vector<8x1xi1> to vector<8x8xi1>
    %13 = arith.andi %11, %12 : vector<8x8xi1>
    %14 = tpu.iota {dimensions = array<i32: 0>} : vector<8x8xi32>
    %c8_i32 = arith.constant 8 : i32
    %15 = arith.muli %arg1, %c8_i32 : i32
    %16 = vector.broadcast %15 : i32 to vector<8x8xi32>
    %17 = arith.addi %14, %16 : vector<8x8xi32>
    %18 = tpu.iota {dimensions = array<i32: 1>} : vector<8x8xi32>
    %c8_i32_8 = arith.constant 8 : i32
    %19 = arith.muli %arg2, %c8_i32_8 : i32
    %20 = vector.broadcast %19 : i32 to vector<8x8xi32>
    %21 = arith.addi %18, %20 : vector<8x8xi32>
    %22 = arith.cmpi sge, %17, %21 : vector<8x8xi32>
    %23 = arith.andi %13, %22 : vector<8x8xi1>
    %c0_9 = arith.constant 0 : index
    %c0_10 = arith.constant 0 : index
    %c0_11 = arith.constant 0 : index
    %24 = vector.load %arg5[%c0_9, %c0_10, %c0_11] : memref<1x8x32xbf16, #tpu.memory_space<vmem>>, vector<1x8x32xbf16>
    %25 = vector.shape_cast %24 : vector<1x8x32xbf16> to vector<8x32xbf16>
    %c0_12 = arith.constant 0 : index
    %c0_13 = arith.constant 0 : index
    %c0_14 = arith.constant 0 : index
    %26 = vector.load %arg6[%c0_12, %c0_13, %c0_14] : memref<1x8x32xbf16, #tpu.memory_space<vmem>>, vector<1x8x32xbf16>
    %27 = vector.shape_cast %26 : vector<1x8x32xbf16> to vector<8x32xbf16>
    %c0_15 = arith.constant 0 : index
    %c0_16 = arith.constant 0 : index
    %c0_17 = arith.constant 0 : index
    %28 = vector.load %arg7[%c0_15, %c0_16, %c0_17] : memref<1x8x32xbf16, #tpu.memory_space<vmem>>, vector<1x8x32xbf16>
    %29 = vector.shape_cast %28 : vector<1x8x32xbf16> to vector<8x32xbf16>
    %30 = vector.extract_strided_slice %25 {offsets = [0, 0], sizes = [8, 8], strides = [1, 1]} : vector<8x32xbf16> to vector<8x8xbf16>
    %31 = vector.extract_strided_slice %27 {offsets = [0, 0], sizes = [8, 8], strides = [1, 1]} : vector<8x32xbf16> to vector<8x8xbf16>
    %cst = arith.constant dense<0.000000e+00> : vector<8x8xf32>
    %32 = tpu.matmul %30, %31, %cst {dimension_numbers = #tpu.dot_dimension_numbers<[1], [1], [0], [0], [0, 0, 1, 0], [], []>} : vector<8x8xbf16>, vector<8x8xbf16>, vector<8x8xf32> -> vector<8x8xf32>
    %cst_18 = arith.constant 0.353553385 : f32
    %33 = vector.broadcast %cst_18 : f32 to vector<8x8xf32>
    %34 = arith.mulf %32, %33 : vector<8x8xf32>
    %cst_19 = arith.constant -1.000000e+04 : f32
    %35 = vector.broadcast %cst_19 : f32 to vector<8x8xf32>
    %36 = arith.select %23, %34, %35 : vector<8x8xi1>, vector<8x8xf32>
    %c0_20 = arith.constant 0 : index
    %c0_21 = arith.constant 0 : index
    %c0_22 = arith.constant 0 : index
    %37 = vector.load %arg9[%c0_20, %c0_21, %c0_22] : memref<4x8x1xf32, #tpu.memory_space<vmem>>, vector<1x8x1xf32>
    %38 = vector.shape_cast %37 : vector<1x8x1xf32> to vector<8x1xf32>
    %cst_23 = arith.constant dense<0xFF800000> : vector<8xf32>
    %39 = vector.multi_reduction <maximumf>, %36, %cst_23 [1] : vector<8x8xf32> to vector<8xf32>
    %40 = vector.shape_cast %39 : vector<8xf32> to vector<8x1xf32>
    %41 = arith.maximumf %38, %40 : vector<8x1xf32>
    %42 = arith.subf %38, %41 : vector<8x1xf32>
    %43 = math.exp %42 : vector<8x1xf32>
    %44 = vector.broadcast %41 : vector<8x1xf32> to vector<8x8xf32>
    %45 = arith.subf %36, %44 : vector<8x8xf32>
    %46 = math.exp %45 : vector<8x8xf32>
    %c0_24 = arith.constant 0 : index
    %c0_25 = arith.constant 0 : index
    %c0_26 = arith.constant 0 : index
    %47 = vector.load %arg10[%c0_24, %c0_25, %c0_26] : memref<4x8x1xf32, #tpu.memory_space<vmem>>, vector<1x8x1xf32>
    %48 = vector.shape_cast %47 : vector<1x8x1xf32> to vector<8x1xf32>
    %49 = arith.mulf %43, %48 : vector<8x1xf32>
    %cst_27 = arith.constant dense<0.000000e+00> : vector<8xf32>
    %50 = vector.multi_reduction <add>, %46, %cst_27 [1] : vector<8x8xf32> to vector<8xf32>
    %51 = vector.shape_cast %50 : vector<8xf32> to vector<8x1xf32>
    %52 = arith.addf %49, %51 : vector<8x1xf32>
    %c0_28 = arith.constant 0 : index
    %c0_29 = arith.constant 0 : index
    %c0_30 = arith.constant 0 : index
    %53 = vector.load %arg10[%c0_28, %c0_29, %c0_30] : memref<4x8x1xf32, #tpu.memory_space<vmem>>, vector<1x8x1xf32>
    %54 = vector.shape_cast %53 : vector<1x8x1xf32> to vector<8x1xf32>
    %55 = vector.shape_cast %52 : vector<8x1xf32> to vector<1x8x1xf32>
    tpu.vector_store %arg10[%c0_28, %c0_29, %c0_30], %55 {strides = array<i32>} : memref<4x8x1xf32, #tpu.memory_space<vmem>>, vector<1x8x1xf32>,
    %c0_31 = arith.constant 0 : index
    %c0_32 = arith.constant 0 : index
    %c0_33 = arith.constant 0 : index
    %56 = vector.load %arg11[%c0_31, %c0_32, %c0_33] : memref<4x8x8xf32, #tpu.memory_space<vmem>>, vector<1x8x8xf32>
    %57 = vector.shape_cast %56 : vector<1x8x8xf32> to vector<8x8xf32>
    %58 = vector.broadcast %43 : vector<8x1xf32> to vector<8x8xf32>
    %59 = arith.mulf %58, %57 : vector<8x8xf32>
    %60 = arith.truncf %46 : vector<8x8xf32> to vector<8x8xbf16>
    %61 = vector.extract_strided_slice %29 {offsets = [0, 0], sizes = [8, 8], strides = [1, 1]} : vector<8x32xbf16> to vector<8x8xbf16>
    %cst_34 = arith.constant dense<0.000000e+00> : vector<8x8xf32>
    %62 = tpu.matmul %60, %61, %cst_34 {dimension_numbers = #tpu.dot_dimension_numbers<[1], [0], [0], [1], [0, 0, 1, 1], [], []>} : vector<8x8xbf16>, vector<8x8xbf16>, vector<8x8xf32> -> vector<8x8xf32>
    %63 = arith.addf %59, %62 : vector<8x8xf32>
    %c0_35 = arith.constant 0 : index
    %c0_36 = arith.constant 0 : index
    %c0_37 = arith.constant 0 : index
    %64 = vector.load %arg11[%c0_35, %c0_36, %c0_37] : memref<4x8x8xf32, #tpu.memory_space<vmem>>, vector<1x8x8xf32>
    %65 = vector.shape_cast %64 : vector<1x8x8xf32> to vector<8x8xf32>
    %66 = vector.shape_cast %63 : vector<8x8xf32> to vector<1x8x8xf32>
    tpu.vector_store %arg11[%c0_35, %c0_36, %c0_37], %66 {strides = array<i32>} : memref<4x8x8xf32, #tpu.memory_space<vmem>>, vector<1x8x8xf32>,
    %c0_38 = arith.constant 0 : index
    %c0_39 = arith.constant 0 : index
    %c0_40 = arith.constant 0 : index
    %67 = vector.load %arg9[%c0_38, %c0_39, %c0_40] : memref<4x8x1xf32, #tpu.memory_space<vmem>>, vector<1x8x1xf32>
    %68 = vector.shape_cast %67 : vector<1x8x1xf32> to vector<8x1xf32>
    %69 = vector.shape_cast %41 : vector<8x1xf32> to vector<1x8x1xf32>
    tpu.vector_store %arg9[%c0_38, %c0_39, %c0_40], %69 {strides = array<i32>} : memref<4x8x1xf32, #tpu.memory_space<vmem>>, vector<1x8x1xf32>,
    %70 = vector.extract_strided_slice %25 {offsets = [0, 8], sizes = [8, 8], strides = [1, 1]} : vector<8x32xbf16> to vector<8x8xbf16>
    %71 = vector.extract_strided_slice %27 {offsets = [0, 8], sizes = [8, 8], strides = [1, 1]} : vector<8x32xbf16> to vector<8x8xbf16>
    %cst_41 = arith.constant dense<0.000000e+00> : vector<8x8xf32>
    %72 = tpu.matmul %70, %71, %cst_41 {dimension_numbers = #tpu.dot_dimension_numbers<[1], [1], [0], [0], [0, 0, 1, 0], [], []>} : vector<8x8xbf16>, vector<8x8xbf16>, vector<8x8xf32> -> vector<8x8xf32>
    %cst_42 = arith.constant 0.353553385 : f32
    %73 = vector.broadcast %cst_42 : f32 to vector<8x8xf32>
    %74 = arith.mulf %72, %73 : vector<8x8xf32>
    %cst_43 = arith.constant -1.000000e+04 : f32
    %75 = vector.broadcast %cst_43 : f32 to vector<8x8xf32>
    %76 = arith.select %23, %74, %75 : vector<8x8xi1>, vector<8x8xf32>
    %c1 = arith.constant 1 : index
    %c0_44 = arith.constant 0 : index
    %c0_45 = arith.constant 0 : index
    %77 = vector.load %arg9[%c1, %c0_44, %c0_45] : memref<4x8x1xf32, #tpu.memory_space<vmem>>, vector<1x8x1xf32>
    %78 = vector.shape_cast %77 : vector<1x8x1xf32> to vector<8x1xf32>
    %cst_46 = arith.constant dense<0xFF800000> : vector<8xf32>
    %79 = vector.multi_reduction <maximumf>, %76, %cst_46 [1] : vector<8x8xf32> to vector<8xf32>
    %80 = vector.shape_cast %79 : vector<8xf32> to vector<8x1xf32>
    %81 = arith.maximumf %78, %80 : vector<8x1xf32>
    %82 = arith.subf %78, %81 : vector<8x1xf32>
    %83 = math.exp %82 : vector<8x1xf32>
    %84 = vector.broadcast %81 : vector<8x1xf32> to vector<8x8xf32>
    %85 = arith.subf %76, %84 : vector<8x8xf32>
    %86 = math.exp %85 : vector<8x8xf32>
    %c1_47 = arith.constant 1 : index
    %c0_48 = arith.constant 0 : index
    %c0_49 = arith.constant 0 : index
    %87 = vector.load %arg10[%c1_47, %c0_48, %c0_49] : memref<4x8x1xf32, #tpu.memory_space<vmem>>, vector<1x8x1xf32>
    %88 = vector.shape_cast %87 : vector<1x8x1xf32> to vector<8x1xf32>
    %89 = arith.mulf %83, %88 : vector<8x1xf32>
    %cst_50 = arith.constant dense<0.000000e+00> : vector<8xf32>
    %90 = vector.multi_reduction <add>, %86, %cst_50 [1] : vector<8x8xf32> to vector<8xf32>
    %91 = vector.shape_cast %90 : vector<8xf32> to vector<8x1xf32>
    %92 = arith.addf %89, %91 : vector<8x1xf32>
    %c1_51 = arith.constant 1 : index
    %c0_52 = arith.constant 0 : index
    %c0_53 = arith.constant 0 : index
    %93 = vector.load %arg10[%c1_51, %c0_52, %c0_53] : memref<4x8x1xf32, #tpu.memory_space<vmem>>, vector<1x8x1xf32>
    %94 = vector.shape_cast %93 : vector<1x8x1xf32> to vector<8x1xf32>
    %95 = vector.shape_cast %92 : vector<8x1xf32> to vector<1x8x1xf32>
    tpu.vector_store %arg10[%c1_51, %c0_52, %c0_53], %95 {strides = array<i32>} : memref<4x8x1xf32, #tpu.memory_space<vmem>>, vector<1x8x1xf32>,
    %c1_54 = arith.constant 1 : index
    %c0_55 = arith.constant 0 : index
    %c0_56 = arith.constant 0 : index
    %96 = vector.load %arg11[%c1_54, %c0_55, %c0_56] : memref<4x8x8xf32, #tpu.memory_space<vmem>>, vector<1x8x8xf32>
    %97 = vector.shape_cast %96 : vector<1x8x8xf32> to vector<8x8xf32>
    %98 = vector.broadcast %83 : vector<8x1xf32> to vector<8x8xf32>
    %99 = arith.mulf %98, %97 : vector<8x8xf32>
    %100 = arith.truncf %86 : vector<8x8xf32> to vector<8x8xbf16>
    %101 = vector.extract_strided_slice %29 {offsets = [0, 8], sizes = [8, 8], strides = [1, 1]} : vector<8x32xbf16> to vector<8x8xbf16>
    %cst_57 = arith.constant dense<0.000000e+00> : vector<8x8xf32>
    %102 = tpu.matmul %100, %101, %cst_57 {dimension_numbers = #tpu.dot_dimension_numbers<[1], [0], [0], [1], [0, 0, 1, 1], [], []>} : vector<8x8xbf16>, vector<8x8xbf16>, vector<8x8xf32> -> vector<8x8xf32>
    %103 = arith.addf %99, %102 : vector<8x8xf32>
    %c1_58 = arith.constant 1 : index
    %c0_59 = arith.constant 0 : index
    %c0_60 = arith.constant 0 : index
    %104 = vector.load %arg11[%c1_58, %c0_59, %c0_60] : memref<4x8x8xf32, #tpu.memory_space<vmem>>, vector<1x8x8xf32>
    %105 = vector.shape_cast %104 : vector<1x8x8xf32> to vector<8x8xf32>
    %106 = vector.shape_cast %103 : vector<8x8xf32> to vector<1x8x8xf32>
    tpu.vector_store %arg11[%c1_58, %c0_59, %c0_60], %106 {strides = array<i32>} : memref<4x8x8xf32, #tpu.memory_space<vmem>>, vector<1x8x8xf32>,
    %c1_61 = arith.constant 1 : index
    %c0_62 = arith.constant 0 : index
    %c0_63 = arith.constant 0 : index
    %107 = vector.load %arg9[%c1_61, %c0_62, %c0_63] : memref<4x8x1xf32, #tpu.memory_space<vmem>>, vector<1x8x1xf32>
    %108 = vector.shape_cast %107 : vector<1x8x1xf32> to vector<8x1xf32>
    %109 = vector.shape_cast %81 : vector<8x1xf32> to vector<1x8x1xf32>
    tpu.vector_store %arg9[%c1_61, %c0_62, %c0_63], %109 {strides = array<i32>} : memref<4x8x1xf32, #tpu.memory_space<vmem>>, vector<1x8x1xf32>,
    %110 = vector.extract_strided_slice %25 {offsets = [0, 16], sizes = [8, 8], strides = [1, 1]} : vector<8x32xbf16> to vector<8x8xbf16>
    %111 = vector.extract_strided_slice %27 {offsets = [0, 16], sizes = [8, 8], strides = [1, 1]} : vector<8x32xbf16> to vector<8x8xbf16>
    %cst_64 = arith.constant dense<0.000000e+00> : vector<8x8xf32>
    %112 = tpu.matmul %110, %111, %cst_64 {dimension_numbers = #tpu.dot_dimension_numbers<[1], [1], [0], [0], [0, 0, 1, 0], [], []>} : vector<8x8xbf16>, vector<8x8xbf16>, vector<8x8xf32> -> vector<8x8xf32>
    %cst_65 = arith.constant 0.353553385 : f32
    %113 = vector.broadcast %cst_65 : f32 to vector<8x8xf32>
    %114 = arith.mulf %112, %113 : vector<8x8xf32>
    %cst_66 = arith.constant -1.000000e+04 : f32
    %115 = vector.broadcast %cst_66 : f32 to vector<8x8xf32>
    %116 = arith.select %23, %114, %115 : vector<8x8xi1>, vector<8x8xf32>
    %c2 = arith.constant 2 : index
    %c0_67 = arith.constant 0 : index
    %c0_68 = arith.constant 0 : index
    %117 = vector.load %arg9[%c2, %c0_67, %c0_68] : memref<4x8x1xf32, #tpu.memory_space<vmem>>, vector<1x8x1xf32>
    %118 = vector.shape_cast %117 : vector<1x8x1xf32> to vector<8x1xf32>
    %cst_69 = arith.constant dense<0xFF800000> : vector<8xf32>
    %119 = vector.multi_reduction <maximumf>, %116, %cst_69 [1] : vector<8x8xf32> to vector<8xf32>
    %120 = vector.shape_cast %119 : vector<8xf32> to vector<8x1xf32>
    %121 = arith.maximumf %118, %120 : vector<8x1xf32>
    %122 = arith.subf %118, %121 : vector<8x1xf32>
    %123 = math.exp %122 : vector<8x1xf32>
    %124 = vector.broadcast %121 : vector<8x1xf32> to vector<8x8xf32>
    %125 = arith.subf %116, %124 : vector<8x8xf32>
    %126 = math.exp %125 : vector<8x8xf32>
    %c2_70 = arith.constant 2 : index
    %c0_71 = arith.constant 0 : index
    %c0_72 = arith.constant 0 : index
    %127 = vector.load %arg10[%c2_70, %c0_71, %c0_72] : memref<4x8x1xf32, #tpu.memory_space<vmem>>, vector<1x8x1xf32>
    %128 = vector.shape_cast %127 : vector<1x8x1xf32> to vector<8x1xf32>
    %129 = arith.mulf %123, %128 : vector<8x1xf32>
    %cst_73 = arith.constant dense<0.000000e+00> : vector<8xf32>
    %130 = vector.multi_reduction <add>, %126, %cst_73 [1] : vector<8x8xf32> to vector<8xf32>
    %131 = vector.shape_cast %130 : vector<8xf32> to vector<8x1xf32>
    %132 = arith.addf %129, %131 : vector<8x1xf32>
    %c2_74 = arith.constant 2 : index
    %c0_75 = arith.constant 0 : index
    %c0_76 = arith.constant 0 : index
    %133 = vector.load %arg10[%c2_74, %c0_75, %c0_76] : memref<4x8x1xf32, #tpu.memory_space<vmem>>, vector<1x8x1xf32>
    %134 = vector.shape_cast %133 : vector<1x8x1xf32> to vector<8x1xf32>
    %135 = vector.shape_cast %132 : vector<8x1xf32> to vector<1x8x1xf32>
    tpu.vector_store %arg10[%c2_74, %c0_75, %c0_76], %135 {strides = array<i32>} : memref<4x8x1xf32, #tpu.memory_space<vmem>>, vector<1x8x1xf32>,
    %c2_77 = arith.constant 2 : index
    %c0_78 = arith.constant 0 : index
    %c0_79 = arith.constant 0 : index
    %136 = vector.load %arg11[%c2_77, %c0_78, %c0_79] : memref<4x8x8xf32, #tpu.memory_space<vmem>>, vector<1x8x8xf32>
    %137 = vector.shape_cast %136 : vector<1x8x8xf32> to vector<8x8xf32>
    %138 = vector.broadcast %123 : vector<8x1xf32> to vector<8x8xf32>
    %139 = arith.mulf %138, %137 : vector<8x8xf32>
    %140 = arith.truncf %126 : vector<8x8xf32> to vector<8x8xbf16>
    %141 = vector.extract_strided_slice %29 {offsets = [0, 16], sizes = [8, 8], strides = [1, 1]} : vector<8x32xbf16> to vector<8x8xbf16>
    %cst_80 = arith.constant dense<0.000000e+00> : vector<8x8xf32>
    %142 = tpu.matmul %140, %141, %cst_80 {dimension_numbers = #tpu.dot_dimension_numbers<[1], [0], [0], [1], [0, 0, 1, 1], [], []>} : vector<8x8xbf16>, vector<8x8xbf16>, vector<8x8xf32> -> vector<8x8xf32>
    %143 = arith.addf %139, %142 : vector<8x8xf32>
    %c2_81 = arith.constant 2 : index
    %c0_82 = arith.constant 0 : index
    %c0_83 = arith.constant 0 : index
    %144 = vector.load %arg11[%c2_81, %c0_82, %c0_83] : memref<4x8x8xf32, #tpu.memory_space<vmem>>, vector<1x8x8xf32>
    %145 = vector.shape_cast %144 : vector<1x8x8xf32> to vector<8x8xf32>
    %146 = vector.shape_cast %143 : vector<8x8xf32> to vector<1x8x8xf32>
    tpu.vector_store %arg11[%c2_81, %c0_82, %c0_83], %146 {strides = array<i32>} : memref<4x8x8xf32, #tpu.memory_space<vmem>>, vector<1x8x8xf32>,
    %c2_84 = arith.constant 2 : index
    %c0_85 = arith.constant 0 : index
    %c0_86 = arith.constant 0 : index
    %147 = vector.load %arg9[%c2_84, %c0_85, %c0_86] : memref<4x8x1xf32, #tpu.memory_space<vmem>>, vector<1x8x1xf32>
    %148 = vector.shape_cast %147 : vector<1x8x1xf32> to vector<8x1xf32>
    %149 = vector.shape_cast %121 : vector<8x1xf32> to vector<1x8x1xf32>
    tpu.vector_store %arg9[%c2_84, %c0_85, %c0_86], %149 {strides = array<i32>} : memref<4x8x1xf32, #tpu.memory_space<vmem>>, vector<1x8x1xf32>,
    %150 = vector.extract_strided_slice %25 {offsets = [0, 24], sizes = [8, 8], strides = [1, 1]} : vector<8x32xbf16> to vector<8x8xbf16>
    %151 = vector.extract_strided_slice %27 {offsets = [0, 24], sizes = [8, 8], strides = [1, 1]} : vector<8x32xbf16> to vector<8x8xbf16>
    %cst_87 = arith.constant dense<0.000000e+00> : vector<8x8xf32>
    %152 = tpu.matmul %150, %151, %cst_87 {dimension_numbers = #tpu.dot_dimension_numbers<[1], [1], [0], [0], [0, 0, 1, 0], [], []>} : vector<8x8xbf16>, vector<8x8xbf16>, vector<8x8xf32> -> vector<8x8xf32>
    %cst_88 = arith.constant 0.353553385 : f32
    %153 = vector.broadcast %cst_88 : f32 to vector<8x8xf32>
    %154 = arith.mulf %152, %153 : vector<8x8xf32>
    %cst_89 = arith.constant -1.000000e+04 : f32
    %155 = vector.broadcast %cst_89 : f32 to vector<8x8xf32>
    %156 = arith.select %23, %154, %155 : vector<8x8xi1>, vector<8x8xf32>
    %c3 = arith.constant 3 : index
    %c0_90 = arith.constant 0 : index
    %c0_91 = arith.constant 0 : index
    %157 = vector.load %arg9[%c3, %c0_90, %c0_91] : memref<4x8x1xf32, #tpu.memory_space<vmem>>, vector<1x8x1xf32>
    %158 = vector.shape_cast %157 : vector<1x8x1xf32> to vector<8x1xf32>
    %cst_92 = arith.constant dense<0xFF800000> : vector<8xf32>
    %159 = vector.multi_reduction <maximumf>, %156, %cst_92 [1] : vector<8x8xf32> to vector<8xf32>
    %160 = vector.shape_cast %159 : vector<8xf32> to vector<8x1xf32>
    %161 = arith.maximumf %158, %160 : vector<8x1xf32>
    %162 = arith.subf %158, %161 : vector<8x1xf32>
    %163 = math.exp %162 : vector<8x1xf32>
    %164 = vector.broadcast %161 : vector<8x1xf32> to vector<8x8xf32>
    %165 = arith.subf %156, %164 : vector<8x8xf32>
    %166 = math.exp %165 : vector<8x8xf32>
    %c3_93 = arith.constant 3 : index
    %c0_94 = arith.constant 0 : index
    %c0_95 = arith.constant 0 : index
    %167 = vector.load %arg10[%c3_93, %c0_94, %c0_95] : memref<4x8x1xf32, #tpu.memory_space<vmem>>, vector<1x8x1xf32>
    %168 = vector.shape_cast %167 : vector<1x8x1xf32> to vector<8x1xf32>
    %169 = arith.mulf %163, %168 : vector<8x1xf32>
    %cst_96 = arith.constant dense<0.000000e+00> : vector<8xf32>
    %170 = vector.multi_reduction <add>, %166, %cst_96 [1] : vector<8x8xf32> to vector<8xf32>
    %171 = vector.shape_cast %170 : vector<8xf32> to vector<8x1xf32>
    %172 = arith.addf %169, %171 : vector<8x1xf32>
    %c3_97 = arith.constant 3 : index
    %c0_98 = arith.constant 0 : index
    %c0_99 = arith.constant 0 : index
    %173 = vector.load %arg10[%c3_97, %c0_98, %c0_99] : memref<4x8x1xf32, #tpu.memory_space<vmem>>, vector<1x8x1xf32>
    %174 = vector.shape_cast %173 : vector<1x8x1xf32> to vector<8x1xf32>
    %175 = vector.shape_cast %172 : vector<8x1xf32> to vector<1x8x1xf32>
    tpu.vector_store %arg10[%c3_97, %c0_98, %c0_99], %175 {strides = array<i32>} : memref<4x8x1xf32, #tpu.memory_space<vmem>>, vector<1x8x1xf32>,
    %c3_100 = arith.constant 3 : index
    %c0_101 = arith.constant 0 : index
    %c0_102 = arith.constant 0 : index
    %176 = vector.load %arg11[%c3_100, %c0_101, %c0_102] : memref<4x8x8xf32, #tpu.memory_space<vmem>>, vector<1x8x8xf32>
    %177 = vector.shape_cast %176 : vector<1x8x8xf32> to vector<8x8xf32>
    %178 = vector.broadcast %163 : vector<8x1xf32> to vector<8x8xf32>
    %179 = arith.mulf %178, %177 : vector<8x8xf32>
    %180 = arith.truncf %166 : vector<8x8xf32> to vector<8x8xbf16>
    %181 = vector.extract_strided_slice %29 {offsets = [0, 24], sizes = [8, 8], strides = [1, 1]} : vector<8x32xbf16> to vector<8x8xbf16>
    %cst_103 = arith.constant dense<0.000000e+00> : vector<8x8xf32>
    %182 = tpu.matmul %180, %181, %cst_103 {dimension_numbers = #tpu.dot_dimension_numbers<[1], [0], [0], [1], [0, 0, 1, 1], [], []>} : vector<8x8xbf16>, vector<8x8xbf16>, vector<8x8xf32> -> vector<8x8xf32>
    %183 = arith.addf %179, %182 : vector<8x8xf32>
    %c3_104 = arith.constant 3 : index
    %c0_105 = arith.constant 0 : index
    %c0_106 = arith.constant 0 : index
    %184 = vector.load %arg11[%c3_104, %c0_105, %c0_106] : memref<4x8x8xf32, #tpu.memory_space<vmem>>, vector<1x8x8xf32>
    %185 = vector.shape_cast %184 : vector<1x8x8xf32> to vector<8x8xf32>
    %186 = vector.shape_cast %183 : vector<8x8xf32> to vector<1x8x8xf32>
    tpu.vector_store %arg11[%c3_104, %c0_105, %c0_106], %186 {strides = array<i32>} : memref<4x8x8xf32, #tpu.memory_space<vmem>>, vector<1x8x8xf32>,
    %c3_107 = arith.constant 3 : index
    %c0_108 = arith.constant 0 : index
    %c0_109 = arith.constant 0 : index
    %187 = vector.load %arg9[%c3_107, %c0_108, %c0_109] : memref<4x8x1xf32, #tpu.memory_space<vmem>>, vector<1x8x1xf32>
    %188 = vector.shape_cast %187 : vector<1x8x1xf32> to vector<8x1xf32>
    %189 = vector.shape_cast %161 : vector<8x1xf32> to vector<1x8x1xf32>
    tpu.vector_store %arg9[%c3_107, %c0_108, %c0_109], %189 {strides = array<i32>} : memref<4x8x1xf32, #tpu.memory_space<vmem>>, vector<1x8x1xf32>,
    %c0_i32_110 = arith.constant 0 : i32
    %190 = arith.cmpi eq, %arg2, %c0_i32_110 : i32
    %191 = arith.extui %190 : i1 to i32
    %c0_i32_111 = arith.constant 0 : i32
    %192 = arith.cmpi ne, %191, %c0_i32_111 : i32
    scf.if %192 {
      %c0_112 = arith.constant 0 : index
      %c0_113 = arith.constant 0 : index
      %c0_114 = arith.constant 0 : index
      %193 = vector.load %arg11[%c0_112, %c0_113, %c0_114] : memref<4x8x8xf32, #tpu.memory_space<vmem>>, vector<1x8x8xf32>
      %194 = vector.shape_cast %193 : vector<1x8x8xf32> to vector<8x8xf32>
      %c0_115 = arith.constant 0 : index
      %c0_116 = arith.constant 0 : index
      %c0_117 = arith.constant 0 : index
      %195 = vector.load %arg10[%c0_115, %c0_116, %c0_117] : memref<4x8x1xf32, #tpu.memory_space<vmem>>, vector<1x8x1xf32>
      %196 = vector.shape_cast %195 : vector<1x8x1xf32> to vector<8x1xf32>
      %197 = tpu.reciprocal %196 {approx = true} : vector<8x1xf32> -> vector<8x1xf32>
      %198 = vector.broadcast %197 : vector<8x1xf32> to vector<8x8xf32>
      %199 = arith.mulf %194, %198 : vector<8x8xf32>
      %c1_118 = arith.constant 1 : index
      %c0_119 = arith.constant 0 : index
      %c0_120 = arith.constant 0 : index
      %200 = vector.load %arg11[%c1_118, %c0_119, %c0_120] : memref<4x8x8xf32, #tpu.memory_space<vmem>>, vector<1x8x8xf32>
      %201 = vector.shape_cast %200 : vector<1x8x8xf32> to vector<8x8xf32>
      %c1_121 = arith.constant 1 : index
      %c0_122 = arith.constant 0 : index
      %c0_123 = arith.constant 0 : index
      %202 = vector.load %arg10[%c1_121, %c0_122, %c0_123] : memref<4x8x1xf32, #tpu.memory_space<vmem>>, vector<1x8x1xf32>
      %203 = vector.shape_cast %202 : vector<1x8x1xf32> to vector<8x1xf32>
      %204 = tpu.reciprocal %203 {approx = true} : vector<8x1xf32> -> vector<8x1xf32>
      %205 = vector.broadcast %204 : vector<8x1xf32> to vector<8x8xf32>
      %206 = arith.mulf %201, %205 : vector<8x8xf32>
      %c2_124 = arith.constant 2 : index
      %c0_125 = arith.constant 0 : index
      %c0_126 = arith.constant 0 : index
      %207 = vector.load %arg11[%c2_124, %c0_125, %c0_126] : memref<4x8x8xf32, #tpu.memory_space<vmem>>, vector<1x8x8xf32>
      %208 = vector.shape_cast %207 : vector<1x8x8xf32> to vector<8x8xf32>
      %c2_127 = arith.constant 2 : index
      %c0_128 = arith.constant 0 : index
      %c0_129 = arith.constant 0 : index
      %209 = vector.load %arg10[%c2_127, %c0_128, %c0_129] : memref<4x8x1xf32, #tpu.memory_space<vmem>>, vector<1x8x1xf32>
      %210 = vector.shape_cast %209 : vector<1x8x1xf32> to vector<8x1xf32>
      %211 = tpu.reciprocal %210 {approx = true} : vector<8x1xf32> -> vector<8x1xf32>
      %212 = vector.broadcast %211 : vector<8x1xf32> to vector<8x8xf32>
      %213 = arith.mulf %208, %212 : vector<8x8xf32>
      %c3_130 = arith.constant 3 : index
      %c0_131 = arith.constant 0 : index
      %c0_132 = arith.constant 0 : index
      %214 = vector.load %arg11[%c3_130, %c0_131, %c0_132] : memref<4x8x8xf32, #tpu.memory_space<vmem>>, vector<1x8x8xf32>
      %215 = vector.shape_cast %214 : vector<1x8x8xf32> to vector<8x8xf32>
      %c3_133 = arith.constant 3 : index
      %c0_134 = arith.constant 0 : index
      %c0_135 = arith.constant 0 : index
      %216 = vector.load %arg10[%c3_133, %c0_134, %c0_135] : memref<4x8x1xf32, #tpu.memory_space<vmem>>, vector<1x8x1xf32>
      %217 = vector.shape_cast %216 : vector<1x8x1xf32> to vector<8x1xf32>
      %218 = tpu.reciprocal %217 {approx = true} : vector<8x1xf32> -> vector<8x1xf32>
      %219 = vector.broadcast %218 : vector<8x1xf32> to vector<8x8xf32>
      %220 = arith.mulf %215, %219 : vector<8x8xf32>
      %221 = tpu.concatenate %199, %206, %213, %220 in 1 : vector<8x8xf32>, vector<8x8xf32>, vector<8x8xf32>, vector<8x8xf32> -> vector<8x32xf32>
      %222 = arith.truncf %221 : vector<8x32xf32> to vector<8x32xbf16>
      %c0_136 = arith.constant 0 : index
      %c0_137 = arith.constant 0 : index
      %c0_138 = arith.constant 0 : index
      %223 = vector.load %arg8[%c0_136, %c0_137, %c0_138] : memref<1x8x32xbf16, #tpu.memory_space<vmem>>, vector<1x8x32xbf16>
      %224 = vector.shape_cast %223 : vector<1x8x32xbf16> to vector<8x32xbf16>
      %225 = vector.shape_cast %222 : vector<8x32xbf16> to vector<1x8x32xbf16>
      tpu.vector_store %arg8[%c0_136, %c0_137, %c0_138], %225 {strides = array<i32>} : memref<1x8x32xbf16, #tpu.memory_space<vmem>>, vector<1x8x32xbf16>,
    } else {
    }
    return
  }
  func.func @transform_0(%arg0: i32, %arg1: i32, %arg2: i32) -> (i32, i32, i32) {
    %c0_i32 = arith.constant 0 : i32
    %c0_i32_0 = arith.constant 0 : i32
    return %arg0, %arg1, %c0_i32 : i32, i32, i32
  }
  func.func @transform_1(%arg0: i32, %arg1: i32, %arg2: i32) -> (i32, i32, i32) {
    %c0_i32 = arith.constant 0 : i32
    %c0_i32_0 = arith.constant 0 : i32
    return %arg0, %c0_i32, %arg2 : i32, i32, i32
  }
  func.func @transform_2(%arg0: i32, %arg1: i32, %arg2: i32) -> (i32, i32, i32) {
    %c0_i32 = arith.constant 0 : i32
    %c0_i32_0 = arith.constant 0 : i32
    return %arg0, %arg1, %c0_i32 : i32, i32, i32
  }
  func.func @transform_3(%arg0: i32, %arg1: i32, %arg2: i32) -> (i32, i32, i32) {
    %c0_i32 = arith.constant 0 : i32
    %c0_i32_0 = arith.constant 0 : i32
    return %arg0, %arg2, %c0_i32 : i32, i32, i32
  }
  func.func @transform_4(%arg0: i32, %arg1: i32, %arg2: i32) -> (i32, i32, i32) {
    %c0_i32 = arith.constant 0 : i32
    %c0_i32_0 = arith.constant 0 : i32
    return %arg0, %arg2, %c0_i32 : i32, i32, i32
  }
  func.func @transform_5(%arg0: i32, %arg1: i32, %arg2: i32) -> (i32, i32, i32) {
    %c0_i32 = arith.constant 0 : i32
    %c0_i32_0 = arith.constant 0 : i32
    return %arg0, %arg1, %c0_i32 : i32, i32, i32
  }
}

module attributes {stable_mosaic.version = 11 : i64} {
  func.func @_linear_kernel(%arg0: i32, %arg1: i32, %arg2: i32, %arg3: memref<16x32xbf16, #tpu.memory_space<vmem>>, %arg4: memref<32x64xbf16, #tpu.memory_space<vmem>>, %arg5: memref<1x64xf32, #tpu.memory_space<vmem>>, %arg6: memref<16x64xbf16, #tpu.memory_space<vmem>>, %arg7: memref<16x64xf32, #tpu.memory_space<vmem>>) attributes {dimension_semantics = [#tpu.dimension_semantics<parallel>, #tpu.dimension_semantics<parallel>, #tpu.dimension_semantics<arbitrary>], iteration_bounds = array<i64: 1, 1, 1>, scalar_prefetch = 0 : i64, scratch_operands = 1 : i64, tpu.core_type = #tpu.core_type<tc>, window_params = [{transform_indices = @transform_0, window_bounds = array<i64: 16, 32>}, {transform_indices = @transform_1, window_bounds = array<i64: 32, 64>}, {transform_indices = @transform_2, window_bounds = array<i64: 1, 64>}, {transform_indices = @transform_3, window_bounds = array<i64: 16, 64>}]} {
    %c0_i32 = arith.constant 0 : i32
    %0 = arith.cmpi eq, %arg2, %c0_i32 : i32
    %1 = arith.extui %0 : i1 to i32
    %c0_i32_0 = arith.constant 0 : i32
    %2 = arith.cmpi ne, %1, %c0_i32_0 : i32
    scf.if %2 {
      %cst_10 = arith.constant 0.000000e+00 : f32
      %12 = vector.broadcast %cst_10 : f32 to vector<16x64xf32>
      %c0_11 = arith.constant 0 : index
      %c0_12 = arith.constant 0 : index
      %13 = vector.load %arg7[%c0_11, %c0_12] : memref<16x64xf32, #tpu.memory_space<vmem>>, vector<16x64xf32>
      tpu.vector_store %arg7[%c0_11, %c0_12], %12 {strides = array<i32>} : memref<16x64xf32, #tpu.memory_space<vmem>>, vector<16x64xf32>,
    } else {
    }
    %c0 = arith.constant 0 : index
    %c0_1 = arith.constant 0 : index
    %3 = vector.load %arg7[%c0, %c0_1] : memref<16x64xf32, #tpu.memory_space<vmem>>, vector<16x64xf32>
    %c0_2 = arith.constant 0 : index
    %c0_3 = arith.constant 0 : index
    %4 = vector.load %arg3[%c0_2, %c0_3] : memref<16x32xbf16, #tpu.memory_space<vmem>>, vector<16x32xbf16>
    %c0_4 = arith.constant 0 : index
    %c0_5 = arith.constant 0 : index
    %5 = vector.load %arg4[%c0_4, %c0_5] : memref<32x64xbf16, #tpu.memory_space<vmem>>, vector<32x64xbf16>
    %cst = arith.constant dense<0.000000e+00> : vector<16x64xf32>
    %6 = tpu.matmul %4, %5, %cst {dimension_numbers = #tpu.dot_dimension_numbers<[1], [0], [0], [1], [0, 0, 1, 1], [], []>} : vector<16x32xbf16>, vector<32x64xbf16>, vector<16x64xf32> -> vector<16x64xf32>
    %7 = arith.addf %3, %6 : vector<16x64xf32>
    %c0_6 = arith.constant 0 : index
    %c0_7 = arith.constant 0 : index
    %8 = vector.load %arg7[%c0_6, %c0_7] : memref<16x64xf32, #tpu.memory_space<vmem>>, vector<16x64xf32>
    tpu.vector_store %arg7[%c0_6, %c0_7], %7 {strides = array<i32>} : memref<16x64xf32, #tpu.memory_space<vmem>>, vector<16x64xf32>,
    %c0_i32_8 = arith.constant 0 : i32
    %9 = arith.cmpi eq, %arg2, %c0_i32_8 : i32
    %10 = arith.extui %9 : i1 to i32
    %c0_i32_9 = arith.constant 0 : i32
    %11 = arith.cmpi ne, %10, %c0_i32_9 : i32
    scf.if %11 {
      %c0_10 = arith.constant 0 : index
      %c0_11 = arith.constant 0 : index
      %12 = vector.load %arg7[%c0_10, %c0_11] : memref<16x64xf32, #tpu.memory_space<vmem>>, vector<16x64xf32>
      %c0_12 = arith.constant 0 : index
      %c0_13 = arith.constant 0 : index
      %13 = vector.load %arg5[%c0_12, %c0_13] : memref<1x64xf32, #tpu.memory_space<vmem>>, vector<1x64xf32>
      %14 = vector.broadcast %13 : vector<1x64xf32> to vector<16x64xf32>
      %15 = arith.addf %12, %14 : vector<16x64xf32>
      %16 = arith.truncf %15 : vector<16x64xf32> to vector<16x64xbf16>
      %c0_14 = arith.constant 0 : index
      %c0_15 = arith.constant 0 : index
      %17 = vector.load %arg6[%c0_14, %c0_15] : memref<16x64xbf16, #tpu.memory_space<vmem>>, vector<16x64xbf16>
      tpu.vector_store %arg6[%c0_14, %c0_15], %16 {strides = array<i32>} : memref<16x64xbf16, #tpu.memory_space<vmem>>, vector<16x64xbf16>,
    } else {
    }
    return
  }
  func.func @transform_0(%arg0: i32, %arg1: i32, %arg2: i32) -> (i32, i32) {
    %c0_i32 = arith.constant 0 : i32
    return %arg0, %arg2 : i32, i32
  }
  func.func @transform_1(%arg0: i32, %arg1: i32, %arg2: i32) -> (i32, i32) {
    %c0_i32 = arith.constant 0 : i32
    return %arg2, %arg1 : i32, i32
  }
  func.func @transform_2(%arg0: i32, %arg1: i32, %arg2: i32) -> (i32, i32) {
    %c0_i32 = arith.constant 0 : i32
    %c0_i32_0 = arith.constant 0 : i32
    return %c0_i32, %arg1 : i32, i32
  }
  func.func @transform_3(%arg0: i32, %arg1: i32, %arg2: i32) -> (i32, i32) {
    %c0_i32 = arith.constant 0 : i32
    return %arg0, %arg1 : i32, i32
  }
}

module attributes {stable_mosaic.version = 11 : i64} {
  func.func @_linear_kernel(%arg0: i32, %arg1: i32, %arg2: i32, %arg3: memref<16x32xbf16, #tpu.memory_space<vmem>>, %arg4: memref<32x32xbf16, #tpu.memory_space<vmem>>, %arg5: memref<1x32xf32, #tpu.memory_space<vmem>>, %arg6: memref<16x32xbf16, #tpu.memory_space<vmem>>, %arg7: memref<16x32xf32, #tpu.memory_space<vmem>>) attributes {dimension_semantics = [#tpu.dimension_semantics<parallel>, #tpu.dimension_semantics<parallel>, #tpu.dimension_semantics<arbitrary>], iteration_bounds = array<i64: 1, 1, 1>, scalar_prefetch = 0 : i64, scratch_operands = 1 : i64, tpu.core_type = #tpu.core_type<tc>, window_params = [{transform_indices = @transform_0, window_bounds = array<i64: 16, 32>}, {transform_indices = @transform_1, window_bounds = array<i64: 32, 32>}, {transform_indices = @transform_2, window_bounds = array<i64: 1, 32>}, {transform_indices = @transform_3, window_bounds = array<i64: 16, 32>}]} {
    %c0_i32 = arith.constant 0 : i32
    %0 = arith.cmpi eq, %arg2, %c0_i32 : i32
    %1 = arith.extui %0 : i1 to i32
    %c0_i32_0 = arith.constant 0 : i32
    %2 = arith.cmpi ne, %1, %c0_i32_0 : i32
    scf.if %2 {
      %cst_10 = arith.constant 0.000000e+00 : f32
      %12 = vector.broadcast %cst_10 : f32 to vector<16x32xf32>
      %c0_11 = arith.constant 0 : index
      %c0_12 = arith.constant 0 : index
      %13 = vector.load %arg7[%c0_11, %c0_12] : memref<16x32xf32, #tpu.memory_space<vmem>>, vector<16x32xf32>
      tpu.vector_store %arg7[%c0_11, %c0_12], %12 {strides = array<i32>} : memref<16x32xf32, #tpu.memory_space<vmem>>, vector<16x32xf32>,
    } else {
    }
    %c0 = arith.constant 0 : index
    %c0_1 = arith.constant 0 : index
    %3 = vector.load %arg7[%c0, %c0_1] : memref<16x32xf32, #tpu.memory_space<vmem>>, vector<16x32xf32>
    %c0_2 = arith.constant 0 : index
    %c0_3 = arith.constant 0 : index
    %4 = vector.load %arg3[%c0_2, %c0_3] : memref<16x32xbf16, #tpu.memory_space<vmem>>, vector<16x32xbf16>
    %c0_4 = arith.constant 0 : index
    %c0_5 = arith.constant 0 : index
    %5 = vector.load %arg4[%c0_4, %c0_5] : memref<32x32xbf16, #tpu.memory_space<vmem>>, vector<32x32xbf16>
    %cst = arith.constant dense<0.000000e+00> : vector<16x32xf32>
    %6 = tpu.matmul %4, %5, %cst {dimension_numbers = #tpu.dot_dimension_numbers<[1], [0], [0], [1], [0, 0, 1, 1], [], []>} : vector<16x32xbf16>, vector<32x32xbf16>, vector<16x32xf32> -> vector<16x32xf32>
    %7 = arith.addf %3, %6 : vector<16x32xf32>
    %c0_6 = arith.constant 0 : index
    %c0_7 = arith.constant 0 : index
    %8 = vector.load %arg7[%c0_6, %c0_7] : memref<16x32xf32, #tpu.memory_space<vmem>>, vector<16x32xf32>
    tpu.vector_store %arg7[%c0_6, %c0_7], %7 {strides = array<i32>} : memref<16x32xf32, #tpu.memory_space<vmem>>, vector<16x32xf32>,
    %c0_i32_8 = arith.constant 0 : i32
    %9 = arith.cmpi eq, %arg2, %c0_i32_8 : i32
    %10 = arith.extui %9 : i1 to i32
    %c0_i32_9 = arith.constant 0 : i32
    %11 = arith.cmpi ne, %10, %c0_i32_9 : i32
    scf.if %11 {
      %c0_10 = arith.constant 0 : index
      %c0_11 = arith.constant 0 : index
      %12 = vector.load %arg7[%c0_10, %c0_11] : memref<16x32xf32, #tpu.memory_space<vmem>>, vector<16x32xf32>
      %c0_12 = arith.constant 0 : index
      %c0_13 = arith.constant 0 : index
      %13 = vector.load %arg5[%c0_12, %c0_13] : memref<1x32xf32, #tpu.memory_space<vmem>>, vector<1x32xf32>
      %14 = vector.broadcast %13 : vector<1x32xf32> to vector<16x32xf32>
      %15 = arith.addf %12, %14 : vector<16x32xf32>
      %16 = arith.truncf %15 : vector<16x32xf32> to vector<16x32xbf16>
      %c0_14 = arith.constant 0 : index
      %c0_15 = arith.constant 0 : index
      %17 = vector.load %arg6[%c0_14, %c0_15] : memref<16x32xbf16, #tpu.memory_space<vmem>>, vector<16x32xbf16>
      tpu.vector_store %arg6[%c0_14, %c0_15], %16 {strides = array<i32>} : memref<16x32xbf16, #tpu.memory_space<vmem>>, vector<16x32xbf16>,
    } else {
    }
    return
  }
  func.func @transform_0(%arg0: i32, %arg1: i32, %arg2: i32) -> (i32, i32) {
    %c0_i32 = arith.constant 0 : i32
    return %arg0, %arg2 : i32, i32
  }
  func.func @transform_1(%arg0: i32, %arg1: i32, %arg2: i32) -> (i32, i32) {
    %c0_i32 = arith.constant 0 : i32
    return %arg2, %arg1 : i32, i32
  }
  func.func @transform_2(%arg0: i32, %arg1: i32, %arg2: i32) -> (i32, i32) {
    %c0_i32 = arith.constant 0 : i32
    %c0_i32_0 = arith.constant 0 : i32
    return %c0_i32, %arg1 : i32, i32
  }
  func.func @transform_3(%arg0: i32, %arg1: i32, %arg2: i32) -> (i32, i32) {
    %c0_i32 = arith.constant 0 : i32
    return %arg0, %arg1 : i32, i32
  }
}

module attributes {stable_mosaic.version = 11 : i64} {
  func.func @_linear_kernel(%arg0: i32, %arg1: i32, %arg2: i32, %arg3: memref<16x32xbf16, #tpu.memory_space<vmem>>, %arg4: memref<32x128xbf16, #tpu.memory_space<vmem>>, %arg5: memref<1x128xf32, #tpu.memory_space<vmem>>, %arg6: memref<16x128xf32, #tpu.memory_space<vmem>>, %arg7: memref<16x128xf32, #tpu.memory_space<vmem>>) attributes {dimension_semantics = [#tpu.dimension_semantics<parallel>, #tpu.dimension_semantics<parallel>, #tpu.dimension_semantics<arbitrary>], iteration_bounds = array<i64: 1, 1, 1>, scalar_prefetch = 0 : i64, scratch_operands = 1 : i64, tpu.core_type = #tpu.core_type<tc>, window_params = [{transform_indices = @transform_0, window_bounds = array<i64: 16, 32>}, {transform_indices = @transform_1, window_bounds = array<i64: 32, 128>}, {transform_indices = @transform_2, window_bounds = array<i64: 1, 128>}, {transform_indices = @transform_3, window_bounds = array<i64: 16, 128>}]} {
    %c0_i32 = arith.constant 0 : i32
    %0 = arith.cmpi eq, %arg2, %c0_i32 : i32
    %1 = arith.extui %0 : i1 to i32
    %c0_i32_0 = arith.constant 0 : i32
    %2 = arith.cmpi ne, %1, %c0_i32_0 : i32
    scf.if %2 {
      %cst_10 = arith.constant 0.000000e+00 : f32
      %12 = vector.broadcast %cst_10 : f32 to vector<16x128xf32>
      %c0_11 = arith.constant 0 : index
      %c0_12 = arith.constant 0 : index
      %13 = vector.load %arg7[%c0_11, %c0_12] : memref<16x128xf32, #tpu.memory_space<vmem>>, vector<16x128xf32>
      tpu.vector_store %arg7[%c0_11, %c0_12], %12 {strides = array<i32>} : memref<16x128xf32, #tpu.memory_space<vmem>>, vector<16x128xf32>,
    } else {
    }
    %c0 = arith.constant 0 : index
    %c0_1 = arith.constant 0 : index
    %3 = vector.load %arg7[%c0, %c0_1] : memref<16x128xf32, #tpu.memory_space<vmem>>, vector<16x128xf32>
    %c0_2 = arith.constant 0 : index
    %c0_3 = arith.constant 0 : index
    %4 = vector.load %arg3[%c0_2, %c0_3] : memref<16x32xbf16, #tpu.memory_space<vmem>>, vector<16x32xbf16>
    %c0_4 = arith.constant 0 : index
    %c0_5 = arith.constant 0 : index
    %5 = vector.load %arg4[%c0_4, %c0_5] : memref<32x128xbf16, #tpu.memory_space<vmem>>, vector<32x128xbf16>
    %cst = arith.constant dense<0.000000e+00> : vector<16x128xf32>
    %6 = tpu.matmul %4, %5, %cst {dimension_numbers = #tpu.dot_dimension_numbers<[1], [0], [0], [1], [0, 0, 1, 1], [], []>} : vector<16x32xbf16>, vector<32x128xbf16>, vector<16x128xf32> -> vector<16x128xf32>
    %7 = arith.addf %3, %6 : vector<16x128xf32>
    %c0_6 = arith.constant 0 : index
    %c0_7 = arith.constant 0 : index
    %8 = vector.load %arg7[%c0_6, %c0_7] : memref<16x128xf32, #tpu.memory_space<vmem>>, vector<16x128xf32>
    tpu.vector_store %arg7[%c0_6, %c0_7], %7 {strides = array<i32>} : memref<16x128xf32, #tpu.memory_space<vmem>>, vector<16x128xf32>,
    %c0_i32_8 = arith.constant 0 : i32
    %9 = arith.cmpi eq, %arg2, %c0_i32_8 : i32
    %10 = arith.extui %9 : i1 to i32
    %c0_i32_9 = arith.constant 0 : i32
    %11 = arith.cmpi ne, %10, %c0_i32_9 : i32
    scf.if %11 {
      %c0_10 = arith.constant 0 : index
      %c0_11 = arith.constant 0 : index
      %12 = vector.load %arg7[%c0_10, %c0_11] : memref<16x128xf32, #tpu.memory_space<vmem>>, vector<16x128xf32>
      %c0_12 = arith.constant 0 : index
      %c0_13 = arith.constant 0 : index
      %13 = vector.load %arg5[%c0_12, %c0_13] : memref<1x128xf32, #tpu.memory_space<vmem>>, vector<1x128xf32>
      %14 = vector.broadcast %13 : vector<1x128xf32> to vector<16x128xf32>
      %15 = arith.addf %12, %14 : vector<16x128xf32>
      %c0_14 = arith.constant 0 : index
      %c0_15 = arith.constant 0 : index
      %16 = vector.load %arg6[%c0_14, %c0_15] : memref<16x128xf32, #tpu.memory_space<vmem>>, vector<16x128xf32>
      tpu.vector_store %arg6[%c0_14, %c0_15], %15 {strides = array<i32>} : memref<16x128xf32, #tpu.memory_space<vmem>>, vector<16x128xf32>,
    } else {
    }
    return
  }
  func.func @transform_0(%arg0: i32, %arg1: i32, %arg2: i32) -> (i32, i32) {
    %c0_i32 = arith.constant 0 : i32
    return %arg0, %arg2 : i32, i32
  }
  func.func @transform_1(%arg0: i32, %arg1: i32, %arg2: i32) -> (i32, i32) {
    %c0_i32 = arith.constant 0 : i32
    return %arg2, %arg1 : i32, i32
  }
  func.func @transform_2(%arg0: i32, %arg1: i32, %arg2: i32) -> (i32, i32) {
    %c0_i32 = arith.constant 0 : i32
    %c0_i32_0 = arith.constant 0 : i32
    return %c0_i32, %arg1 : i32, i32
  }
  func.func @transform_3(%arg0: i32, %arg1: i32, %arg2: i32) -> (i32, i32) {
    %c0_i32 = arith.constant 0 : i32
    return %arg0, %arg1 : i32, i32
  }
}

</mosaic_0001>

<bundles_post_ra>
// kernel: transformer_forward.32
= control target key start
LH: loop header
LB: loop body
LE: loop exit
PB: predicated region body
PF: predicated region fallthrough
CT: control target
= control target key end

     0   :  { %vm19_vm0 = vcmask 523264   ;;  %v153_v0 = vmov 0.0   ;;  %vm154_vm1 = vmmov 0   ;;  %vm47_vm2 = vcmask 261120   ;;  %s197_s1 = inlined_call_operand.vmem [shape: bf16[32,64], index: 1, kind: input, shape index: {}]   ;;  %s198_s0 = inlined_call_operand.vmem [shape: bf16[16,32], index: 0, kind: input, shape index: {}]   ;;  %s199_s2 = inlined_call_operand.vmem [shape: f32[1,64], index: 2, kind: input, shape index: {}]   ;;  %s200_s3 = inlined_call_operand.vmem [shape: bf16[16,64], index: 3, kind: output, shape index: {}]  }
   0x1   :  { %140 = vmatprep.subr.bf16.mxu0 %v153_v0  ;;  %v150_v1 = vld [vmem:[%s197_s1 + $0x8] sm:$0xff]   ;;  %144 = vmatprep.mubr.msk.bf16.mxu0 %vm154_vm1, %v153_v0  ;;  %20 = vst.msk [vmem:[#allocation2] sm:$0xff] %vm19_vm0, %v153_v0  ;;  %21 = vst.msk [vmem:[#allocation2 + $0x8] sm:$0xff] %vm19_vm0, %v153_v0  ;;  %v151_v2 = vld [vmem:[%s197_s1] sm:$0xff]   ;;  %vm121_vm3 = vcmask 519168  }
   0x2   :  { %141 = vmatpush3.bf16.msra.mxu0 %v150_v1  ;;  %v152_v3 = vld [vmem:[%s198_s0] sm:$0xff]  }
   0x3   :  { %142 = vmatprep.subr.bf16.mxu0 %v153_v0  ;;  %v132_v12 = vld [vmem:[%s199_s2] ss:$0 sm:$0xff] }
   0x6   :  { %143 = vmatpush3.bf16.msra.mxu0 %v151_v2 }
   0x8   :  { %v22_v4 = vld [vmem:[#allocation2] sm:$0xff]  ;;  %v23_v8 = vld [vmem:[#allocation2 + $0x8] sm:$0xff] }
   0x9   :  { %145 = vmatmul.mubr.msk.bf16.vlgmr.msra.gmra.mxu0 %vm47_vm2, %v152_v3 }
  0xc9   :  { %v85_v5 = vpop.f32.mrf.mxu0 }
  0xca   :  { %v92_v6 = vadd.f32 %v85_v5, %v22_v4 }
  0xcb   :  { %v146_v7 = vpop.f32.mrf.mxu0 }
  0xcc   :  { %95 = vst.msk [vmem:[#allocation2] sm:$0xff] %vm19_vm0, %v92_v6 }
  0xcd   :  { %v88_v9 = vpop.f32.mrf.mxu0 }
  0xce   :  { %v93_v10 = vadd.f32 %v88_v9, %v23_v8 }
  0xcf   :  { %v147_v11 = vpop.f32.mrf.mxu0 }
  0xd0   :  { %96 = vst.msk [vmem:[#allocation2 + $0x8] sm:$0xff] %vm19_vm0, %v93_v10 }
  0xd3   :  { %v100_v13 = vld [vmem:[#allocation2] sm:$0xff] }
  0xd4   :  { %v109_v14 = vadd.f32 %v132_v12, %v100_v13 }
  0xd6   :  { %v111_v15 = vmax.f32 %v109_v14, 0.0 }
  0xd7   :  { %v101_v16 = vld [vmem:[#allocation2 + $0x8] sm:$0xff] }
  0xd8   :  { %v135_v17 = vpack.c.bf16 %v111_v15, %v111_v15  ;;  %v110_v18 = vadd.f32 %v132_v12, %v101_v16 }
  0xda   :  { %122 = vst.msk [vmem:[%s200_s3] sm:$0xf] %vm121_vm3, %v135_v17  ;;  %v112_v19 = vmax.f32 %v110_v18, 0.0 }
  0xdc   :  { %v136_v20 = vpack.c.bf16 %v112_v19, %v112_v19 }
  0xde   :  { %123 = vst.msk [vmem:[%s200_s3 + $0x4] sm:$0xf] %vm121_vm3, %v136_v20 }

// kernel: transformer_forward.31
= control target key start
LH: loop header
LB: loop body
LE: loop exit
PB: predicated region body
PF: predicated region fallthrough
CT: control target
= control target key end

     0   :  { %vm28_vm0 = vcmask 261120   ;;  %v220_v0 = vmov 0.0   ;;  %vm221_vm1 = vmmov 0   ;;  %vm178_vm2 = vcmask 257024   ;;  %s293_s1 = inlined_call_operand.vmem [shape: bf16[32,32], index: 1, kind: input, shape index: {}]   ;;  %s294_s0 = inlined_call_operand.vmem [shape: bf16[16,32], index: 0, kind: input, shape index: {}]   ;;  %s295_s3 = inlined_call_operand.vmem [shape: bf16[16,32], index: 3, kind: input, shape index: {}]   ;;  %s296_s2 = inlined_call_operand.vmem [shape: f32[1,32], index: 2, kind: input, shape index: {}]   ;;  %s297_s4 = inlined_call_operand.vmem [shape: f32[1,32], index: 4, kind: input, shape index: {}]   ;;  %s298_s5 = inlined_call_operand.vmem [shape: f32[1,32], index: 5, kind: input, shape index: {}]   ;;  %s299_s6 = inlined_call_operand.vmem [shape: bf16[16,32], index: 6, kind: output, shape index: {}]  }
   0x1   :  { %203 = vmatprep.subr.bf16.mxu0 %v220_v0  ;;  %v213_v1 = vld [vmem:[%s293_s1 + $0x8] sm:$0xff]   ;;  %207 = vmatprep.mubr.msk.bf16.mxu0 %vm221_vm1, %v220_v0  ;;  %29 = vst.msk [vmem:[#allocation2] sm:$0xff] %vm28_vm0, %v220_v0  ;;  %30 = vst.msk [vmem:[#allocation2 + $0x8] sm:$0xff] %vm28_vm0, %v220_v0  ;;  %v214_v2 = vld [vmem:[%s293_s1] sm:$0xff]  }
   0x2   :  { %204 = vmatpush3.bf16.msra.mxu0 %v213_v1  ;;  %v215_v3 = vld [vmem:[%s294_s0] sm:$0xff]  }
   0x3   :  { %205 = vmatprep.subr.bf16.mxu0 %v220_v0  ;;  %v197_v12 = vld [vmem:[%s295_s3] sm:$0xff]  }
   0x4   :  { %v189_v13 = vld [vmem:[%s296_s2] ss:$0 sm:$0xff]  ;;  %v198_v14 = vunpack.c.l.bf16 %v197_v12  ;;  %v199_v18 = vunpack.c.h.bf16 %v197_v12 }
   0x5   :  { %v190_v41 = vld [vmem:[%s297_s4] ss:$0 sm:$0xff] }
   0x6   :  { %206 = vmatpush3.bf16.msra.mxu0 %v214_v2  ;;  %v191_v43 = vld [vmem:[%s298_s5] ss:$0 sm:$0xff] }
   0x8   :  { %v31_v4 = vld [vmem:[#allocation2] sm:$0xff]  ;;  %v32_v8 = vld [vmem:[#allocation2 + $0x8] sm:$0xff] }
   0x9   :  { %208 = vmatmul.mubr.msk.bf16.vlgmr.msra.gmra.mxu0 %vm28_vm0, %v215_v3 }
  0xc9   :  { %v94_v5 = vpop.f32.mrf.mxu0 }
  0xca   :  { %v101_v6 = vadd.f32 %v94_v5, %v31_v4 }
  0xcb   :  { %v209_v7 = vpop.f32.mrf.mxu0 }
  0xcc   :  { %103 = vst.msk [vmem:[#allocation2] sm:$0xff] %vm28_vm0, %v101_v6 }
  0xcd   :  { %v97_v9 = vpop.f32.mrf.mxu0 }
  0xce   :  { %v102_v10 = vadd.f32 %v97_v9, %v32_v8 }
  0xcf   :  { %v210_v11 = vpop.f32.mrf.mxu0 }
  0xd0   :  { %104 = vst.msk [vmem:[#allocation2 + $0x8] sm:$0xff] %vm28_vm0, %v102_v10 }
  0xd3   :  { %v108_v15 = vld [vmem:[#allocation2] sm:$0xff] }
  0xd4   :  { %v117_v16 = vadd.f32 %v189_v13, %v108_v15 }
  0xd6   :  { %v123_v17 = vadd.f32 %v198_v14, %v117_v16 }
  0xd7   :  { %v109_v19 = vld [vmem:[#allocation2 + $0x8] sm:$0xff] }
  0xd8   :  { %v125_v20 = vsel %vm28_vm0, %v123_v17, 0.0  ;;  %v118_v21 = vadd.f32 %v189_v13, %v109_v19 }
  0xd9   :  { %126 = vadd.xlane.f32.xlu0 %v125_v20 }
  0xda   :  { %v124_v22 = vadd.f32 %v199_v18, %v118_v21 }
  0xdc   :  { %v128_v23 = vsel %vm28_vm0, %v124_v22, 0.0 }
  0xdd   :  { %129 = vadd.xlane.f32.xlu0 %v128_v23 }
 0x162   :  { %v127_v24 = vpop.xlane.xlu0 %126 }
 0x163   :  { %v132_v25 = vmul.f32 0.03125, %v127_v24 }
 0x165   :  { %v134_v26 = vsub.f32 %v123_v17, %v132_v25 }
 0x166   :  { %v130_v27 = vpop.xlane.xlu0 %129 }
 0x167   :  { %v133_v28 = vmul.f32 0.03125, %v130_v27  ;;  %v136_v29 = vmul.f32 %v134_v26, %v134_v26 }
 0x169   :  { %v135_v30 = vsub.f32 %v124_v22, %v133_v28  ;;  %v138_v31 = vsel %vm28_vm0, %v136_v29, 0.0 }
 0x16a   :  { %139 = vadd.xlane.f32.xlu1 %v138_v31 }
 0x16b   :  { %v137_v32 = vmul.f32 %v135_v30, %v135_v30 }
 0x16d   :  { %v141_v33 = vsel %vm28_vm0, %v137_v32, 0.0 }
 0x16e   :  { %142 = vadd.xlane.f32.xlu1 %v141_v33 }
 0x1f3   :  { %v140_v34 = vpop.xlane.xlu1 %139 }
 0x1f4   :  { %v144_v35 = vmul.f32 0.03125, %v140_v34 }
 0x1f6   :  { %v146_v36 = vadd.f32 1e-12, %v144_v35 }
 0x1f7   :  { %v143_v37 = vpop.xlane.xlu1 %142 }
 0x1f8   :  { %216 = vrsqrt.f32 %v146_v36  ;;  %v145_v38 = vmul.f32 0.03125, %v143_v37 }
 0x1fa   :  { %v147_v39 = vadd.f32 1e-12, %v145_v38 }
 0x1fc   :  { %218 = vrsqrt.f32 %v147_v39 }
 0x205   :  { %v217_v40 = vpop.eup %216 }
 0x206   :  { %v150_v42 = vmul.f32 %v217_v40, %v134_v26 }
 0x208   :  { %v159_v44 = vmul.f32 %v190_v41, %v150_v42 }
 0x209   :  { %v219_v45 = vpop.eup %218 }
 0x20a   :  { %v168_v46 = vadd.f32 %v191_v43, %v159_v44  ;;  %v151_v47 = vmul.f32 %v219_v45, %v135_v30 }
 0x20c   :  { %v194_v48 = vpack.c.bf16 %v168_v46, %v168_v46  ;;  %v160_v49 = vmul.f32 %v190_v41, %v151_v47 }
 0x20e   :  { %179 = vst.msk [vmem:[%s299_s6] sm:$0xf] %vm178_vm2, %v194_v48  ;;  %v169_v50 = vadd.f32 %v191_v43, %v160_v49 }
 0x210   :  { %v195_v51 = vpack.c.bf16 %v169_v50, %v169_v50 }
 0x212   :  { %180 = vst.msk [vmem:[%s299_s6 + $0x4] sm:$0xf] %vm178_vm2, %v195_v51 }

// kernel: transformer_forward.29
= control target key start
LH: loop header
LB: loop body
LE: loop exit
PB: predicated region body
PF: predicated region fallthrough
CT: control target
= control target key end

     0   :  { %vm19_vm0 = vcmask 785408   ;;  %v151_v0 = vmov 0.0   ;;  %vm152_vm1 = vmmov 0   ;;  %vm47_vm2 = vcmask 261120   ;;  %s195_s1 = inlined_call_operand.vmem [shape: bf16[32,96], index: 1, kind: input, shape index: {}]   ;;  %s196_s0 = inlined_call_operand.vmem [shape: bf16[16,32], index: 0, kind: input, shape index: {}]   ;;  %s197_s2 = inlined_call_operand.vmem [shape: f32[1,96], index: 2, kind: input, shape index: {}]   ;;  %s198_s3 = inlined_call_operand.vmem [shape: bf16[16,96], index: 3, kind: output, shape index: {}]  }
   0x1   :  { %138 = vmatprep.subr.bf16.mxu0 %v151_v0  ;;  %v148_v1 = vld [vmem:[%s195_s1 + $0x8] sm:$0xff]   ;;  %142 = vmatprep.mubr.msk.bf16.mxu0 %vm152_vm1, %v151_v0  ;;  %20 = vst.msk [vmem:[#allocation2] sm:$0xff] %vm19_vm0, %v151_v0  ;;  %21 = vst.msk [vmem:[#allocation2 + $0x8] sm:$0xff] %vm19_vm0, %v151_v0  ;;  %v149_v2 = vld [vmem:[%s195_s1] sm:$0xff]   ;;  %vm119_vm3 = vcmask 781312  }
   0x2   :  { %139 = vmatpush3.bf16.msra.mxu0 %v148_v1  ;;  %v150_v3 = vld [vmem:[%s196_s0] sm:$0xff]  }
   0x3   :  { %140 = vmatprep.subr.bf16.mxu0 %v151_v0  ;;  %v130_v12 = vld [vmem:[%s197_s2] ss:$0 sm:$0xff] }
   0x6   :  { %141 = vmatpush3.bf16.msra.mxu0 %v149_v2 }
   0x8   :  { %v22_v4 = vld [vmem:[#allocation2] sm:$0xff]  ;;  %v23_v8 = vld [vmem:[#allocation2 + $0x8] sm:$0xff] }
   0x9   :  { %143 = vmatmul.mubr.msk.bf16.vlgmr.msra.gmra.mxu0 %vm47_vm2, %v150_v3 }
  0xc9   :  { %v85_v5 = vpop.f32.mrf.mxu0 }
  0xca   :  { %v92_v6 = vadd.f32 %v85_v5, %v22_v4 }
  0xcb   :  { %v144_v7 = vpop.f32.mrf.mxu0 }
  0xcc   :  { %95 = vst.msk [vmem:[#allocation2] sm:$0xff] %vm19_vm0, %v92_v6 }
  0xcd   :  { %v88_v9 = vpop.f32.mrf.mxu0 }
  0xce   :  { %v93_v10 = vadd.f32 %v88_v9, %v23_v8 }
  0xcf   :  { %v145_v11 = vpop.f32.mrf.mxu0 }
  0xd0   :  { %96 = vst.msk [vmem:[#allocation2 + $0x8] sm:$0xff] %vm19_vm0, %v93_v10 }
  0xd3   :  { %v100_v13 = vld [vmem:[#allocation2] sm:$0xff] }
  0xd4   :  { %v109_v14 = vadd.f32 %v130_v12, %v100_v13 }
  0xd6   :  { %v133_v15 = vpack.c.bf16 %v109_v14, %v109_v14 }
  0xd7   :  { %v101_v16 = vld [vmem:[#allocation2 + $0x8] sm:$0xff] }
  0xd8   :  { %120 = vst.msk [vmem:[%s198_s3] sm:$0xf] %vm119_vm3, %v133_v15  ;;  %v110_v17 = vadd.f32 %v130_v12, %v101_v16 }
  0xda   :  { %v134_v18 = vpack.c.bf16 %v110_v17, %v110_v17 }
  0xdc   :  { %121 = vst.msk [vmem:[%s198_s3 + $0x4] sm:$0xf] %vm119_vm3, %v134_v18 }

// kernel: transformer_forward.30
= control target key start
LH: loop header
LB: loop body
LE: loop exit
PB: predicated region body
PF: predicated region fallthrough
CT: control target
= control target key end

     0   :  { %s1362_s18 = smov 0   ;;  %s1364_s19 = smov 0   ;;  %s1557_s0 = inlined_call_operand.vmem [shape: s32[2,8,1], index: 0, kind: input, shape index: {}]   ;;  %s1558_s1 = inlined_call_operand.vmem [shape: s32[2,1,8], index: 1, kind: input, shape index: {}]   ;;  %s1559_s2 = inlined_call_operand.vmem [shape: bf16[2,8,32], index: 2, kind: input, shape index: {}]   ;;  %s1560_s3 = inlined_call_operand.vmem [shape: bf16[2,8,32], index: 3, kind: input, shape index: {}]   ;;  %s1561_s4 = inlined_call_operand.vmem [shape: bf16[2,8,32], index: 4, kind: input, shape index: {}]   ;;  %s1562_s5 = inlined_call_operand.vmem [shape: bf16[2,8,32], index: 5, kind: output, shape index: {}]  }
   0x1   :  { %s1366_s20 = smov 0  }
   0x2 LB: > { %s34_s21 = sadd.s32 1, %s1316_s19  ;;  %p1153_p0 = scmp.ge.s32.totalorder %s1320_s20, 1  ;;  %s1320_s20 = sphi %s1366_s20, %s15_s20   ;;  %s1316_s19 = sphi %s1364_s19, %s1566_s19   ;;  %s1312_s18 = sphi %s1362_s18, %s1565_s18  }
   0x3   : > { %p36_p1 = scmp.ge.s32.totalorder %s34_s21, 2  ;;  %p267_p2 = scmp.lt.s32.totalorder %s1320_s20, 3 }
   0x5   : > { %s1568_s21 = smov (%p36_p1, %s34_s21), 0  ;;  %p268_p3 = pnand %p1153_p0, %p267_p2 }
   0x6   : > { %p326_p4 = scmp.lt.s32.totalorder (!%p268_p3), %s1312_s18, 1  ;;  %s1326_s14 = smov (!%p268_p3), 120  }
   0x7   : > { %271 = sbr.rel (%p268_p3) target bundleno = 1416 (0x588), region = 40  ;;  %s1327_s15 = smov (!%p268_p3), 112  }
   0x8   : > { %s1328_s16 = smov (!%p268_p3), 104   ;;  %s1329_s17 = smov (!%p268_p3), 8  }
   0xc   : > { %vm381_vm0 = vcmask 64512   ;;  %v1322_v0 = vmov 0.0   ;;  %vm1323_vm1 = vmmov 0   ;;  %s1570_s18 = smov (!%p326_p4, %s1312_s18), 1  ;;  %v1324_v1 = vmov 0  }
   0xd   : > { %1188 = vmatprep.subr.bf16.mxu0 %v1322_v0  ;;  %382 = vst.msk [vmem:[#allocation4] sm:$0xff] %vm381_vm0, %v1322_v0  ;;  %383 = vst.msk [vmem:[#allocation4 + $0x8] sm:$0xff] %vm381_vm0, %v1322_v0  ;;  %1190 = vmatprep.mubr.msk.bf16.mxu0 %vm1323_vm1, %v1322_v0  ;;  %s1397_s22 = sshll.u32 %s1570_s18, 2  ;;  %s1154_s23 = sshll.u32 %s1570_s18, 3  ;;  %vm372_vm3 = vcmask 7168   ;;  %v391_v8 = vlaneseq  ;;  %vm489_vm8 = vcmask 1043456  }
   0xe   : > { %384 = vst.msk [vmem:[#allocation4 + $0x10] sm:$0xff] %vm381_vm0, %v1322_v0  ;;  %385 = vst.msk [vmem:[#allocation4 + $0x18] sm:$0xff] %vm381_vm0, %v1322_v0  ;;  %1270 = vset.pattern.permute.xlu0 %v1324_v1  ;;  %1271 = vset.pattern.permute.xlu1 %v1324_v1  ;;  %s352_s26 = scalar_lea.vmem %s1560_s3, %s1397_s22  ;;  %s332_s29 = scalar_lea.vmem %s1557_s0, %s1154_s23  ;;  %v1325_v7 = vmov -1e+30   ;;  %vm1008_vm9 = vcmask 130048   ;;  %vm1010_vm10 = vcmask 195584  }
   0xf   : > { %1194 = vmatprep.subr.bf16.mxu1 %v1322_v0  ;;  %1196 = vmatprep.mubr.msk.bf16.mxu1 %vm1323_vm1, %v1322_v0  ;;  %v403_v2 = vld [vmem:[%s352_s26] sm:$0xf]  ;;  %s345_s7 = scalar_lea.vmem %s1559_s2, %s1397_s22  ;;  %373 = vst.msk [vmem:[#allocation2] sm:$0xff] %vm372_vm3, %v1325_v7  ;;  %374 = vst.msk [vmem:[#allocation2 + $0x8] sm:$0xff] %vm372_vm3, %v1325_v7  ;;  %s338_s10 = scalar_lea.vmem %s1558_s1, %s1570_s18  ;;  %v392_v10 = vshrl.u32 %v391_v8, 7  ;;  %vm1013_vm11 = vcmask 257024  }
  0x10   : > { %v410_v3 = vsel %vm381_vm0, %v403_v2, 0  ;;  %v388_v4 = vld [vmem:[%s332_s29] sm:$0xff]  ;;  %375 = vst.msk [vmem:[#allocation2 + $0x10] sm:$0xff] %vm372_vm3, %v1325_v7  ;;  %376 = vst.msk [vmem:[#allocation2 + $0x18] sm:$0xff] %vm372_vm3, %v1325_v7  ;;  %v1162_v26 = vcombine.low %v403_v2, %v403_v2  ;;  %s359_s13 = scalar_lea.vmem %s1561_s4, %s1397_s22  ;;  %s1330_s18 = smov 16  }
  0x11   : > { %1189 = vmatpush3.bf16.xpose.msra.mxu0 %v410_v3  ;;  %vm389_vm2 = vcmp.gt.s32.totalorder %v388_v4, 0  ;;  %v402_v6 = vld [vmem:[%s345_s7] sm:$0xf]  ;;  %377 = vst.msk [vmem:[#allocation3] sm:$0xff] %vm372_vm3, %v1322_v0  ;;  %378 = vst.msk [vmem:[#allocation3 + $0x8] sm:$0xff] %vm372_vm3, %v1322_v0  ;;  %v393_v11 = vsub.s32 0, %v392_v10  ;;  %s366_s26 = scalar_lea.vmem %s1562_s5, %s1397_s22 }
  0x12   : > { %v396_v5 = vsel %vm389_vm2, 1, %v1324_v1  ;;  %1206 = vmatprep.subr.bf16.mxu0 %v1322_v0  ;;  %379 = vst.msk [vmem:[#allocation3 + $0x10] sm:$0xff] %vm372_vm3, %v1322_v0  ;;  %380 = vst.msk [vmem:[#allocation3 + $0x18] sm:$0xff] %vm372_vm3, %v1322_v0  ;;  %v386_v9 = vld [vmem:[%s338_s10] sm:$0x1]  ;;  %v1161_v30 = vcombine.low %v402_v6, %v402_v6  ;;  %s1331_s23 = smov 24  }
  0x13   : > { %398 = vperm.xlu0 %1270, %v396_v5   ;;  %vm387_vm4 = vcmp.gt.s32.totalorder %v386_v9, 0  ;;  %v1453_v28 = vld [vmem:[%s359_s13] sm:$0xf] }
  0x14   : > { %v390_v12 = vsel %vm387_vm4, 1, %v1324_v1  ;;  %v491_v29 = vsel %vm489_vm8, %v1453_v28, 0 }
  0x15   : > { %v394_v13 = vrot.slane %v390_v12, %v393_v11  ;;  %1195 = vmatpush3.bf16.msra.mxu1 %v491_v29 }
  0x16   : > { %v1439_v23 = vld [vmem:[#allocation2] sm:$0xff]  ;;  %1200 = vmatprep.subr.bf16.mxu1 %v1322_v0  ;;  %v1494_v7 = vld [vmem:[#allocation2 + $0x8] sm:$0xff] }
  0x17   : > { %vm395_vm5 = vcmp.eq.s32.totalorder %v394_v13, 1  ;;  %v735_v11 = vld [vmem:[#allocation2 + $0x10] sm:$0xff] }
  0x18   : > { %1191 = vmatmul.mubr.msk.bf16.vlgmr.msra.gmra.mxu0 %vm381_vm0, %v402_v6 }
  0x19   : > { %1208 = vmatprep.mubr.msk.bf16.mxu0 %vm1323_vm1, %v1322_v0 }
  0x8e   : > { %v399_v14 = vpop.permute.xlu0 %398 }
  0x8f   : > { %vm400_vm6 = vcmp.eq.s32.totalorder %v399_v14, 1 }
  0x90   : > { %vm1432_vm7 = vmand %vm395_vm5, %vm400_vm6 }
  0xd8   : > { %v446_v15 = vpop.f32.mrf.mxu0 }
  0xd9   : > { %v452_v17 = vmul.f32 0.35355338, %v446_v15  ;;  %v872_v15 = vld [vmem:[#allocation2 + $0x18] sm:$0xff] }
  0xda   : > { %v1192_v18 = vpop.f32.mrf.mxu0 }
  0xdb   : > { %v453_v19 = vsel %vm1432_vm7, %v452_v17, -10000.0  ;;  %v1164_v18 = vcombine.low %v1453_v28, %v1453_v28 }
  0xdc   : > { %v449_v20 = vpop.f32.mrf.mxu0  ;;  %v455_v21 = vsel %vm381_vm0, %v453_v19, -inf }
  0xdd   : > { %456 = vmax.xlane.f32.xlu0 %v455_v21 }
  0xde   : > { %v1193_v22 = vpop.f32.mrf.mxu0 }
 0x166   : > { %v457_v24 = vpop.xlane.xlu0 %456 }
 0x167   : > { %v1442_v25 = vmax.f32 %v1439_v23, %v457_v24 }
 0x169   : > { %v459_v27 = vsub.f32 %v1439_v23, %v1442_v25  ;;  %535 = vst.msk [vmem:[#allocation2] sm:$0xff] %vm372_vm3, %v1442_v25  ;;  %464 = vperm.xlu1 %1271, %v1442_v25  }
 0x16d   : > { %544 = vrot.lane.b32.xlu1 %v1162_v26, %s1326_s14 }
 0x171   : > { %539 = vrot.lane.b32.xlu1 %v1161_v30, %s1326_s14 }
 0x175   : > { %684 = vrot.lane.b32.xlu1 %v1162_v26, %s1327_s15 }
 0x179   : > { %682 = vrot.lane.b32.xlu1 %v1161_v30, %s1327_s15 }
 0x17d   : > { %821 = vrot.lane.b32.xlu1 %v1162_v26, %s1328_s16 }
 0x181   : > { %819 = vrot.lane.b32.xlu1 %v1161_v30, %s1328_s16 }
 0x1e4   : > { %v465_v31 = vpop.permute.xlu1 %464 }
 0x1e5   : > { %v467_v32 = vsub.f32 %v453_v19, %v465_v31 }
 0x1e7   : > { %v468_v33 = vmul.f32 1.442695, %v467_v32 }
 0x1e8   : > { %v545_v34 = vpop.permute.xlu1 %544 }
 0x1e9   : > { %1274 = vpow2.f32 %v468_v33  ;;  %v550_v37 = vsel %vm381_vm0, %v545_v34, 0  ;;  %v460_v33 = vmul.f32 1.442695, %v459_v27 }
 0x1ec   : > { %v540_v35 = vpop.permute.xlu1 %539 }
 0x1f0   : > { %v685_v39 = vpop.permute.xlu1 %684 }
 0x1f1   : > { %v690_v41 = vsel %vm381_vm0, %v685_v39, 0 }
 0x1f4   : > { %v683_v40 = vpop.permute.xlu1 %682 }
 0x1f6   : > { %v1464_v36 = vpop.eup %1274 }
 0x1f7   : > { %v485_v38 = vpack.c.bf16 %v1464_v36, %v1464_v36  ;;  %v472_v20 = vsel %vm381_vm0, %v1464_v36, 0.0 }
 0x1f8   : > { %v822_v42 = vpop.permute.xlu1 %821 }
 0x1f9   : > { %1197 = vmatmul.mubr.msk.bf16.vlgmr.msra.gmra.mxu1 %vm381_vm0, %v485_v38  ;;  %v827_v43 = vsel %vm381_vm0, %v822_v42, 0 }
 0x1fa   : > { %1201 = vmatpush3.bf16.xpose.msra.mxu1 %v550_v37  ;;  %1202 = vmatprep.mubr.msk.bf16.mxu1 %vm1323_vm1, %v1322_v0 }
 0x1fb   : > { %1212 = vmatprep.subr.bf16.mxu1 %v1322_v0 }
 0x1fc   : > { %v820_v44 = vpop.permute.xlu1 %819 }
 0x201   : > { %1203 = vmatmul.mubr.msk.bf16.vlgmr.msra.gmra.mxu1 %vm381_vm0, %v540_v35 }
 0x202   : > { %1213 = vmatpush3.bf16.xpose.msra.mxu1 %v690_v41  ;;  %1214 = vmatprep.mubr.msk.bf16.mxu1 %vm1323_vm1, %v1322_v0 }
 0x203   : > { %1224 = vmatprep.subr.bf16.mxu1 %v1322_v0 }
 0x209   : > { %1215 = vmatmul.mubr.msk.bf16.vlgmr.msra.gmra.mxu1 %vm381_vm0, %v683_v40 }
 0x20a   : > { %1225 = vmatpush3.bf16.xpose.msra.mxu1 %v827_v43  ;;  %1226 = vmatprep.mubr.msk.bf16.mxu1 %vm1323_vm1, %v1322_v0 }
 0x211   : > { %1227 = vmatmul.mubr.msk.bf16.vlgmr.msra.gmra.mxu1 %vm381_vm0, %v820_v44 }
 0x2b9   : > { %v1483_v45 = vpop.f32.mrf.mxu1 }
 0x2bb   : > { %v1198_v46 = vpop.f32.mrf.mxu1 }
 0x2bd   : > { %v530_v47 = vpop.f32.mrf.mxu1 }
 0x2bf   : > { %v1199_v48 = vpop.f32.mrf.mxu1 }
 0x2c1   : > { %v586_v49 = vpop.f32.mrf.mxu1 }
 0x2c2   : > { %v592_v50 = vmul.f32 0.35355338, %v586_v49 }
 0x2c3   : > { %v1204_v51 = vpop.f32.mrf.mxu1 }
 0x2c4   : > { %v593_v52 = vsel %vm1432_vm7, %v592_v50, -10000.0 }
 0x2c5   : > { %v589_v53 = vpop.f32.mrf.mxu1  ;;  %v596_v54 = vsel %vm381_vm0, %v593_v52, -inf }
 0x2c6   : > { %597 = vmax.xlane.f32.xlu1 %v596_v54 }
 0x2c7   : > { %v1205_v55 = vpop.f32.mrf.mxu1 }
 0x2c9   : > { %v726_v56 = vpop.f32.mrf.mxu1 }
 0x2ca   : > { %v732_v57 = vmul.f32 0.35355338, %v726_v56 }
 0x2cb   : > { %v1216_v58 = vpop.f32.mrf.mxu1 }
 0x2cc   : > { %v733_v59 = vsel %vm1432_vm7, %v732_v57, -10000.0 }
 0x2cd   : > { %v729_v60 = vpop.f32.mrf.mxu1  ;;  %v736_v61 = vsel %vm381_vm0, %v733_v59, -inf }
 0x2ce   : > { %737 = vmax.xlane.f32.xlu0 %v736_v61 }
 0x2cf   : > { %v1217_v62 = vpop.f32.mrf.mxu1 }
 0x2d1   : > { %v863_v63 = vpop.f32.mrf.mxu1 }
 0x2d2   : > { %v869_v1 = vmul.f32 0.35355338, %v863_v63  ;;  %v478_v63 = vld [vmem:[#allocation4] sm:$0xff] }
 0x2d3   : > { %v1228_v2 = vpop.f32.mrf.mxu1 }
 0x2d4   : > { %v870_v3 = vsel %vm1432_vm7, %v869_v1, -10000.0  ;;  %v752_v2 = vld [vmem:[#allocation3 + $0x10] sm:$0xff] }
 0x2d5   : > { %v866_v4 = vpop.f32.mrf.mxu1  ;;  %v873_v5 = vsel %vm381_vm0, %v870_v3, -inf }
 0x2d6   : > { %874 = vmax.xlane.f32.xlu0 %v873_v5 }
 0x2d7   : > { %v1229_v6 = vpop.f32.mrf.mxu1 }
 0x34f   : > { %v598_v8 = vpop.xlane.xlu1 %597 }
 0x350   : > { %v1497_v9 = vmax.f32 %v1494_v7, %v598_v8 }
 0x352   : > { %v600_v10 = vsub.f32 %v1494_v7, %v1497_v9  ;;  %681 = vst.msk [vmem:[#allocation2 + $0x8] sm:$0xff] %vm372_vm3, %v1497_v9  ;;  %605 = vperm.xlu0 %1270, %v1497_v9   ;;  %v889_v9 = vld [vmem:[#allocation3 + $0x18] sm:$0xff] }
 0x354   : > { %v601_v51 = vmul.f32 1.442695, %v600_v10 }
 0x357   : > { %v738_v12 = vpop.xlane.xlu0 %737 }
 0x358   : > { %v739_v13 = vmax.f32 %v735_v11, %v738_v12 }
 0x35a   : > { %v740_v14 = vsub.f32 %v735_v11, %v739_v13  ;;  %818 = vst.msk [vmem:[#allocation2 + $0x10] sm:$0xff] %vm372_vm3, %v739_v13  ;;  %745 = vperm.xlu1 %1271, %v739_v13  }
 0x35c   : > { %v741_v38 = vmul.f32 1.442695, %v740_v14 }
 0x35f   : > { %v875_v16 = vpop.xlane.xlu0 %874 }
 0x360   : > { %v876_v17 = vmax.f32 %v872_v15, %v875_v16 }
 0x362   : > { %v877_v19 = vsub.f32 %v872_v15, %v876_v17  ;;  %955 = vst.msk [vmem:[#allocation2 + $0x18] sm:$0xff] %vm372_vm3, %v876_v17  ;;  %882 = vperm.xlu0 %1270, %v876_v17   ;;  %v620_v17 = vld [vmem:[#allocation4 + $0x8] sm:$0xff] }
 0x364   : > { %v878_v27 = vmul.f32 1.442695, %v877_v19 }
 0x366   : > { %631 = vrot.lane.b32.xlu0 %v1164_v18, %s1326_s14 }
 0x36a   : > { %768 = vrot.lane.b32.xlu0 %v1164_v18, %s1327_s15 }
 0x36e   : > { %905 = vrot.lane.b32.xlu0 %v1164_v18, %s1328_s16 }
 0x38d   : > { %473 = vadd.xlane.f32.xlu0 %v472_v20 }
 0x3cd   : > { %v606_v21 = vpop.permute.xlu0 %605 }
 0x3ce   : > { %v608_v22 = vsub.f32 %v593_v52, %v606_v21 }
 0x3d0   : > { %v609_v24 = vmul.f32 1.442695, %v608_v22 }
 0x3d2   : > { %1276 = vpow2.f32 %v609_v24  ;;  %v760_v24 = vld [vmem:[#allocation4 + $0x10] sm:$0xff] }
 0x3d5   : > { %v746_v26 = vpop.permute.xlu1 %745 }
 0x3d6   : > { %v748_v28 = vsub.f32 %v733_v59, %v746_v26  ;;  %v612_v59 = vld [vmem:[#allocation3 + $0x8] sm:$0xff] }
 0x3d8   : > { %v749_v29 = vmul.f32 1.442695, %v748_v28 }
 0x3da   : > { %1278 = vpow2.f32 %v749_v29 }
 0x3dd   : > { %v883_v30 = vpop.permute.xlu0 %882 }
 0x3de   : > { %v885_v31 = vsub.f32 %v870_v3, %v883_v30 }
 0x3df   : > { %v1277_v32 = vpop.eup %1276 }
 0x3e0   : > { %v886_v34 = vmul.f32 1.442695, %v885_v31  ;;  %v614_v35 = vsel %vm381_vm0, %v1277_v32, 0.0  ;;  %v627_v39 = vpack.c.bf16 %v1277_v32, %v1277_v32 }
 0x3e1   : > { %615 = vadd.xlane.f32.xlu1 %v614_v35  ;;  %v632_v36 = vpop.permute.xlu0 %631 }
 0x3e2   : > { %1280 = vpow2.f32 %v886_v34  ;;  %v637_v37 = vsel %vm489_vm8, %v632_v36, 0  ;;  %v897_v34 = vld [vmem:[#allocation4 + $0x18] sm:$0xff] }
 0x3e3   : > { %1207 = vmatpush3.bf16.msra.mxu0 %v637_v37  ;;  %1282 = vpow2.f32 %v460_v33 }
 0x3e4   : > { %1218 = vmatprep.subr.bf16.mxu0 %v1322_v0  ;;  %1284 = vpow2.f32 %v741_v38 }
 0x3e5   : > { %v769_v40 = vpop.permute.xlu0 %768  ;;  %1286 = vpow2.f32 %v878_v27 }
 0x3e6   : > { %1209 = vmatmul.mubr.msk.bf16.vlgmr.msra.gmra.mxu0 %vm381_vm0, %v627_v39  ;;  %v774_v23 = vsel %vm489_vm8, %v769_v40, 0  ;;  %1288 = vpow2.f32 %v601_v51 }
 0x3e7   : > { %v1279_v25 = vpop.eup %1278  ;;  %1219 = vmatpush3.bf16.msra.mxu0 %v774_v23  ;;  %1220 = vmatprep.mubr.msk.bf16.mxu0 %vm1323_vm1, %v1322_v0 }
 0x3e8   : > { %v754_v41 = vsel %vm381_vm0, %v1279_v25, 0.0  ;;  %1230 = vmatprep.subr.bf16.mxu0 %v1322_v0  ;;  %v767_v43 = vpack.c.bf16 %v1279_v25, %v1279_v25 }
 0x3e9   : > { %755 = vadd.xlane.f32.xlu0 %v754_v41  ;;  %v906_v42 = vpop.permute.xlu0 %905 }
 0x3ea   : > { %v911_v44 = vsel %vm489_vm8, %v906_v42, 0 }
 0x3ee   : > { %1221 = vmatmul.mubr.msk.bf16.vlgmr.msra.gmra.mxu0 %vm381_vm0, %v767_v43 }
 0x3ef   : > { %v1281_v46 = vpop.eup %1280  ;;  %1231 = vmatpush3.bf16.msra.mxu0 %v911_v44  ;;  %1232 = vmatprep.mubr.msk.bf16.mxu0 %vm1323_vm1, %v1322_v0  ;;  %v470_v0 = vld [vmem:[#allocation3] sm:$0xff] }
 0x3f0   : > { %v891_v47 = vsel %vm381_vm0, %v1281_v46, 0.0  ;;  %v1283_v48 = vpop.eup %1282  ;;  %v904_v49 = vpack.c.bf16 %v1281_v46, %v1281_v46 }
 0x3f1   : > { %892 = vadd.xlane.f32.xlu0 %v891_v47  ;;  %v1285_v50 = vpop.eup %1284  ;;  %v471_v54 = vmul.f32 %v1283_v48, %v470_v0 }
 0x3f2   : > { %481 = vperm.xlu1 %1271, %v1283_v48   ;;  %v1287_v52 = vpop.eup %1286  ;;  %v753_v5 = vmul.f32 %v1285_v50, %v752_v2 }
 0x3f3   : > { %v1289_v53 = vpop.eup %1288  ;;  %v890_v10 = vmul.f32 %v1287_v52, %v889_v9 }
 0x3f4   : > { %v613_v60 = vmul.f32 %v1289_v53, %v612_v59 }
 0x3f6   : > { %1233 = vmatmul.mubr.msk.bf16.vlgmr.msra.gmra.mxu0 %vm381_vm0, %v904_v49  ;;  %763 = vperm.xlu1 %1271, %v1285_v50  }
 0x3fa   : > { %900 = vperm.xlu1 %1271, %v1287_v52  }
 0x407   : > { %623 = vperm.xlu0 %1270, %v1289_v53  }
 0x416   : > { %v474_v55 = vpop.xlane.xlu0 %473 }
 0x417   : > { %v475_v56 = vadd.f32 %v474_v55, %v471_v54 }
 0x419   : > { %477 = vst.msk [vmem:[#allocation3] sm:$0xff] %vm372_vm3, %v475_v56 }
 0x420   : > { %v960_v57 = vld [vmem:[#allocation3] sm:$0xff] }
 0x421   : > { %1290 = vrcp.f32 %v960_v57 }
 0x42e   : > { %v1291_v58 = vpop.eup %1290 }
 0x42f   : > { %964 = vperm.xlu0 %1270, %v1291_v58  }
 0x46a   : > { %v616_v61 = vpop.xlane.xlu1 %615 }
 0x46b   : > { %v617_v62 = vadd.f32 %v616_v61, %v613_v60 }
 0x46d   : > { %618 = vst.msk [vmem:[#allocation3 + $0x8] sm:$0xff] %vm372_vm3, %v617_v62 }
 0x46e   : > { %v482_v1 = vpop.permute.xlu1 %481 }
 0x46f   : > { %v484_v3 = vmul.f32 %v482_v1, %v478_v63 }
 0x471   : > { %v533_v4 = vadd.f32 %v1483_v45, %v484_v3 }
 0x472   : > { %v756_v6 = vpop.xlane.xlu0 %755  ;;  %v764_v26 = vpop.permute.xlu1 %763 }
 0x473   : > { %534 = vst.msk [vmem:[#allocation4] sm:$0xff] %vm381_vm0, %v533_v4  ;;  %v757_v7 = vadd.f32 %v756_v6, %v753_v5  ;;  %v766_v30 = vmul.f32 %v764_v26, %v760_v24 }
 0x474   : > { %v969_v8 = vld [vmem:[#allocation3 + $0x8] sm:$0xff] }
 0x475   : > { %758 = vst.msk [vmem:[#allocation3 + $0x10] sm:$0xff] %vm372_vm3, %v757_v7  ;;  %1292 = vrcp.f32 %v969_v8 }
 0x476   : > { %v901_v35 = vpop.permute.xlu1 %900 }
 0x477   : > { %v903_v38 = vmul.f32 %v901_v35, %v897_v34 }
 0x47a   : > { %v893_v11 = vpop.xlane.xlu0 %892  ;;  %v959_v52 = vld [vmem:[#allocation4] sm:$0xff] }
 0x47b   : > { %v894_v12 = vadd.f32 %v893_v11, %v890_v10 }
 0x47c   : > { %v978_v13 = vld [vmem:[#allocation3 + $0x10] sm:$0xff] }
 0x47d   : > { %895 = vst.msk [vmem:[#allocation3 + $0x18] sm:$0xff] %vm372_vm3, %v894_v12  ;;  %1294 = vrcp.f32 %v978_v13 }
 0x482   : > { %v1293_v14 = vpop.eup %1292  ;;  %v624_v18 = vpop.permute.xlu0 %623 }
 0x483   : > { %973 = vperm.xlu1 %1271, %v1293_v14   ;;  %v626_v19 = vmul.f32 %v624_v18, %v620_v17 }
 0x484   : > { %v987_v45 = vld [vmem:[#allocation3 + $0x18] sm:$0xff] }
 0x485   : > { %1296 = vrcp.f32 %v987_v45 }
 0x48a   : > { %v1295_v15 = vpop.eup %1294 }
 0x48b   : > { %982 = vperm.xlu0 %1270, %v1295_v15  }
 0x492   : > { %v1297_v16 = vpop.eup %1296 }
 0x493   : > { %991 = vperm.xlu1 %1271, %v1297_v16  }
 0x4a6   : > { %v673_v20 = vpop.f32.mrf.mxu0 }
 0x4a7   : > { %v679_v21 = vadd.f32 %v673_v20, %v626_v19 }
 0x4a8   : > { %v1210_v22 = vpop.f32.mrf.mxu0 }
 0x4a9   : > { %680 = vst.msk [vmem:[#allocation4 + $0x8] sm:$0xff] %vm381_vm0, %v679_v21 }
 0x4aa   : > { %v676_v28 = vpop.f32.mrf.mxu0  ;;  %v965_v44 = vpop.permute.xlu0 %964 }
 0x4ab   : > { %v967_v0 = vmul.f32 %v965_v44, %v959_v52 }
 0x4ac   : > { %v1211_v29 = vpop.f32.mrf.mxu0 }
 0x4ae   : > { %v810_v31 = vpop.f32.mrf.mxu0 }
 0x4af   : > { %v816_v32 = vadd.f32 %v810_v31, %v766_v30 }
 0x4b0   : > { %v1222_v33 = vpop.f32.mrf.mxu0  ;;  %v968_v41 = vld [vmem:[#allocation4 + $0x8] sm:$0xff] }
 0x4b1   : > { %817 = vst.msk [vmem:[#allocation4 + $0x10] sm:$0xff] %vm381_vm0, %v816_v32 }
 0x4b2   : > { %v813_v36 = vpop.f32.mrf.mxu0 }
 0x4b4   : > { %v1223_v37 = vpop.f32.mrf.mxu0 }
 0x4b6   : > { %v947_v39 = vpop.f32.mrf.mxu0 }
 0x4b7   : > { %v953_v40 = vadd.f32 %v947_v39, %v903_v38 }
 0x4b8   : > { %v1234_v23 = vpop.f32.mrf.mxu0  ;;  %v977_v46 = vld [vmem:[#allocation4 + $0x10] sm:$0xff] }
 0x4b9   : > { %954 = vst.msk [vmem:[#allocation4 + $0x18] sm:$0xff] %vm381_vm0, %v953_v40 }
 0x4ba   : > { %v950_v25 = vpop.f32.mrf.mxu0 }
 0x4bc   : > { %v1235_v27 = vpop.f32.mrf.mxu0 }
 0x4c0   : > { %v986_v49 = vld [vmem:[#allocation4 + $0x18] sm:$0xff] }
 0x4fe   : > { %v974_v42 = vpop.permute.xlu1 %973 }
 0x4ff   : > { %v976_v43 = vmul.f32 %v974_v42, %v968_v41 }
 0x501   : > { %996 = vrot.lane.b32.xlu0 %v976_v43, %s1329_s17 }
 0x506   : > { %v983_v47 = vpop.permute.xlu0 %982 }
 0x507   : > { %v985_v48 = vmul.f32 %v983_v47, %v977_v46 }
 0x509   : > { %1000 = vrot.lane.b32.xlu1 %v985_v48, %s1330_s18 }
 0x50e   : > { %v992_v50 = vpop.permute.xlu1 %991 }
 0x50f   : > { %v994_v51 = vmul.f32 %v992_v50, %v986_v49 }
 0x511   : > { %1004 = vrot.lane.b32.xlu0 %v994_v51, %s1331_s23 }
 0x573   : > { %v997_v53 = vpop.permute.xlu0 %996 }
 0x574   : > { %v1007_v55 = vsel %vm381_vm0, %v967_v0, %v997_v53 }
 0x57b   : > { %v1001_v54 = vpop.permute.xlu1 %1000 }
 0x57c   : > { %v1009_v56 = vsel %vm1008_vm9, %v1007_v55, %v1001_v54 }
 0x583   : > { %v1005_v57 = vpop.permute.xlu0 %1004 }
 0x584   : > { %v1011_v58 = vsel %vm1010_vm10, %v1009_v56, %v1005_v57 }
 0x585   : > { %v1012_v59 = vpack.c.bf16 %v1011_v58, %v1011_v58 }
 0x587   : > { %1014 = vst.msk [vmem:[%s366_s26] sm:$0xf] %vm1013_vm11, %v1012_v59 }
 0x588 PF: > { %s15_s20 = sadd.s32 1, %s1320_s20   ;;  %s1565_s18 = smov %s1316_s19 }
 0x589   : > { %p12_p5 = scmp.ge.s32.totalorder %s15_s20, 4   ;;  %s1566_s19 = smov %s1568_s21 }
 0x58b   :  { %14 = sbr.rel (!%p12_p5) target bundleno = 2 (0x2), region = 99 }

// kernel: transformer_forward.33
= control target key start
LH: loop header
LB: loop body
LE: loop exit
PB: predicated region body
PF: predicated region fallthrough
CT: control target
= control target key end

     0   :  { %vm28_vm0 = vcmask 261120   ;;  %v247_v0 = vmov 0.0   ;;  %vm248_vm1 = vmmov 0   ;;  %vm72_vm2 = vcmask 523264   ;;  %s325_s1 = inlined_call_operand.vmem [shape: bf16[64,32], index: 1, kind: input, shape index: {}]   ;;  %s326_s0 = inlined_call_operand.vmem [shape: bf16[16,64], index: 0, kind: input, shape index: {}]   ;;  %s327_s3 = inlined_call_operand.vmem [shape: bf16[16,32], index: 3, kind: input, shape index: {}]   ;;  %s328_s2 = inlined_call_operand.vmem [shape: f32[1,32], index: 2, kind: input, shape index: {}]   ;;  %s329_s4 = inlined_call_operand.vmem [shape: f32[1,32], index: 4, kind: input, shape index: {}]   ;;  %s330_s5 = inlined_call_operand.vmem [shape: f32[1,32], index: 5, kind: input, shape index: {}]   ;;  %s331_s6 = inlined_call_operand.vmem [shape: bf16[16,32], index: 6, kind: output, shape index: {}]  }
   0x1   :  { %224 = vmatprep.subr.bf16.mxu0 %v247_v0  ;;  %v238_v1 = vld [vmem:[%s325_s1 + $0x18] sm:$0xff]   ;;  %232 = vmatprep.mubr.msk.bf16.mxu0 %vm248_vm1, %v247_v0  ;;  %29 = vst.msk [vmem:[#allocation2] sm:$0xff] %vm28_vm0, %v247_v0  ;;  %30 = vst.msk [vmem:[#allocation2 + $0x8] sm:$0xff] %vm28_vm0, %v247_v0  ;;  %v239_v2 = vld [vmem:[%s325_s1 + $0x10] sm:$0xff]   ;;  %vm195_vm3 = vcmask 257024  }
   0x2   :  { %225 = vmatpush3.bf16.msra.mxu0 %v238_v1  ;;  %v240_v3 = vld [vmem:[%s325_s1 + $0x8] sm:$0xff]   ;;  %v241_v4 = vld [vmem:[%s325_s1] sm:$0xff]  }
   0x3   :  { %226 = vmatprep.subr.bf16.mxu0 %v247_v0  ;;  %v242_v5 = vld [vmem:[%s326_s0] sm:$0xff]  }
   0x4   :  { %v216_v14 = vld [vmem:[%s327_s3] sm:$0xff]  }
   0x5   :  { %v208_v15 = vld [vmem:[%s328_s2] ss:$0 sm:$0xff]  ;;  %v217_v16 = vunpack.c.l.bf16 %v216_v14  ;;  %v218_v20 = vunpack.c.h.bf16 %v216_v14 }
   0x6   :  { %227 = vmatpush3.bf16.msra.mxu0 %v239_v2  ;;  %v209_v43 = vld [vmem:[%s329_s4] ss:$0 sm:$0xff] }
   0x7   :  { %228 = vmatprep.subr.bf16.mxu0 %v247_v0  ;;  %v210_v45 = vld [vmem:[%s330_s5] ss:$0 sm:$0xff] }
   0x8   :  { %v31_v6 = vld [vmem:[#allocation2] sm:$0xff]  ;;  %v32_v10 = vld [vmem:[#allocation2 + $0x8] sm:$0xff] }
   0xa   :  { %229 = vmatpush3.bf16.msra.mxu0 %v240_v3 }
   0xb   :  { %230 = vmatprep.subr.bf16.mxu0 %v247_v0 }
   0xe   :  { %231 = vmatpush3.bf16.msra.mxu0 %v241_v4 }
  0x11   :  { %233 = vmatmul.mubr.msk.bf16.vlgmr.msra.gmra.mxu0 %vm72_vm2, %v242_v5 }
  0xd1   :  { %v110_v7 = vpop.f32.mrf.mxu0 }
  0xd2   :  { %v117_v8 = vadd.f32 %v110_v7, %v31_v6 }
  0xd3   :  { %v234_v9 = vpop.f32.mrf.mxu0 }
  0xd4   :  { %120 = vst.msk [vmem:[#allocation2] sm:$0xff] %vm28_vm0, %v117_v8 }
  0xd5   :  { %v113_v11 = vpop.f32.mrf.mxu0 }
  0xd6   :  { %v118_v12 = vadd.f32 %v113_v11, %v32_v10 }
  0xd7   :  { %v235_v13 = vpop.f32.mrf.mxu0 }
  0xd8   :  { %121 = vst.msk [vmem:[#allocation2 + $0x8] sm:$0xff] %vm28_vm0, %v118_v12 }
  0xdb   :  { %v125_v17 = vld [vmem:[#allocation2] sm:$0xff] }
  0xdc   :  { %v134_v18 = vadd.f32 %v208_v15, %v125_v17 }
  0xde   :  { %v140_v19 = vadd.f32 %v217_v16, %v134_v18 }
  0xdf   :  { %v126_v21 = vld [vmem:[#allocation2 + $0x8] sm:$0xff] }
  0xe0   :  { %v142_v22 = vsel %vm28_vm0, %v140_v19, 0.0  ;;  %v135_v23 = vadd.f32 %v208_v15, %v126_v21 }
  0xe1   :  { %143 = vadd.xlane.f32.xlu0 %v142_v22 }
  0xe2   :  { %v141_v24 = vadd.f32 %v218_v20, %v135_v23 }
  0xe4   :  { %v145_v25 = vsel %vm28_vm0, %v141_v24, 0.0 }
  0xe5   :  { %146 = vadd.xlane.f32.xlu0 %v145_v25 }
 0x16a   :  { %v144_v26 = vpop.xlane.xlu0 %143 }
 0x16b   :  { %v149_v27 = vmul.f32 0.03125, %v144_v26 }
 0x16d   :  { %v151_v28 = vsub.f32 %v140_v19, %v149_v27 }
 0x16e   :  { %v147_v29 = vpop.xlane.xlu0 %146 }
 0x16f   :  { %v150_v30 = vmul.f32 0.03125, %v147_v29  ;;  %v153_v31 = vmul.f32 %v151_v28, %v151_v28 }
 0x171   :  { %v152_v32 = vsub.f32 %v141_v24, %v150_v30  ;;  %v155_v33 = vsel %vm28_vm0, %v153_v31, 0.0 }
 0x172   :  { %156 = vadd.xlane.f32.xlu1 %v155_v33 }
 0x173   :  { %v154_v34 = vmul.f32 %v152_v32, %v152_v32 }
 0x175   :  { %v158_v35 = vsel %vm28_vm0, %v154_v34, 0.0 }
 0x176   :  { %159 = vadd.xlane.f32.xlu1 %v158_v35 }
 0x1fb   :  { %v157_v36 = vpop.xlane.xlu1 %156 }
 0x1fc   :  { %v161_v37 = vmul.f32 0.03125, %v157_v36 }
 0x1fe   :  { %v163_v38 = vadd.f32 1e-12, %v161_v37 }
 0x1ff   :  { %v160_v39 = vpop.xlane.xlu1 %159 }
 0x200   :  { %243 = vrsqrt.f32 %v163_v38  ;;  %v162_v40 = vmul.f32 0.03125, %v160_v39 }
 0x202   :  { %v164_v41 = vadd.f32 1e-12, %v162_v40 }
 0x204   :  { %245 = vrsqrt.f32 %v164_v41 }
 0x20d   :  { %v244_v42 = vpop.eup %243 }
 0x20e   :  { %v167_v44 = vmul.f32 %v244_v42, %v151_v28 }
 0x210   :  { %v176_v46 = vmul.f32 %v209_v43, %v167_v44 }
 0x211   :  { %v246_v47 = vpop.eup %245 }
 0x212   :  { %v185_v48 = vadd.f32 %v210_v45, %v176_v46  ;;  %v168_v49 = vmul.f32 %v246_v47, %v152_v32 }
 0x214   :  { %v213_v50 = vpack.c.bf16 %v185_v48, %v185_v48  ;;  %v177_v51 = vmul.f32 %v209_v43, %v168_v49 }
 0x216   :  { %196 = vst.msk [vmem:[%s331_s6] sm:$0xf] %vm195_vm3, %v213_v50  ;;  %v186_v52 = vadd.f32 %v210_v45, %v177_v51 }
 0x218   :  { %v214_v53 = vpack.c.bf16 %v186_v52, %v186_v52 }
 0x21a   :  { %197 = vst.msk [vmem:[%s331_s6 + $0x4] sm:$0xf] %vm195_vm3, %v214_v53 }

// kernel: transformer_forward.43
= control target key start
LH: loop header
LB: loop body
LE: loop exit
PB: predicated region body
PF: predicated region fallthrough
CT: control target
= control target key end

     0   :  { %vm19_vm0 = vcmask 523264   ;;  %v151_v0 = vmov 0.0   ;;  %vm152_vm1 = vmmov 0   ;;  %vm47_vm2 = vcmask 261120   ;;  %s195_s1 = inlined_call_operand.vmem [shape: bf16[32,64], index: 1, kind: input, shape index: {}]   ;;  %s196_s0 = inlined_call_operand.vmem [shape: bf16[16,32], index: 0, kind: input, shape index: {}]   ;;  %s197_s2 = inlined_call_operand.vmem [shape: f32[1,64], index: 2, kind: input, shape index: {}]   ;;  %s198_s3 = inlined_call_operand.vmem [shape: bf16[16,64], index: 3, kind: output, shape index: {}]  }
   0x1   :  { %138 = vmatprep.subr.bf16.mxu0 %v151_v0  ;;  %v148_v1 = vld [vmem:[%s195_s1 + $0x8] sm:$0xff]   ;;  %142 = vmatprep.mubr.msk.bf16.mxu0 %vm152_vm1, %v151_v0  ;;  %20 = vst.msk [vmem:[#allocation2] sm:$0xff] %vm19_vm0, %v151_v0  ;;  %21 = vst.msk [vmem:[#allocation2 + $0x8] sm:$0xff] %vm19_vm0, %v151_v0  ;;  %v149_v2 = vld [vmem:[%s195_s1] sm:$0xff]   ;;  %vm119_vm3 = vcmask 519168  }
   0x2   :  { %139 = vmatpush3.bf16.msra.mxu0 %v148_v1  ;;  %v150_v3 = vld [vmem:[%s196_s0] sm:$0xff]  }
   0x3   :  { %140 = vmatprep.subr.bf16.mxu0 %v151_v0  ;;  %v130_v12 = vld [vmem:[%s197_s2] ss:$0 sm:$0xff] }
   0x6   :  { %141 = vmatpush3.bf16.msra.mxu0 %v149_v2 }
   0x8   :  { %v22_v4 = vld [vmem:[#allocation2] sm:$0xff]  ;;  %v23_v8 = vld [vmem:[#allocation2 + $0x8] sm:$0xff] }
   0x9   :  { %143 = vmatmul.mubr.msk.bf16.vlgmr.msra.gmra.mxu0 %vm47_vm2, %v150_v3 }
  0xc9   :  { %v85_v5 = vpop.f32.mrf.mxu0 }
  0xca   :  { %v92_v6 = vadd.f32 %v85_v5, %v22_v4 }
  0xcb   :  { %v144_v7 = vpop.f32.mrf.mxu0 }
  0xcc   :  { %95 = vst.msk [vmem:[#allocation2] sm:$0xff] %vm19_vm0, %v92_v6 }
  0xcd   :  { %v88_v9 = vpop.f32.mrf.mxu0 }
  0xce   :  { %v93_v10 = vadd.f32 %v88_v9, %v23_v8 }
  0xcf   :  { %v145_v11 = vpop.f32.mrf.mxu0 }
  0xd0   :  { %96 = vst.msk [vmem:[#allocation2 + $0x8] sm:$0xff] %vm19_vm0, %v93_v10 }
  0xd3   :  { %v100_v13 = vld [vmem:[#allocation2] sm:$0xff] }
  0xd4   :  { %v109_v14 = vadd.f32 %v130_v12, %v100_v13 }
  0xd6   :  { %v133_v15 = vpack.c.bf16 %v109_v14, %v109_v14 }
  0xd7   :  { %v101_v16 = vld [vmem:[#allocation2 + $0x8] sm:$0xff] }
  0xd8   :  { %120 = vst.msk [vmem:[%s198_s3] sm:$0xf] %vm119_vm3, %v133_v15  ;;  %v110_v17 = vadd.f32 %v130_v12, %v101_v16 }
  0xda   :  { %v134_v18 = vpack.c.bf16 %v110_v17, %v110_v17 }
  0xdc   :  { %121 = vst.msk [vmem:[%s198_s3 + $0x4] sm:$0xf] %vm119_vm3, %v134_v18 }

// kernel: transformer_forward.42
= control target key start
LH: loop header
LB: loop body
LE: loop exit
PB: predicated region body
PF: predicated region fallthrough
CT: control target
= control target key end

     0   :  { %vm19_vm0 = vcmask 261120   ;;  %v150_v0 = vmov 0.0   ;;  %vm151_vm1 = vmmov 0   ;;  %vm118_vm2 = vcmask 257024   ;;  %s195_s1 = inlined_call_operand.vmem [shape: bf16[32,32], index: 1, kind: input, shape index: {}]   ;;  %s196_s0 = inlined_call_operand.vmem [shape: bf16[16,32], index: 0, kind: input, shape index: {}]   ;;  %s197_s2 = inlined_call_operand.vmem [shape: f32[1,32], index: 2, kind: input, shape index: {}]   ;;  %s198_s3 = inlined_call_operand.vmem [shape: bf16[16,32], index: 3, kind: output, shape index: {}]  }
   0x1   :  { %137 = vmatprep.subr.bf16.mxu0 %v150_v0  ;;  %v147_v1 = vld [vmem:[%s195_s1 + $0x8] sm:$0xff]   ;;  %141 = vmatprep.mubr.msk.bf16.mxu0 %vm151_vm1, %v150_v0  ;;  %20 = vst.msk [vmem:[#allocation2] sm:$0xff] %vm19_vm0, %v150_v0  ;;  %21 = vst.msk [vmem:[#allocation2 + $0x8] sm:$0xff] %vm19_vm0, %v150_v0  ;;  %v148_v2 = vld [vmem:[%s195_s1] sm:$0xff]  }
   0x2   :  { %138 = vmatpush3.bf16.msra.mxu0 %v147_v1  ;;  %v149_v3 = vld [vmem:[%s196_s0] sm:$0xff]  }
   0x3   :  { %139 = vmatprep.subr.bf16.mxu0 %v150_v0  ;;  %v129_v12 = vld [vmem:[%s197_s2] ss:$0 sm:$0xff] }
   0x6   :  { %140 = vmatpush3.bf16.msra.mxu0 %v148_v2 }
   0x8   :  { %v22_v4 = vld [vmem:[#allocation2] sm:$0xff]  ;;  %v23_v8 = vld [vmem:[#allocation2 + $0x8] sm:$0xff] }
   0x9   :  { %142 = vmatmul.mubr.msk.bf16.vlgmr.msra.gmra.mxu0 %vm19_vm0, %v149_v3 }
  0xc9   :  { %v85_v5 = vpop.f32.mrf.mxu0 }
  0xca   :  { %v92_v6 = vadd.f32 %v85_v5, %v22_v4 }
  0xcb   :  { %v143_v7 = vpop.f32.mrf.mxu0 }
  0xcc   :  { %94 = vst.msk [vmem:[#allocation2] sm:$0xff] %vm19_vm0, %v92_v6 }
  0xcd   :  { %v88_v9 = vpop.f32.mrf.mxu0 }
  0xce   :  { %v93_v10 = vadd.f32 %v88_v9, %v23_v8 }
  0xcf   :  { %v144_v11 = vpop.f32.mrf.mxu0 }
  0xd0   :  { %95 = vst.msk [vmem:[#allocation2 + $0x8] sm:$0xff] %vm19_vm0, %v93_v10 }
  0xd3   :  { %v99_v13 = vld [vmem:[#allocation2] sm:$0xff] }
  0xd4   :  { %v108_v14 = vadd.f32 %v129_v12, %v99_v13 }
  0xd6   :  { %v132_v15 = vpack.c.bf16 %v108_v14, %v108_v14 }
  0xd7   :  { %v100_v16 = vld [vmem:[#allocation2 + $0x8] sm:$0xff] }
  0xd8   :  { %119 = vst.msk [vmem:[%s198_s3] sm:$0xf] %vm118_vm2, %v132_v15  ;;  %v109_v17 = vadd.f32 %v129_v12, %v100_v16 }
  0xda   :  { %v133_v18 = vpack.c.bf16 %v109_v17, %v109_v17 }
  0xdc   :  { %120 = vst.msk [vmem:[%s198_s3 + $0x4] sm:$0xf] %vm118_vm2, %v133_v18 }

// kernel: transformer_forward.40
= control target key start
LH: loop header
LB: loop body
LE: loop exit
PB: predicated region body
PF: predicated region fallthrough
CT: control target
= control target key end

     0   :  { %s1374_s18 = smov 0   ;;  %s1376_s19 = smov 0   ;;  %s1564_s0 = inlined_call_operand.vmem [shape: s32[2,8,1], index: 0, kind: input, shape index: {}]   ;;  %s1565_s1 = inlined_call_operand.vmem [shape: s32[2,1,8], index: 1, kind: input, shape index: {}]   ;;  %s1566_s2 = inlined_call_operand.vmem [shape: bf16[2,8,32], index: 2, kind: input, shape index: {}]   ;;  %s1567_s3 = inlined_call_operand.vmem [shape: bf16[2,8,32], index: 3, kind: input, shape index: {}]   ;;  %s1568_s4 = inlined_call_operand.vmem [shape: bf16[2,8,32], index: 4, kind: input, shape index: {}]   ;;  %s1569_s5 = inlined_call_operand.vmem [shape: bf16[2,8,32], index: 5, kind: output, shape index: {}]  }
   0x1   :  { %s1378_s20 = smov 0  }
   0x2 LB: > { %s34_s21 = sadd.s32 1, %s1328_s19  ;;  %p1165_p0 = scmp.ge.s32.totalorder %s1332_s20, 1  ;;  %s1332_s20 = sphi %s1378_s20, %s15_s20   ;;  %s1328_s19 = sphi %s1376_s19, %s1573_s19   ;;  %s1324_s18 = sphi %s1374_s18, %s1572_s18  }
   0x3   : > { %p36_p1 = scmp.ge.s32.totalorder %s34_s21, 2  ;;  %p267_p2 = scmp.lt.s32.totalorder %s1332_s20, 3 }
   0x5   : > { %s1575_s21 = smov (%p36_p1, %s34_s21), 0  ;;  %p268_p3 = pnand %p1165_p0, %p267_p2 }
   0x6   : > { %p326_p4 = scmp.lt.s32.totalorder (!%p268_p3), %s1324_s18, 1  ;;  %s1338_s14 = smov (!%p268_p3), 120  }
   0x7   : > { %271 = sbr.rel (%p268_p3) target bundleno = 1416 (0x588), region = 40  ;;  %s1339_s15 = smov (!%p268_p3), 112  }
   0x8   : > { %s1340_s16 = smov (!%p268_p3), 104   ;;  %s1341_s17 = smov (!%p268_p3), 8  }
   0xc   : > { %vm381_vm0 = vcmask 64512   ;;  %v1334_v0 = vmov 0.0   ;;  %vm1335_vm1 = vmmov 0   ;;  %s1577_s18 = smov (!%p326_p4, %s1324_s18), 1  ;;  %v1336_v1 = vmov 0  }
   0xd   : > { %1200 = vmatprep.subr.bf16.mxu0 %v1334_v0  ;;  %382 = vst.msk [vmem:[#allocation4] sm:$0xff] %vm381_vm0, %v1334_v0  ;;  %383 = vst.msk [vmem:[#allocation4 + $0x8] sm:$0xff] %vm381_vm0, %v1334_v0  ;;  %1202 = vmatprep.mubr.msk.bf16.mxu0 %vm1335_vm1, %v1334_v0  ;;  %s1406_s22 = sshll.u32 %s1577_s18, 2  ;;  %s1166_s23 = sshll.u32 %s1577_s18, 3  ;;  %vm372_vm4 = vcmask 7168   ;;  %v391_v10 = vlaneseq  ;;  %vm501_vm10 = vcmask 1043456  }
   0xe   : > { %384 = vst.msk [vmem:[#allocation4 + $0x10] sm:$0xff] %vm381_vm0, %v1334_v0  ;;  %385 = vst.msk [vmem:[#allocation4 + $0x18] sm:$0xff] %vm381_vm0, %v1334_v0  ;;  %1282 = vset.pattern.permute.xlu0 %v1336_v1  ;;  %1283 = vset.pattern.permute.xlu1 %v1336_v1  ;;  %s352_s26 = scalar_lea.vmem %s1567_s3, %s1406_s22  ;;  %s332_s29 = scalar_lea.vmem %s1564_s0, %s1166_s23  ;;  %v1337_v9 = vmov -1e+30   ;;  %vm1020_vm11 = vcmask 130048   ;;  %vm1022_vm12 = vcmask 195584  }
   0xf   : > { %1206 = vmatprep.subr.bf16.mxu1 %v1334_v0  ;;  %1208 = vmatprep.mubr.msk.bf16.mxu1 %vm1335_vm1, %v1334_v0  ;;  %v415_v2 = vld [vmem:[%s352_s26] sm:$0xf]  ;;  %s338_s7 = scalar_lea.vmem %s1565_s1, %s1577_s18  ;;  %s345_s10 = scalar_lea.vmem %s1566_s2, %s1406_s22  ;;  %373 = vst.msk [vmem:[#allocation2] sm:$0xff] %vm372_vm4, %v1337_v9  ;;  %374 = vst.msk [vmem:[#allocation2 + $0x8] sm:$0xff] %vm372_vm4, %v1337_v9  ;;  %v392_v11 = vshrl.u32 %v391_v10, 7  ;;  %v408_v15 = vand.u32 127, %v391_v10 }
  0x10   : > { %v422_v3 = vsel %vm381_vm0, %v415_v2, 0  ;;  %v388_v4 = vld [vmem:[%s332_s29] sm:$0xff]  ;;  %375 = vst.msk [vmem:[#allocation2 + $0x10] sm:$0xff] %vm372_vm4, %v1337_v9  ;;  %376 = vst.msk [vmem:[#allocation2 + $0x18] sm:$0xff] %vm372_vm4, %v1337_v9  ;;  %v1174_v27 = vcombine.low %v415_v2, %v415_v2  ;;  %s359_s13 = scalar_lea.vmem %s1568_s4, %s1406_s22  ;;  %s1342_s18 = smov 16   ;;  %vm1025_vm13 = vcmask 257024  }
  0x11   : > { %v386_v5 = vld [vmem:[%s338_s7] sm:$0x1]  ;;  %1201 = vmatpush3.bf16.xpose.msra.mxu0 %v422_v3  ;;  %vm389_vm2 = vcmp.gt.s32.totalorder %v388_v4, 0  ;;  %377 = vst.msk [vmem:[#allocation3] sm:$0xff] %vm372_vm4, %v1334_v0  ;;  %378 = vst.msk [vmem:[#allocation3 + $0x8] sm:$0xff] %vm372_vm4, %v1334_v0  ;;  %v393_v12 = vsub.s32 0, %v392_v11  ;;  %vm412_vm7 = vcmp.ge.s32.totalorder %v392_v11, %v408_v15  ;;  %s366_s26 = scalar_lea.vmem %s1569_s5, %s1406_s22 }
  0x12   : > { %vm387_vm3 = vcmp.gt.s32.totalorder %v386_v5, 0  ;;  %v396_v6 = vsel %vm389_vm2, 1, %v1336_v1  ;;  %1218 = vmatprep.subr.bf16.mxu0 %v1334_v0  ;;  %v414_v8 = vld [vmem:[%s345_s10] sm:$0xf]  ;;  %379 = vst.msk [vmem:[#allocation3 + $0x10] sm:$0xff] %vm372_vm4, %v1334_v0  ;;  %380 = vst.msk [vmem:[#allocation3 + $0x18] sm:$0xff] %vm372_vm4, %v1334_v0 }
  0x13   : > { %v390_v7 = vsel %vm387_vm3, 1, %v1336_v1  ;;  %398 = vperm.xlu0 %1282, %v396_v6   ;;  %v1460_v29 = vld [vmem:[%s359_s13] sm:$0xf]  ;;  %v1173_v31 = vcombine.low %v414_v8, %v414_v8  ;;  %s1343_s23 = smov 24  }
  0x14   : > { %v394_v13 = vrot.slane %v390_v7, %v393_v12  ;;  %v503_v30 = vsel %vm501_vm10, %v1460_v29, 0 }
  0x15   : > { %1207 = vmatpush3.bf16.msra.mxu1 %v503_v30 }
  0x16   : > { %vm395_vm5 = vcmp.eq.s32.totalorder %v394_v13, 1  ;;  %v1446_v24 = vld [vmem:[#allocation2] sm:$0xff]  ;;  %1212 = vmatprep.subr.bf16.mxu1 %v1334_v0 }
  0x17   : > { %v747_v12 = vld [vmem:[#allocation2 + $0x10] sm:$0xff]  ;;  %v884_v16 = vld [vmem:[#allocation2 + $0x18] sm:$0xff] }
  0x18   : > { %1203 = vmatmul.mubr.msk.bf16.vlgmr.msra.gmra.mxu0 %vm381_vm0, %v414_v8  ;;  %v1501_v8 = vld [vmem:[#allocation2 + $0x8] sm:$0xff] }
  0x19   : > { %1220 = vmatprep.mubr.msk.bf16.mxu0 %vm1335_vm1, %v1334_v0 }
  0x8e   : > { %v399_v14 = vpop.permute.xlu0 %398 }
  0x8f   : > { %vm400_vm6 = vcmp.eq.s32.totalorder %v399_v14, 1 }
  0x90   : > { %vm401_vm8 = vmand %vm395_vm5, %vm400_vm6 }
  0x91   : > { %vm1439_vm9 = vmand %vm401_vm8, %vm412_vm7 }
  0xd8   : > { %v458_v17 = vpop.f32.mrf.mxu0 }
  0xd9   : > { %v464_v18 = vmul.f32 0.35355338, %v458_v17 }
  0xda   : > { %v1204_v19 = vpop.f32.mrf.mxu0 }
  0xdb   : > { %v465_v20 = vsel %vm1439_vm9, %v464_v18, -10000.0  ;;  %v1176_v19 = vcombine.low %v1460_v29, %v1460_v29 }
  0xdc   : > { %v461_v21 = vpop.f32.mrf.mxu0  ;;  %v467_v22 = vsel %vm381_vm0, %v465_v20, -inf }
  0xdd   : > { %468 = vmax.xlane.f32.xlu0 %v467_v22 }
  0xde   : > { %v1205_v23 = vpop.f32.mrf.mxu0 }
 0x166   : > { %v469_v25 = vpop.xlane.xlu0 %468 }
 0x167   : > { %v1449_v26 = vmax.f32 %v1446_v24, %v469_v25 }
 0x169   : > { %v471_v28 = vsub.f32 %v1446_v24, %v1449_v26  ;;  %547 = vst.msk [vmem:[#allocation2] sm:$0xff] %vm372_vm4, %v1449_v26  ;;  %476 = vperm.xlu1 %1283, %v1449_v26  }
 0x16d   : > { %556 = vrot.lane.b32.xlu1 %v1174_v27, %s1338_s14 }
 0x171   : > { %551 = vrot.lane.b32.xlu1 %v1173_v31, %s1338_s14 }
 0x175   : > { %696 = vrot.lane.b32.xlu1 %v1174_v27, %s1339_s15 }
 0x179   : > { %694 = vrot.lane.b32.xlu1 %v1173_v31, %s1339_s15 }
 0x17d   : > { %833 = vrot.lane.b32.xlu1 %v1174_v27, %s1340_s16 }
 0x181   : > { %831 = vrot.lane.b32.xlu1 %v1173_v31, %s1340_s16 }
 0x1e4   : > { %v477_v32 = vpop.permute.xlu1 %476 }
 0x1e5   : > { %v479_v33 = vsub.f32 %v465_v20, %v477_v32 }
 0x1e7   : > { %v480_v34 = vmul.f32 1.442695, %v479_v33 }
 0x1e8   : > { %v557_v35 = vpop.permute.xlu1 %556 }
 0x1e9   : > { %1286 = vpow2.f32 %v480_v34  ;;  %v562_v38 = vsel %vm381_vm0, %v557_v35, 0  ;;  %v472_v34 = vmul.f32 1.442695, %v471_v28 }
 0x1ec   : > { %v552_v36 = vpop.permute.xlu1 %551 }
 0x1f0   : > { %v697_v40 = vpop.permute.xlu1 %696 }
 0x1f1   : > { %v702_v42 = vsel %vm381_vm0, %v697_v40, 0 }
 0x1f4   : > { %v695_v41 = vpop.permute.xlu1 %694 }
 0x1f6   : > { %v1471_v37 = vpop.eup %1286 }
 0x1f7   : > { %v497_v39 = vpack.c.bf16 %v1471_v37, %v1471_v37  ;;  %v484_v21 = vsel %vm381_vm0, %v1471_v37, 0.0 }
 0x1f8   : > { %v834_v43 = vpop.permute.xlu1 %833 }
 0x1f9   : > { %1209 = vmatmul.mubr.msk.bf16.vlgmr.msra.gmra.mxu1 %vm381_vm0, %v497_v39  ;;  %v839_v44 = vsel %vm381_vm0, %v834_v43, 0 }
 0x1fa   : > { %1213 = vmatpush3.bf16.xpose.msra.mxu1 %v562_v38  ;;  %1214 = vmatprep.mubr.msk.bf16.mxu1 %vm1335_vm1, %v1334_v0 }
 0x1fb   : > { %1224 = vmatprep.subr.bf16.mxu1 %v1334_v0 }
 0x1fc   : > { %v832_v45 = vpop.permute.xlu1 %831 }
 0x201   : > { %1215 = vmatmul.mubr.msk.bf16.vlgmr.msra.gmra.mxu1 %vm381_vm0, %v552_v36 }
 0x202   : > { %1225 = vmatpush3.bf16.xpose.msra.mxu1 %v702_v42  ;;  %1226 = vmatprep.mubr.msk.bf16.mxu1 %vm1335_vm1, %v1334_v0 }
 0x203   : > { %1236 = vmatprep.subr.bf16.mxu1 %v1334_v0 }
 0x209   : > { %1227 = vmatmul.mubr.msk.bf16.vlgmr.msra.gmra.mxu1 %vm381_vm0, %v695_v41 }
 0x20a   : > { %1237 = vmatpush3.bf16.xpose.msra.mxu1 %v839_v44  ;;  %1238 = vmatprep.mubr.msk.bf16.mxu1 %vm1335_vm1, %v1334_v0 }
 0x211   : > { %1239 = vmatmul.mubr.msk.bf16.vlgmr.msra.gmra.mxu1 %vm381_vm0, %v832_v45 }
 0x2b9   : > { %v1490_v46 = vpop.f32.mrf.mxu1 }
 0x2bb   : > { %v1210_v47 = vpop.f32.mrf.mxu1 }
 0x2bd   : > { %v542_v48 = vpop.f32.mrf.mxu1 }
 0x2bf   : > { %v1211_v49 = vpop.f32.mrf.mxu1 }
 0x2c1   : > { %v598_v50 = vpop.f32.mrf.mxu1 }
 0x2c2   : > { %v604_v51 = vmul.f32 0.35355338, %v598_v50 }
 0x2c3   : > { %v1216_v52 = vpop.f32.mrf.mxu1 }
 0x2c4   : > { %v605_v53 = vsel %vm1439_vm9, %v604_v51, -10000.0 }
 0x2c5   : > { %v601_v54 = vpop.f32.mrf.mxu1  ;;  %v608_v55 = vsel %vm381_vm0, %v605_v53, -inf }
 0x2c6   : > { %609 = vmax.xlane.f32.xlu1 %v608_v55 }
 0x2c7   : > { %v1217_v56 = vpop.f32.mrf.mxu1 }
 0x2c9   : > { %v738_v57 = vpop.f32.mrf.mxu1 }
 0x2ca   : > { %v744_v58 = vmul.f32 0.35355338, %v738_v57 }
 0x2cb   : > { %v1228_v59 = vpop.f32.mrf.mxu1 }
 0x2cc   : > { %v745_v60 = vsel %vm1439_vm9, %v744_v58, -10000.0 }
 0x2cd   : > { %v741_v61 = vpop.f32.mrf.mxu1  ;;  %v748_v62 = vsel %vm381_vm0, %v745_v60, -inf }
 0x2ce   : > { %749 = vmax.xlane.f32.xlu0 %v748_v62 }
 0x2cf   : > { %v1229_v63 = vpop.f32.mrf.mxu1 }
 0x2d1   : > { %v875_v1 = vpop.f32.mrf.mxu1 }
 0x2d2   : > { %v881_v2 = vmul.f32 0.35355338, %v875_v1  ;;  %v490_v1 = vld [vmem:[#allocation4] sm:$0xff] }
 0x2d3   : > { %v1240_v3 = vpop.f32.mrf.mxu1 }
 0x2d4   : > { %v882_v4 = vsel %vm1439_vm9, %v881_v2, -10000.0  ;;  %v764_v3 = vld [vmem:[#allocation3 + $0x10] sm:$0xff] }
 0x2d5   : > { %v878_v5 = vpop.f32.mrf.mxu1  ;;  %v885_v6 = vsel %vm381_vm0, %v882_v4, -inf }
 0x2d6   : > { %886 = vmax.xlane.f32.xlu0 %v885_v6 }
 0x2d7   : > { %v1241_v7 = vpop.f32.mrf.mxu1 }
 0x34f   : > { %v610_v9 = vpop.xlane.xlu1 %609 }
 0x350   : > { %v1504_v10 = vmax.f32 %v1501_v8, %v610_v9 }
 0x352   : > { %v612_v11 = vsub.f32 %v1501_v8, %v1504_v10  ;;  %693 = vst.msk [vmem:[#allocation2 + $0x8] sm:$0xff] %vm372_vm4, %v1504_v10  ;;  %617 = vperm.xlu0 %1282, %v1504_v10   ;;  %v901_v10 = vld [vmem:[#allocation3 + $0x18] sm:$0xff] }
 0x354   : > { %v613_v52 = vmul.f32 1.442695, %v612_v11 }
 0x357   : > { %v750_v13 = vpop.xlane.xlu0 %749 }
 0x358   : > { %v751_v14 = vmax.f32 %v747_v12, %v750_v13 }
 0x35a   : > { %v752_v15 = vsub.f32 %v747_v12, %v751_v14  ;;  %830 = vst.msk [vmem:[#allocation2 + $0x10] sm:$0xff] %vm372_vm4, %v751_v14  ;;  %757 = vperm.xlu1 %1283, %v751_v14  }
 0x35c   : > { %v753_v39 = vmul.f32 1.442695, %v752_v15 }
 0x35f   : > { %v887_v17 = vpop.xlane.xlu0 %886 }
 0x360   : > { %v888_v18 = vmax.f32 %v884_v16, %v887_v17 }
 0x362   : > { %v889_v20 = vsub.f32 %v884_v16, %v888_v18  ;;  %967 = vst.msk [vmem:[#allocation2 + $0x18] sm:$0xff] %vm372_vm4, %v888_v18  ;;  %894 = vperm.xlu0 %1282, %v888_v18   ;;  %v632_v18 = vld [vmem:[#allocation4 + $0x8] sm:$0xff] }
 0x364   : > { %v890_v28 = vmul.f32 1.442695, %v889_v20 }
 0x366   : > { %643 = vrot.lane.b32.xlu0 %v1176_v19, %s1338_s14 }
 0x36a   : > { %780 = vrot.lane.b32.xlu0 %v1176_v19, %s1339_s15 }
 0x36e   : > { %917 = vrot.lane.b32.xlu0 %v1176_v19, %s1340_s16 }
 0x38d   : > { %485 = vadd.xlane.f32.xlu0 %v484_v21 }
 0x3cd   : > { %v618_v22 = vpop.permute.xlu0 %617 }
 0x3ce   : > { %v620_v23 = vsub.f32 %v605_v53, %v618_v22 }
 0x3d0   : > { %v621_v25 = vmul.f32 1.442695, %v620_v23 }
 0x3d2   : > { %1288 = vpow2.f32 %v621_v25  ;;  %v772_v25 = vld [vmem:[#allocation4 + $0x10] sm:$0xff] }
 0x3d5   : > { %v758_v27 = vpop.permute.xlu1 %757 }
 0x3d6   : > { %v760_v29 = vsub.f32 %v745_v60, %v758_v27  ;;  %v624_v60 = vld [vmem:[#allocation3 + $0x8] sm:$0xff] }
 0x3d8   : > { %v761_v30 = vmul.f32 1.442695, %v760_v29 }
 0x3da   : > { %1290 = vpow2.f32 %v761_v30 }
 0x3dd   : > { %v895_v31 = vpop.permute.xlu0 %894 }
 0x3de   : > { %v897_v32 = vsub.f32 %v882_v4, %v895_v31 }
 0x3df   : > { %v1289_v33 = vpop.eup %1288 }
 0x3e0   : > { %v898_v35 = vmul.f32 1.442695, %v897_v32  ;;  %v626_v36 = vsel %vm381_vm0, %v1289_v33, 0.0  ;;  %v639_v40 = vpack.c.bf16 %v1289_v33, %v1289_v33 }
 0x3e1   : > { %627 = vadd.xlane.f32.xlu1 %v626_v36  ;;  %v644_v37 = vpop.permute.xlu0 %643 }
 0x3e2   : > { %1292 = vpow2.f32 %v898_v35  ;;  %v649_v38 = vsel %vm501_vm10, %v644_v37, 0  ;;  %v909_v35 = vld [vmem:[#allocation4 + $0x18] sm:$0xff] }
 0x3e3   : > { %1219 = vmatpush3.bf16.msra.mxu0 %v649_v38  ;;  %1294 = vpow2.f32 %v472_v34 }
 0x3e4   : > { %1230 = vmatprep.subr.bf16.mxu0 %v1334_v0  ;;  %1296 = vpow2.f32 %v753_v39 }
 0x3e5   : > { %v781_v41 = vpop.permute.xlu0 %780  ;;  %1298 = vpow2.f32 %v890_v28 }
 0x3e6   : > { %1221 = vmatmul.mubr.msk.bf16.vlgmr.msra.gmra.mxu0 %vm381_vm0, %v639_v40  ;;  %v786_v24 = vsel %vm501_vm10, %v781_v41, 0  ;;  %1300 = vpow2.f32 %v613_v52 }
 0x3e7   : > { %v1291_v26 = vpop.eup %1290  ;;  %1231 = vmatpush3.bf16.msra.mxu0 %v786_v24  ;;  %1232 = vmatprep.mubr.msk.bf16.mxu0 %vm1335_vm1, %v1334_v0 }
 0x3e8   : > { %v766_v42 = vsel %vm381_vm0, %v1291_v26, 0.0  ;;  %1242 = vmatprep.subr.bf16.mxu0 %v1334_v0  ;;  %v779_v44 = vpack.c.bf16 %v1291_v26, %v1291_v26 }
 0x3e9   : > { %767 = vadd.xlane.f32.xlu0 %v766_v42  ;;  %v918_v43 = vpop.permute.xlu0 %917 }
 0x3ea   : > { %v923_v45 = vsel %vm501_vm10, %v918_v43, 0 }
 0x3ee   : > { %1233 = vmatmul.mubr.msk.bf16.vlgmr.msra.gmra.mxu0 %vm381_vm0, %v779_v44 }
 0x3ef   : > { %v1293_v47 = vpop.eup %1292  ;;  %1243 = vmatpush3.bf16.msra.mxu0 %v923_v45  ;;  %1244 = vmatprep.mubr.msk.bf16.mxu0 %vm1335_vm1, %v1334_v0  ;;  %v482_v0 = vld [vmem:[#allocation3] sm:$0xff] }
 0x3f0   : > { %v903_v48 = vsel %vm381_vm0, %v1293_v47, 0.0  ;;  %v1295_v49 = vpop.eup %1294  ;;  %v916_v50 = vpack.c.bf16 %v1293_v47, %v1293_v47 }
 0x3f1   : > { %904 = vadd.xlane.f32.xlu0 %v903_v48  ;;  %v1297_v51 = vpop.eup %1296  ;;  %v483_v55 = vmul.f32 %v1295_v49, %v482_v0 }
 0x3f2   : > { %493 = vperm.xlu1 %1283, %v1295_v49   ;;  %v1299_v53 = vpop.eup %1298  ;;  %v765_v6 = vmul.f32 %v1297_v51, %v764_v3 }
 0x3f3   : > { %v1301_v54 = vpop.eup %1300  ;;  %v902_v11 = vmul.f32 %v1299_v53, %v901_v10 }
 0x3f4   : > { %v625_v61 = vmul.f32 %v1301_v54, %v624_v60 }
 0x3f6   : > { %1245 = vmatmul.mubr.msk.bf16.vlgmr.msra.gmra.mxu0 %vm381_vm0, %v916_v50  ;;  %775 = vperm.xlu1 %1283, %v1297_v51  }
 0x3fa   : > { %912 = vperm.xlu1 %1283, %v1299_v53  }
 0x407   : > { %635 = vperm.xlu0 %1282, %v1301_v54  }
 0x416   : > { %v486_v56 = vpop.xlane.xlu0 %485 }
 0x417   : > { %v487_v57 = vadd.f32 %v486_v56, %v483_v55 }
 0x419   : > { %489 = vst.msk [vmem:[#allocation3] sm:$0xff] %vm372_vm4, %v487_v57 }
 0x420   : > { %v972_v58 = vld [vmem:[#allocation3] sm:$0xff] }
 0x421   : > { %1302 = vrcp.f32 %v972_v58 }
 0x42e   : > { %v1303_v59 = vpop.eup %1302 }
 0x42f   : > { %976 = vperm.xlu0 %1282, %v1303_v59  }
 0x46a   : > { %v628_v62 = vpop.xlane.xlu1 %627 }
 0x46b   : > { %v629_v63 = vadd.f32 %v628_v62, %v625_v61 }
 0x46d   : > { %630 = vst.msk [vmem:[#allocation3 + $0x8] sm:$0xff] %vm372_vm4, %v629_v63 }
 0x46e   : > { %v494_v2 = vpop.permute.xlu1 %493 }
 0x46f   : > { %v496_v4 = vmul.f32 %v494_v2, %v490_v1 }
 0x471   : > { %v545_v5 = vadd.f32 %v1490_v46, %v496_v4 }
 0x472   : > { %v768_v7 = vpop.xlane.xlu0 %767  ;;  %v776_v27 = vpop.permute.xlu1 %775 }
 0x473   : > { %546 = vst.msk [vmem:[#allocation4] sm:$0xff] %vm381_vm0, %v545_v5  ;;  %v769_v8 = vadd.f32 %v768_v7, %v765_v6  ;;  %v778_v31 = vmul.f32 %v776_v27, %v772_v25 }
 0x474   : > { %v981_v9 = vld [vmem:[#allocation3 + $0x8] sm:$0xff] }
 0x475   : > { %770 = vst.msk [vmem:[#allocation3 + $0x10] sm:$0xff] %vm372_vm4, %v769_v8  ;;  %1304 = vrcp.f32 %v981_v9 }
 0x476   : > { %v913_v36 = vpop.permute.xlu1 %912 }
 0x477   : > { %v915_v39 = vmul.f32 %v913_v36, %v909_v35 }
 0x47a   : > { %v905_v12 = vpop.xlane.xlu0 %904  ;;  %v971_v53 = vld [vmem:[#allocation4] sm:$0xff] }
 0x47b   : > { %v906_v13 = vadd.f32 %v905_v12, %v902_v11 }
 0x47c   : > { %v990_v14 = vld [vmem:[#allocation3 + $0x10] sm:$0xff] }
 0x47d   : > { %907 = vst.msk [vmem:[#allocation3 + $0x18] sm:$0xff] %vm372_vm4, %v906_v13  ;;  %1306 = vrcp.f32 %v990_v14 }
 0x482   : > { %v1305_v15 = vpop.eup %1304  ;;  %v636_v19 = vpop.permute.xlu0 %635 }
 0x483   : > { %985 = vperm.xlu1 %1283, %v1305_v15   ;;  %v638_v20 = vmul.f32 %v636_v19, %v632_v18 }
 0x484   : > { %v999_v46 = vld [vmem:[#allocation3 + $0x18] sm:$0xff] }
 0x485   : > { %1308 = vrcp.f32 %v999_v46 }
 0x48a   : > { %v1307_v16 = vpop.eup %1306 }
 0x48b   : > { %994 = vperm.xlu0 %1282, %v1307_v16  }
 0x492   : > { %v1309_v17 = vpop.eup %1308 }
 0x493   : > { %1003 = vperm.xlu1 %1283, %v1309_v17  }
 0x4a6   : > { %v685_v21 = vpop.f32.mrf.mxu0 }
 0x4a7   : > { %v691_v22 = vadd.f32 %v685_v21, %v638_v20 }
 0x4a8   : > { %v1222_v23 = vpop.f32.mrf.mxu0 }
 0x4a9   : > { %692 = vst.msk [vmem:[#allocation4 + $0x8] sm:$0xff] %vm381_vm0, %v691_v22 }
 0x4aa   : > { %v688_v29 = vpop.f32.mrf.mxu0  ;;  %v977_v45 = vpop.permute.xlu0 %976 }
 0x4ab   : > { %v979_v0 = vmul.f32 %v977_v45, %v971_v53 }
 0x4ac   : > { %v1223_v30 = vpop.f32.mrf.mxu0 }
 0x4ae   : > { %v822_v32 = vpop.f32.mrf.mxu0 }
 0x4af   : > { %v828_v33 = vadd.f32 %v822_v32, %v778_v31 }
 0x4b0   : > { %v1234_v34 = vpop.f32.mrf.mxu0  ;;  %v980_v42 = vld [vmem:[#allocation4 + $0x8] sm:$0xff] }
 0x4b1   : > { %829 = vst.msk [vmem:[#allocation4 + $0x10] sm:$0xff] %vm381_vm0, %v828_v33 }
 0x4b2   : > { %v825_v37 = vpop.f32.mrf.mxu0 }
 0x4b4   : > { %v1235_v38 = vpop.f32.mrf.mxu0 }
 0x4b6   : > { %v959_v40 = vpop.f32.mrf.mxu0 }
 0x4b7   : > { %v965_v41 = vadd.f32 %v959_v40, %v915_v39 }
 0x4b8   : > { %v1246_v24 = vpop.f32.mrf.mxu0  ;;  %v989_v47 = vld [vmem:[#allocation4 + $0x10] sm:$0xff] }
 0x4b9   : > { %966 = vst.msk [vmem:[#allocation4 + $0x18] sm:$0xff] %vm381_vm0, %v965_v41 }
 0x4ba   : > { %v962_v26 = vpop.f32.mrf.mxu0 }
 0x4bc   : > { %v1247_v28 = vpop.f32.mrf.mxu0 }
 0x4c0   : > { %v998_v50 = vld [vmem:[#allocation4 + $0x18] sm:$0xff] }
 0x4fe   : > { %v986_v43 = vpop.permute.xlu1 %985 }
 0x4ff   : > { %v988_v44 = vmul.f32 %v986_v43, %v980_v42 }
 0x501   : > { %1008 = vrot.lane.b32.xlu0 %v988_v44, %s1341_s17 }
 0x506   : > { %v995_v48 = vpop.permute.xlu0 %994 }
 0x507   : > { %v997_v49 = vmul.f32 %v995_v48, %v989_v47 }
 0x509   : > { %1012 = vrot.lane.b32.xlu1 %v997_v49, %s1342_s18 }
 0x50e   : > { %v1004_v51 = vpop.permute.xlu1 %1003 }
 0x50f   : > { %v1006_v52 = vmul.f32 %v1004_v51, %v998_v50 }
 0x511   : > { %1016 = vrot.lane.b32.xlu0 %v1006_v52, %s1343_s23 }
 0x573   : > { %v1009_v54 = vpop.permute.xlu0 %1008 }
 0x574   : > { %v1019_v56 = vsel %vm381_vm0, %v979_v0, %v1009_v54 }
 0x57b   : > { %v1013_v55 = vpop.permute.xlu1 %1012 }
 0x57c   : > { %v1021_v57 = vsel %vm1020_vm11, %v1019_v56, %v1013_v55 }
 0x583   : > { %v1017_v58 = vpop.permute.xlu0 %1016 }
 0x584   : > { %v1023_v59 = vsel %vm1022_vm12, %v1021_v57, %v1017_v58 }
 0x585   : > { %v1024_v60 = vpack.c.bf16 %v1023_v59, %v1023_v59 }
 0x587   : > { %1026 = vst.msk [vmem:[%s366_s26] sm:$0xf] %vm1025_vm13, %v1024_v60 }
 0x588 PF: > { %s15_s20 = sadd.s32 1, %s1332_s20   ;;  %s1572_s18 = smov %s1328_s19 }
 0x589   : > { %p12_p5 = scmp.ge.s32.totalorder %s15_s20, 4   ;;  %s1573_s19 = smov %s1575_s21 }
 0x58b   :  { %14 = sbr.rel (!%p12_p5) target bundleno = 2 (0x2), region = 99 }

// kernel: transformer_forward.57
= control target key start
LH: loop header
LB: loop body
LE: loop exit
PB: predicated region body
PF: predicated region fallthrough
CT: control target
= control target key end

     0   :  { %v174_v1 = vmov 0.0   ;;  %vm175_vm0 = vmmov 0   ;;  %s214_s0 = inlined_call_operand.vmem [shape: bf16[16,32], index: 0, kind: input, shape index: {}]   ;;  %s215_s1 = inlined_call_operand.vmem [shape: bf16[32,128], index: 1, kind: input, shape index: {}]   ;;  %s216_s2 = inlined_call_operand.vmem [shape: f32[1,128], index: 2, kind: input, shape index: {}]   ;;  %s217_s3 = inlined_call_operand.hbm [shape: f32[16,128], index: 3, kind: output, shape index: {}]  }
   0x1   :  { %v149_v0 = vld [vmem:[%s215_s1 + $0x8] sm:$0xff]   ;;  %136 = vmatprep.subr.bf16.mxu0 %v174_v1  ;;  %v150_v2 = vld [vmem:[%s215_s1] sm:$0xff]   ;;  %140 = vmatprep.mubr.msk.bf16.mxu0 %vm175_vm0, %v174_v1 }
   0x2   :  { %137 = vmatpush3.bf16.msra.mxu0 %v149_v0 }
   0x3   :  { %138 = vmatprep.subr.bf16.mxu0 %v174_v1 }
   0x4   :  { %8 = vsyncpa [#allocation4], 0  ;;  %v151_v3 = vld [vmem:[%s214_s0] sm:$0xff]   ;;  %vm47_vm1 = vcmask 261120   ;;  %s176_s20 = smov [#allocation3]  }
   0x5   :  { %v132_v4 = vld [vmem:[%s216_s2] ss:$0 sm:$0xff]  ;;  %s117_s21 = sshll.u32 %s176_s20, 4  ;;  %s118_s21 = int_to_ptr.vmem [resolvable:$true] %s117_s21 }
   0x6   :  { %139 = vmatpush3.bf16.msra.mxu0 %v150_v2  ;;  %s152_s1 = scalar_lea.vmem %s118_s21, 256  ;;  %p157_p1 = scmp.lt.s32.totalorder %s118_s21, %s118_s21 }
   0x7   :  { %p153_p0 = scmp.ne.s32.totalorder %s118_s21, %s152_s1  ;;  %p158_p2 = scmp.lt.s32.totalorder %s152_s1, %s152_s1 }
   0x9   :  { %141 = vmatmul.mubr.msk.bf16.vlgmr.msra.gmra.mxu0 %vm47_vm1, %v151_v3  ;;  %p159_p3 = por %p158_p2, %p157_p1 }
   0xb   :  { %p160_p4 = pnand %p159_p3, %p153_p0 }
  0xc9   :  { %v85_v5 = vpop.f32.mrf.mxu0 }
  0xca   :  { %v108_v6 = vadd.f32 %v132_v4, %v85_v5 }
  0xcb   :  { %v142_v7 = vpop.f32.mrf.mxu0 }
  0xcc   :  { %110 = vst [vmem:[#allocation3] sm:$0xff] %v108_v6 }
  0xcd   :  { %v88_v8 = vpop.f32.mrf.mxu0 }
  0xce   :  { %v109_v9 = vadd.f32 %v132_v4, %v88_v8 }
  0xcf   :  { %v143_v10 = vpop.f32.mrf.mxu0 }
  0xd0   :  { %111 = vst [vmem:[#allocation3 + $0x8] sm:$0xff] %v109_v9 }
  0xd1   :  { %163 = shalt.err (!%p160_p4)
}
  0xd2   :  { %s177_s0 = smov 128   ;;  %s178_s2 = smov 8  }
  0xd3   :  { %123 = dma.vmem_to_hbm [thread:$0]  %s118_s21, 256, %s217_s3, [#allocation4], %s177_s0, %s177_s0, %s178_s2  }
  0xd4   :  { %172 = dma.done.wait [#allocation4], 256  }
  0xd5   :  { %173 = vsyncadd [#allocation4], 4294967040 }
  0xd6   :  { %127 = vsyncpa [#allocation4], 1 }

</bundles_post_ra>
